<compile_context>
chip_gen: v5e
topology: v5e:2x2
jax: 0.10.0
libtpu: 0.0.40
codegen_flags: <defaults>
</compile_context>

<pallas_src>
import functools

import numpy as np

import jax
import jax.numpy as jnp
from jax.experimental import pallas as pl
from jax.experimental.pallas import tpu as pltpu


# ----------------------------------------------------------------------------
# Fused kernel:  out^T = W (C,K) @ X (K,L)  +  GroupNorm  +  PReLU  [+ epilogue]
# ----------------------------------------------------------------------------
def _make_fused_kernel(eps, L, combine):
    l_f = float(L)

    def kernel(x_ref, w_ref, pv_ref, proj_ref, o_ref):
        # x_ref   : (1, K, L) bf16      w_ref  : (C, K) bf16
        # pv_ref  : (C, 4)  f32  columns = [conv bias, gamma, beta, prelu alpha]
        # proj_ref: (C, C)  f32  proj[i,j] = 1/(L*|g_i|) if same GN group else 0
        x = x_ref[0]                                              # (K, L)
        w = w_ref[...]                                            # (C, K)
        acc = jnp.dot(w, x, preferred_element_type=jnp.float32)   # (C, L) f32

        bias = pv_ref[:, 0:1]                                     # (C, 1)
        gamma = pv_ref[:, 1:2]
        beta = pv_ref[:, 2:3]
        alpha = pv_ref[:, 3:4]

        # One-pass GroupNorm statistics; conv bias is folded analytically so
        # the (C, L) tile is traversed only once before the scale/shift pass.
        s1 = jnp.sum(acc, axis=1, keepdims=True)                  # (C, 1)
        s2 = jnp.sum(acc * acc, axis=1, keepdims=True)            # (C, 1)
        s1b = s1 + l_f * bias
        s2b = s2 + 2.0 * bias * s1 + l_f * bias * bias

        # Group reduction on VPU/XLU only (no MXU projector matmuls):
        # averaging matrix applied via broadcast-multiply + sublane reduce,
        # then the (1,C) row flipped back to a (C,1) column with a diagonal
        # select + lane reduce.
        proj = proj_ref[...]
        gmean_row = jnp.sum(proj * s1b, axis=0, keepdims=True)    # (1, C)
        gms_row = jnp.sum(proj * s2b, axis=0, keepdims=True)      # (1, C)
        c = proj.shape[0]
        ii = jax.lax.broadcasted_iota(jnp.int32, (c, c), 0)
        jj = jax.lax.broadcasted_iota(jnp.int32, (c, c), 1)
        diag = ii == jj
        gmean = jnp.sum(jnp.where(diag, gmean_row, 0.0), axis=1, keepdims=True)
        gms = jnp.sum(jnp.where(diag, gms_row, 0.0), axis=1, keepdims=True)

        var = jnp.maximum(gms - gmean * gmean, 0.0)               # biased var
        scale = gamma * jax.lax.rsqrt(var + eps)                  # (C, 1)
        shift = (bias - gmean) * scale + beta                     # (C, 1)

        y = acc * scale + shift                                   # single pass
        y = jnp.where(y >= 0.0, y, y * alpha)                     # PReLU

        if combine is None:
            o_ref[0] = y.astype(o_ref.dtype)
        else:
            # SliceContextBlock epilogue: keep block3D rows, sum the three
            # single-plane branches (XY+YZ+XZ) -> slices + 2 adds, no matmul.
            c3, c1 = combine
            x_slice = (y[c3:c3 + c1, :]
                       + y[c3 + c1:c3 + 2 * c1, :]
                       + y[c3 + 2 * c1:c3 + 3 * c1, :])
            o_ref[0] = jnp.concatenate([y[:c3, :], x_slice],
                                       axis=0).astype(o_ref.dtype)

    return kernel


def fused_conv_gn_prelu(x_kl, w_ck, pvec, proj, *, combine=None,
                        out_dtype=jnp.float32, eps=1e-5):
    """PReLU(GroupNorm(W @ X + b)) per sample, transposed lane-dense layout.

    x_kl : (N, K, L)   flattened conv patches, K = taps*Cin, L = spatial
    w_ck : (C, K)      fused conv weights (all branch channels stacked on C)
    pvec : (C, 4)      columns = [bias, gamma, beta, alpha]
    proj : (C, C)      GroupNorm group-averaging matrix
    combine = (C3, C1) -> SliceContextBlock slice-sum + concat epilogue
    Returns (N, Cfin, L) in out_dtype.
    """
    N, K, L = x_kl.shape
    C = w_ck.shape[0]
    Cfin = C if combine is None else combine[0] + combine[1]

    return pl.pallas_call(
        _make_fused_kernel(eps, L, combine),
        out_shape=jax.ShapeDtypeStruct((N, Cfin, L), out_dtype),
        grid=(N,),
        in_specs=[
            pl.BlockSpec((1, K, L), lambda n: (n, 0, 0)),
            pl.BlockSpec((C, K), lambda n: (0, 0)),   # constant index_map ->
            pl.BlockSpec((C, 4), lambda n: (0, 0)),   # stays VMEM-resident
            pl.BlockSpec((C, C), lambda n: (0, 0)),
        ],
        out_specs=pl.BlockSpec((1, Cfin, L), lambda n: (n, 0, 0)),
        compiler_params=pltpu.CompilerParams(
            dimension_semantics=("parallel",),
            vmem_limit_bytes=32 * 1024 * 1024),
    )(x_kl.astype(jnp.bfloat16), w_ck.astype(jnp.bfloat16),
      pvec.astype(jnp.float32), proj.astype(jnp.float32))


# ----------------------------------------------------------------------------
# Wrapper glue (layout only): im2col in (N, K, L) order, group projectors,
# fused-branch weight construction.
# ----------------------------------------------------------------------------
def _group_projector(group_ids, L):
    gid = np.asarray(group_ids)
    same = (gid[:, None] == gid[None, :]).astype(np.float32)
    cnt = same.sum(axis=1, keepdims=True) * float(L)   # elements per group
    return jnp.asarray(same / cnt, jnp.float32)


def _im2col_kl(x, ksize, padding):
    """(N,C,D,H,W) -> (N, KT*C, L); row order ((kd*KH+kh)*KW+kw)*C + c,
    matching w_big.reshape(KT*C, Ctot).  Stride 1, L is the trailing axis."""
    N, C, D, H, W = x.shape
    KD, KH, KW = ksize
    PD, PH, PW = padding
    xp = jnp.pad(x, ((0, 0), (0, 0), (PD, PD), (PH, PH), (PW, PW)))
    Do, Ho, Wo = D + 2 * PD - KD + 1, H + 2 * PH - KH + 1, W + 2 * PW - KW + 1
    L = Do * Ho * Wo
    taps = []
    for kd in range(KD):
        for kh in range(KH):
            for kw in range(KW):
                slab = xp[:, :, kd:kd + Do, kh:kh + Ho, kw:kw + Wo]
                taps.append(slab.reshape(N, C, L))
    # TODO(synk): at production sizes move this tap extraction into the kernel
    # (HBM traffic here is 27x the input).
    return jnp.concatenate(taps, axis=1), (Do, Ho, Wo)


def slice_context_apply(x, p, ksize):
    """Fused SliceContextBlock: four conv+GN+PReLU branches, XY+YZ+XZ sum and
    the channel concat in ONE pallas_call.  x: (N, Cin, D, H, W)."""
    N, Cin, D, H, W = x.shape
    kx, ky, kz = ksize
    px, py, pz = (kx - 1) // 2, (ky - 1) // 2, (kz - 1) // 2
    x_taps, (Do, Ho, Wo) = _im2col_kl(x.astype(jnp.bfloat16),
                                      (kx, ky, kz), (px, py, pz))
    L = Do * Ho * Wo

    C3 = p["block3D"]["w"].shape[-1]
    C1 = p["blockXY"]["w"].shape[-1]
    Ctot = C3 + 3 * C1

    # Embed the partial-kernel branches into the full (kx,ky,kz) tap grid
    # (zero weights on unused taps) so one K = kx*ky*kz*Cin matmul serves all.
    w3d = p["block3D"]["w"]                                       # (kx,ky,kz,Cin,C3)
    wxy = jnp.pad(p["blockXY"]["w"],
                  ((0, 0), (0, 0), (pz, kz - 1 - pz), (0, 0), (0, 0)))
    wyz = jnp.pad(p["blockYZ"]["w"],
                  ((px, kx - 1 - px), (0, 0), (0, 0), (0, 0), (0, 0)))
    wxz = jnp.pad(p["blockXZ"]["w"],
                  ((0, 0), (py, ky - 1 - py), (0, 0), (0, 0), (0, 0)))
    w_big = jnp.concatenate([w3d, wxy, wyz, wxz], axis=-1)
    w_ck = w_big.reshape(kx * ky * kz * Cin, Ctot).T              # (Ctot, K)

    branches = ("block3D", "blockXY", "blockYZ", "blockXZ")
    bias = jnp.concatenate([p[b]["b"] for b in branches])
    gamma = jnp.concatenate([p[b]["gamma"] for b in branches])
    beta = jnp.concatenate([p[b]["beta"] for b in branches])
    alpha = jnp.concatenate(
        [p["block3D"]["alpha"] * jnp.ones((C3,), jnp.float32)] +
        [p[b]["alpha"] * jnp.ones((C1,), jnp.float32)
         for b in ("blockXY", "blockYZ", "blockXZ")])
    pvec = jnp.stack([bias, gamma, beta, alpha], axis=1)          # (Ctot, 4)

    # Per-channel GroupNorm(4) group ids; each branch owns 4 distinct groups.
    gid = [c // (C3 // 4) for c in range(C3)]
    for b in range(3):
        gid += [4 * (b + 1) + c // (C1 // 4) for c in range(C1)]
    proj = _group_projector(gid, L)

    out = fused_conv_gn_prelu(x_taps, w_ck, pvec, proj,
                              combine=(C3, C1), out_dtype=jnp.bfloat16)
    return out.reshape(N, C3 + C1, Do, Ho, Wo)


def conv1x1_gn_prelu_apply(x, p):
    """Conv3d(1x1x1) + GroupNorm(4) + PReLU (the BottleNeck conv_input)."""
    N, Cin, D, H, W = x.shape
    L = D * H * W
    Cout = p["w"].shape[-1]
    w_ck = p["w"].reshape(Cin, Cout).T                            # (Cout, Cin)
    alpha = p["alpha"] * jnp.ones((Cout,), jnp.float32)
    pvec = jnp.stack([p["b"], p["gamma"], p["beta"], alpha], axis=1)
    gid = [c // (Cout // 4) for c in range(Cout)]
    proj = _group_projector(gid, L)
    out = fused_conv_gn_prelu(x.reshape(N, Cin, L).astype(jnp.bfloat16),
                              w_ck, pvec, proj, out_dtype=jnp.bfloat16)
    return out.reshape(N, Cout, D, H, W)


def up_block_apply(x, p):
    """ConvTranspose3d(k=2, s=2) + GroupNorm(4) + PReLU (the up_block), fused.

    With kernel == stride the transposed conv is a single (8*Cout, Cin) @
    (Cin, L) matmul -> 128-row, 512-lane output; GroupNorm stats over the
    upsampled volume are exact (each group = 8*Cg rows x L columns).  The
    spatial scatter is a wrapper reshape/transpose."""
    N, Cin, D, H, W = x.shape
    L = D * H * W
    Cout = p["w"].shape[1]
    w_ck = jnp.transpose(p["w"], (1, 2, 3, 4, 0)).reshape(8 * Cout, Cin)
    bias = jnp.repeat(p["b"], 8)
    gamma = jnp.repeat(p["gamma"], 8)
    beta = jnp.repeat(p["beta"], 8)
    alpha = p["alpha"] * jnp.ones((8 * Cout,), jnp.float32)
    pvec = jnp.stack([bias, gamma, beta, alpha], axis=1)          # (8*Cout, 4)
    gid = [r // (8 * (Cout // 4)) for r in range(8 * Cout)]
    proj = _group_projector(gid, L)
    y = fused_conv_gn_prelu(x.reshape(N, Cin, L).astype(jnp.bfloat16),
                            w_ck, pvec, proj, out_dtype=jnp.float32)
    y = y.reshape(N, Cout, 2, 2, 2, D, H, W)
    y = jnp.transpose(y, (0, 1, 5, 2, 6, 3, 7, 4))
    return y.reshape(N, Cout, 2 * D, 2 * H, 2 * W)


# ----------------------------------------------------------------------------
# Parameter construction (deterministic, PyTorch default-style shapes)
# ----------------------------------------------------------------------------
def init_conv_block(key, ksize, cin, cout):
    kd, kh, kw = ksize
    k1, k2 = jax.random.split(key)
    bound = 1.0 / np.sqrt(cin * kd * kh * kw)
    return {
        "w": jax.random.uniform(k1, (kd, kh, kw, cin, cout), jnp.float32,
                                -bound, bound),
        "b": jax.random.uniform(k2, (cout,), jnp.float32, -bound, bound),
        "gamma": jnp.ones((cout,), jnp.float32),       # GroupNorm weight
        "beta": jnp.zeros((cout,), jnp.float32),       # GroupNorm bias
        "alpha": jnp.asarray(0.25, jnp.float32),       # PReLU default
    }


def init_deconv_block(key, cin, cout):
    k1, k2 = jax.random.split(key)
    bound = 1.0 / np.sqrt(cout * 8)
    return {
        "w": jax.random.uniform(k1, (cin, cout, 2, 2, 2), jnp.float32,
                                -bound, bound),
        "b": jax.random.uniform(k2, (cout,), jnp.float32, -bound, bound),
        "gamma": jnp.ones((cout,), jnp.float32),
        "beta": jnp.zeros((cout,), jnp.float32),
        "alpha": jnp.asarray(0.25, jnp.float32),
    }


def init_slice_context(key, inp_ch, intra_ch, ksize):
    kx, ky, kz = ksize
    ks = jax.random.split(key, 4)
    c3, c1 = (3 * intra_ch) // 4, intra_ch // 4
    return {
        "block3D": init_conv_block(ks[0], (kx, ky, kz), inp_ch, c3),
        "blockXY": init_conv_block(ks[1], (kx, ky, 1), inp_ch, c1),
        "blockYZ": init_conv_block(ks[2], (1, ky, kz), inp_ch, c1),
        "blockXZ": init_conv_block(ks[3], (kx, 1, kz), inp_ch, c1),
    }


def init_bottleneck(key, cfg):
    keys = jax.random.split(key, 5)
    out_ch, in_ch, ks = cfg["out_channels"], cfg["in_channels"], cfg["kernel_size"]
    params = {}
    if cfg["input"]:
        params["conv_input"] = init_conv_block(keys[0], (1, 1, 1), out_ch, out_ch)
    blk = {"conv0": init_slice_context(keys[1], in_ch, out_ch, ks)}
    if cfg["create_layer_1"]:
        blk["conv1"] = init_slice_context(keys[2], out_ch, out_ch, ks)
    if cfg["create_layer_2"]:
        blk["conv2"] = init_slice_context(keys[3], out_ch, out_ch, ks)
    params["block"] = blk
    params["up"] = init_deconv_block(keys[4], out_ch, out_ch)
    return params


# ----------------------------------------------------------------------------
# Forward passes (mirror the PyTorch modules); data layout is NCDHW throughout.
# ----------------------------------------------------------------------------
def block_apply(x, p, ksize):
    x = slice_context_apply(x, p["conv0"], ksize)
    if "conv1" in p:   # mirrors try/except around self.conv1
        x = slice_context_apply(x, p["conv1"], ksize)
    if "conv2" in p:   # mirrors try/except around self.conv2
        x = slice_context_apply(x, p["conv2"], ksize)
    return x


def bottleneck_apply(x, params, cfg):
    if "conv_input" in params:   # mirrors try/except around self.conv_input
        x = conv1x1_gn_prelu_apply(x, params["conv_input"])
    else:
        x = x.astype(jnp.bfloat16)
    x_res = block_apply(x, params["block"], cfg["kernel_size"])
    x_res = x_res + x            # residual add in bf16: plain jnp, XLA fuses it
    x_up = up_block_apply(x_res, params["up"])
    return x_up


# ----------------------------------------------------------------------------
if __name__ == "__main__":
    cfg = dict(
        in_channels=16,        # == out_channels (required by BottleNeck residual)
        out_channels=16,       # divisible by 16 (GroupNorm(4) on 3/4 and 1/4 splits)
        kernel_size=(3, 3, 3),
        input=True,
        create_layer_1=True,
        create_layer_2=False,
    )
    N, C, D, H, W = 2, cfg["out_channels"], 8, 8, 8

    key = jax.random.PRNGKey(0)
    k_in, k_p = jax.random.split(key)

    # PyTorch-convention input layout (N, C, D, H, W).
    x = jax.random.normal(k_in, (N, C, D, H, W), jnp.float32)
    params = init_bottleneck(k_p, cfg)

    fwd = jax.jit(functools.partial(bottleneck_apply, cfg=cfg))
    x_up = fwd(x, params)
    jax.block_until_ready(x_up)

    assert x_up.shape == (N, C, 2 * D, 2 * H, 2 * W)
    assert bool(jnp.all(jnp.isfinite(x_up)))
    print("KERNEL_OK")
</pallas_src>

<mosaic_0001>
module attributes {stable_mosaic.version = 11 : i64} {
  func.func @kernel(%arg0: i32, %arg1: memref<1x16x512xbf16, #tpu.memory_space<vmem>>, %arg2: memref<16x16xbf16, #tpu.memory_space<vmem>>, %arg3: memref<16x4xf32, #tpu.memory_space<vmem>>, %arg4: memref<16x16xf32, #tpu.memory_space<vmem>>, %arg5: memref<1x16x512xbf16, #tpu.memory_space<vmem>>) attributes {dimension_semantics = [#tpu.dimension_semantics<parallel>], iteration_bounds = array<i64: 2>, scalar_prefetch = 0 : i64, scratch_operands = 0 : i64, tpu.core_type = #tpu.core_type<tc>, window_params = [{transform_indices = @transform_0, window_bounds = array<i64: 1, 16, 512>}, {pipeline_mode = #tpu.pipeline_mode<synchronous>, transform_indices = @transform_1, window_bounds = array<i64: 16, 16>}, {pipeline_mode = #tpu.pipeline_mode<synchronous>, transform_indices = @transform_2, window_bounds = array<i64: 16, 4>}, {pipeline_mode = #tpu.pipeline_mode<synchronous>, transform_indices = @transform_3, window_bounds = array<i64: 16, 16>}, {transform_indices = @transform_4, window_bounds = array<i64: 1, 16, 512>}]} {
    %c0 = arith.constant 0 : index
    %c0_0 = arith.constant 0 : index
    %c0_1 = arith.constant 0 : index
    %0 = vector.load %arg1[%c0, %c0_0, %c0_1] : memref<1x16x512xbf16, #tpu.memory_space<vmem>>, vector<1x16x512xbf16>
    %1 = vector.shape_cast %0 : vector<1x16x512xbf16> to vector<16x512xbf16>
    %c0_2 = arith.constant 0 : index
    %c0_3 = arith.constant 0 : index
    %2 = vector.load %arg2[%c0_2, %c0_3] : memref<16x16xbf16, #tpu.memory_space<vmem>>, vector<16x16xbf16>
    %cst = arith.constant dense<0.000000e+00> : vector<16x512xf32>
    %3 = tpu.matmul %2, %1, %cst {dimension_numbers = #tpu.dot_dimension_numbers<[1], [0], [0], [1], [0, 0, 1, 1], [], []>} : vector<16x16xbf16>, vector<16x512xbf16>, vector<16x512xf32> -> vector<16x512xf32>
    %c0_4 = arith.constant 0 : index
    %c0_5 = arith.constant 0 : index
    %4 = vector.load %arg3[%c0_4, %c0_5] : memref<16x4xf32, #tpu.memory_space<vmem>>, vector<16x1xf32>
    %c0_6 = arith.constant 0 : index
    %c1 = arith.constant 1 : index
    %5 = vector.load %arg3[%c0_6, %c1] : memref<16x4xf32, #tpu.memory_space<vmem>>, vector<16x1xf32>
    %c0_7 = arith.constant 0 : index
    %c2 = arith.constant 2 : index
    %6 = vector.load %arg3[%c0_7, %c2] : memref<16x4xf32, #tpu.memory_space<vmem>>, vector<16x1xf32>
    %c0_8 = arith.constant 0 : index
    %c3 = arith.constant 3 : index
    %7 = vector.load %arg3[%c0_8, %c3] : memref<16x4xf32, #tpu.memory_space<vmem>>, vector<16x1xf32>
    %cst_9 = arith.constant dense<0.000000e+00> : vector<16xf32>
    %8 = vector.multi_reduction <add>, %3, %cst_9 [1] : vector<16x512xf32> to vector<16xf32>
    %9 = vector.shape_cast %8 : vector<16xf32> to vector<16x1xf32>
    %10 = arith.mulf %3, %3 : vector<16x512xf32>
    %cst_10 = arith.constant dense<0.000000e+00> : vector<16xf32>
    %11 = vector.multi_reduction <add>, %10, %cst_10 [1] : vector<16x512xf32> to vector<16xf32>
    %12 = vector.shape_cast %11 : vector<16xf32> to vector<16x1xf32>
    %cst_11 = arith.constant 5.120000e+02 : f32
    %13 = vector.broadcast %cst_11 : f32 to vector<16x1xf32>
    %14 = arith.mulf %13, %4 : vector<16x1xf32>
    %15 = arith.addf %9, %14 : vector<16x1xf32>
    %cst_12 = arith.constant 2.000000e+00 : f32
    %16 = vector.broadcast %cst_12 : f32 to vector<16x1xf32>
    %17 = arith.mulf %16, %4 : vector<16x1xf32>
    %18 = arith.mulf %17, %9 : vector<16x1xf32>
    %19 = arith.addf %12, %18 : vector<16x1xf32>
    %cst_13 = arith.constant 5.120000e+02 : f32
    %20 = vector.broadcast %cst_13 : f32 to vector<16x1xf32>
    %21 = arith.mulf %20, %4 : vector<16x1xf32>
    %22 = arith.mulf %21, %4 : vector<16x1xf32>
    %23 = arith.addf %19, %22 : vector<16x1xf32>
    %c0_14 = arith.constant 0 : index
    %c0_15 = arith.constant 0 : index
    %24 = vector.load %arg4[%c0_14, %c0_15] : memref<16x16xf32, #tpu.memory_space<vmem>>, vector<16x16xf32>
    %25 = vector.broadcast %15 : vector<16x1xf32> to vector<16x16xf32>
    %26 = arith.mulf %24, %25 : vector<16x16xf32>
    %cst_16 = arith.constant dense<0.000000e+00> : vector<16xf32>
    %27 = vector.multi_reduction <add>, %26, %cst_16 [0] : vector<16x16xf32> to vector<16xf32>
    %28 = vector.shape_cast %27 : vector<16xf32> to vector<1x16xf32>
    %29 = vector.broadcast %23 : vector<16x1xf32> to vector<16x16xf32>
    %30 = arith.mulf %24, %29 : vector<16x16xf32>
    %cst_17 = arith.constant dense<0.000000e+00> : vector<16xf32>
    %31 = vector.multi_reduction <add>, %30, %cst_17 [0] : vector<16x16xf32> to vector<16xf32>
    %32 = vector.shape_cast %31 : vector<16xf32> to vector<1x16xf32>
    %33 = tpu.iota {dimensions = array<i32: 0>} : vector<16x16xi32>
    %34 = tpu.iota {dimensions = array<i32: 1>} : vector<16x16xi32>
    %35 = arith.cmpi eq, %33, %34 : vector<16x16xi32>
    %cst_18 = arith.constant 0.000000e+00 : f32
    %36 = vector.shape_cast %28 : vector<1x16xf32> to vector<1x16xf32>
    %37 = vector.broadcast %36 : vector<1x16xf32> to vector<16x16xf32>
    %38 = vector.broadcast %cst_18 : f32 to vector<16x16xf32>
    %39 = arith.select %35, %37, %38 : vector<16x16xi1>, vector<16x16xf32>
    %cst_19 = arith.constant dense<0.000000e+00> : vector<16xf32>
    %40 = vector.multi_reduction <add>, %39, %cst_19 [1] : vector<16x16xf32> to vector<16xf32>
    %41 = vector.shape_cast %40 : vector<16xf32> to vector<16x1xf32>
    %cst_20 = arith.constant 0.000000e+00 : f32
    %42 = vector.shape_cast %32 : vector<1x16xf32> to vector<1x16xf32>
    %43 = vector.broadcast %42 : vector<1x16xf32> to vector<16x16xf32>
    %44 = vector.broadcast %cst_20 : f32 to vector<16x16xf32>
    %45 = arith.select %35, %43, %44 : vector<16x16xi1>, vector<16x16xf32>
    %cst_21 = arith.constant dense<0.000000e+00> : vector<16xf32>
    %46 = vector.multi_reduction <add>, %45, %cst_21 [1] : vector<16x16xf32> to vector<16xf32>
    %47 = vector.shape_cast %46 : vector<16xf32> to vector<16x1xf32>
    %48 = arith.mulf %41, %41 : vector<16x1xf32>
    %49 = arith.subf %47, %48 : vector<16x1xf32>
    %cst_22 = arith.constant 0.000000e+00 : f32
    %50 = vector.broadcast %cst_22 : f32 to vector<16x1xf32>
    %51 = arith.maximumf %49, %50 : vector<16x1xf32>
    %cst_23 = arith.constant 9.99999974E-6 : f32
    %52 = vector.broadcast %cst_23 : f32 to vector<16x1xf32>
    %53 = arith.addf %51, %52 : vector<16x1xf32>
    %54 = math.rsqrt %53 : vector<16x1xf32>
    %55 = arith.mulf %5, %54 : vector<16x1xf32>
    %56 = arith.subf %4, %41 : vector<16x1xf32>
    %57 = arith.mulf %56, %55 : vector<16x1xf32>
    %58 = arith.addf %57, %6 : vector<16x1xf32>
    %59 = vector.broadcast %55 : vector<16x1xf32> to vector<16x512xf32>
    %60 = arith.mulf %3, %59 : vector<16x512xf32>
    %61 = vector.broadcast %58 : vector<16x1xf32> to vector<16x512xf32>
    %62 = arith.addf %60, %61 : vector<16x512xf32>
    %cst_24 = arith.constant 0.000000e+00 : f32
    %63 = vector.broadcast %cst_24 : f32 to vector<16x512xf32>
    %64 = arith.cmpf oge, %62, %63 : vector<16x512xf32>
    %65 = vector.broadcast %7 : vector<16x1xf32> to vector<16x512xf32>
    %66 = arith.mulf %62, %65 : vector<16x512xf32>
    %67 = arith.select %64, %62, %66 : vector<16x512xi1>, vector<16x512xf32>
    %68 = arith.truncf %67 : vector<16x512xf32> to vector<16x512xbf16>
    %c0_25 = arith.constant 0 : index
    %c0_26 = arith.constant 0 : index
    %c0_27 = arith.constant 0 : index
    %69 = vector.load %arg5[%c0_25, %c0_26, %c0_27] : memref<1x16x512xbf16, #tpu.memory_space<vmem>>, vector<1x16x512xbf16>
    %70 = vector.shape_cast %69 : vector<1x16x512xbf16> to vector<16x512xbf16>
    %71 = vector.shape_cast %68 : vector<16x512xbf16> to vector<1x16x512xbf16>
    tpu.vector_store %arg5[%c0_25, %c0_26, %c0_27], %71 {strides = array<i32>} : memref<1x16x512xbf16, #tpu.memory_space<vmem>>, vector<1x16x512xbf16>,
    return
  }
  func.func @transform_0(%arg0: i32) -> (i32, i32, i32) {
    %c0_i32 = arith.constant 0 : i32
    %c0_i32_0 = arith.constant 0 : i32
    %c0_i32_1 = arith.constant 0 : i32
    return %arg0, %c0_i32, %c0_i32_0 : i32, i32, i32
  }
  func.func @transform_1(%arg0: i32) -> (i32, i32) {
    %c0_i32 = arith.constant 0 : i32
    %c0_i32_0 = arith.constant 0 : i32
    %c0_i32_1 = arith.constant 0 : i32
    return %c0_i32, %c0_i32_0 : i32, i32
  }
  func.func @transform_2(%arg0: i32) -> (i32, i32) {
    %c0_i32 = arith.constant 0 : i32
    %c0_i32_0 = arith.constant 0 : i32
    %c0_i32_1 = arith.constant 0 : i32
    return %c0_i32, %c0_i32_0 : i32, i32
  }
  func.func @transform_3(%arg0: i32) -> (i32, i32) {
    %c0_i32 = arith.constant 0 : i32
    %c0_i32_0 = arith.constant 0 : i32
    %c0_i32_1 = arith.constant 0 : i32
    return %c0_i32, %c0_i32_0 : i32, i32
  }
  func.func @transform_4(%arg0: i32) -> (i32, i32, i32) {
    %c0_i32 = arith.constant 0 : i32
    %c0_i32_0 = arith.constant 0 : i32
    %c0_i32_1 = arith.constant 0 : i32
    return %arg0, %c0_i32, %c0_i32_0 : i32, i32, i32
  }
}

module attributes {stable_mosaic.version = 11 : i64} {
  func.func @kernel(%arg0: i32, %arg1: memref<1x432x512xbf16, #tpu.memory_space<vmem>>, %arg2: memref<24x432xbf16, #tpu.memory_space<vmem>>, %arg3: memref<24x4xf32, #tpu.memory_space<vmem>>, %arg4: memref<24x24xf32, #tpu.memory_space<vmem>>, %arg5: memref<1x16x512xbf16, #tpu.memory_space<vmem>>) attributes {dimension_semantics = [#tpu.dimension_semantics<parallel>], iteration_bounds = array<i64: 2>, scalar_prefetch = 0 : i64, scratch_operands = 0 : i64, tpu.core_type = #tpu.core_type<tc>, window_params = [{transform_indices = @transform_0, window_bounds = array<i64: 1, 432, 512>}, {pipeline_mode = #tpu.pipeline_mode<synchronous>, transform_indices = @transform_1, window_bounds = array<i64: 24, 432>}, {pipeline_mode = #tpu.pipeline_mode<synchronous>, transform_indices = @transform_2, window_bounds = array<i64: 24, 4>}, {pipeline_mode = #tpu.pipeline_mode<synchronous>, transform_indices = @transform_3, window_bounds = array<i64: 24, 24>}, {transform_indices = @transform_4, window_bounds = array<i64: 1, 16, 512>}]} {
    %c0 = arith.constant 0 : index
    %c0_0 = arith.constant 0 : index
    %c0_1 = arith.constant 0 : index
    %0 = vector.load %arg1[%c0, %c0_0, %c0_1] : memref<1x432x512xbf16, #tpu.memory_space<vmem>>, vector<1x432x512xbf16>
    %1 = vector.shape_cast %0 : vector<1x432x512xbf16> to vector<432x512xbf16>
    %c0_2 = arith.constant 0 : index
    %c0_3 = arith.constant 0 : index
    %2 = vector.load %arg2[%c0_2, %c0_3] : memref<24x432xbf16, #tpu.memory_space<vmem>>, vector<24x432xbf16>
    %cst = arith.constant dense<0.000000e+00> : vector<24x512xf32>
    %3 = tpu.matmul %2, %1, %cst {dimension_numbers = #tpu.dot_dimension_numbers<[1], [0], [0], [1], [0, 0, 1, 1], [], []>} : vector<24x432xbf16>, vector<432x512xbf16>, vector<24x512xf32> -> vector<24x512xf32>
    %c0_4 = arith.constant 0 : index
    %c0_5 = arith.constant 0 : index
    %4 = vector.load %arg3[%c0_4, %c0_5] : memref<24x4xf32, #tpu.memory_space<vmem>>, vector<24x1xf32>
    %c0_6 = arith.constant 0 : index
    %c1 = arith.constant 1 : index
    %5 = vector.load %arg3[%c0_6, %c1] : memref<24x4xf32, #tpu.memory_space<vmem>>, vector<24x1xf32>
    %c0_7 = arith.constant 0 : index
    %c2 = arith.constant 2 : index
    %6 = vector.load %arg3[%c0_7, %c2] : memref<24x4xf32, #tpu.memory_space<vmem>>, vector<24x1xf32>
    %c0_8 = arith.constant 0 : index
    %c3 = arith.constant 3 : index
    %7 = vector.load %arg3[%c0_8, %c3] : memref<24x4xf32, #tpu.memory_space<vmem>>, vector<24x1xf32>
    %cst_9 = arith.constant dense<0.000000e+00> : vector<24xf32>
    %8 = vector.multi_reduction <add>, %3, %cst_9 [1] : vector<24x512xf32> to vector<24xf32>
    %9 = vector.shape_cast %8 : vector<24xf32> to vector<24x1xf32>
    %10 = arith.mulf %3, %3 : vector<24x512xf32>
    %cst_10 = arith.constant dense<0.000000e+00> : vector<24xf32>
    %11 = vector.multi_reduction <add>, %10, %cst_10 [1] : vector<24x512xf32> to vector<24xf32>
    %12 = vector.shape_cast %11 : vector<24xf32> to vector<24x1xf32>
    %cst_11 = arith.constant 5.120000e+02 : f32
    %13 = vector.broadcast %cst_11 : f32 to vector<24x1xf32>
    %14 = arith.mulf %13, %4 : vector<24x1xf32>
    %15 = arith.addf %9, %14 : vector<24x1xf32>
    %cst_12 = arith.constant 2.000000e+00 : f32
    %16 = vector.broadcast %cst_12 : f32 to vector<24x1xf32>
    %17 = arith.mulf %16, %4 : vector<24x1xf32>
    %18 = arith.mulf %17, %9 : vector<24x1xf32>
    %19 = arith.addf %12, %18 : vector<24x1xf32>
    %cst_13 = arith.constant 5.120000e+02 : f32
    %20 = vector.broadcast %cst_13 : f32 to vector<24x1xf32>
    %21 = arith.mulf %20, %4 : vector<24x1xf32>
    %22 = arith.mulf %21, %4 : vector<24x1xf32>
    %23 = arith.addf %19, %22 : vector<24x1xf32>
    %c0_14 = arith.constant 0 : index
    %c0_15 = arith.constant 0 : index
    %24 = vector.load %arg4[%c0_14, %c0_15] : memref<24x24xf32, #tpu.memory_space<vmem>>, vector<24x24xf32>
    %25 = vector.broadcast %15 : vector<24x1xf32> to vector<24x24xf32>
    %26 = arith.mulf %24, %25 : vector<24x24xf32>
    %cst_16 = arith.constant dense<0.000000e+00> : vector<24xf32>
    %27 = vector.multi_reduction <add>, %26, %cst_16 [0] : vector<24x24xf32> to vector<24xf32>
    %28 = vector.shape_cast %27 : vector<24xf32> to vector<1x24xf32>
    %29 = vector.broadcast %23 : vector<24x1xf32> to vector<24x24xf32>
    %30 = arith.mulf %24, %29 : vector<24x24xf32>
    %cst_17 = arith.constant dense<0.000000e+00> : vector<24xf32>
    %31 = vector.multi_reduction <add>, %30, %cst_17 [0] : vector<24x24xf32> to vector<24xf32>
    %32 = vector.shape_cast %31 : vector<24xf32> to vector<1x24xf32>
    %33 = tpu.iota {dimensions = array<i32: 0>} : vector<24x24xi32>
    %34 = tpu.iota {dimensions = array<i32: 1>} : vector<24x24xi32>
    %35 = arith.cmpi eq, %33, %34 : vector<24x24xi32>
    %cst_18 = arith.constant 0.000000e+00 : f32
    %36 = vector.shape_cast %28 : vector<1x24xf32> to vector<1x24xf32>
    %37 = vector.broadcast %36 : vector<1x24xf32> to vector<24x24xf32>
    %38 = vector.broadcast %cst_18 : f32 to vector<24x24xf32>
    %39 = arith.select %35, %37, %38 : vector<24x24xi1>, vector<24x24xf32>
    %cst_19 = arith.constant dense<0.000000e+00> : vector<24xf32>
    %40 = vector.multi_reduction <add>, %39, %cst_19 [1] : vector<24x24xf32> to vector<24xf32>
    %41 = vector.shape_cast %40 : vector<24xf32> to vector<24x1xf32>
    %cst_20 = arith.constant 0.000000e+00 : f32
    %42 = vector.shape_cast %32 : vector<1x24xf32> to vector<1x24xf32>
    %43 = vector.broadcast %42 : vector<1x24xf32> to vector<24x24xf32>
    %44 = vector.broadcast %cst_20 : f32 to vector<24x24xf32>
    %45 = arith.select %35, %43, %44 : vector<24x24xi1>, vector<24x24xf32>
    %cst_21 = arith.constant dense<0.000000e+00> : vector<24xf32>
    %46 = vector.multi_reduction <add>, %45, %cst_21 [1] : vector<24x24xf32> to vector<24xf32>
    %47 = vector.shape_cast %46 : vector<24xf32> to vector<24x1xf32>
    %48 = arith.mulf %41, %41 : vector<24x1xf32>
    %49 = arith.subf %47, %48 : vector<24x1xf32>
    %cst_22 = arith.constant 0.000000e+00 : f32
    %50 = vector.broadcast %cst_22 : f32 to vector<24x1xf32>
    %51 = arith.maximumf %49, %50 : vector<24x1xf32>
    %cst_23 = arith.constant 9.99999974E-6 : f32
    %52 = vector.broadcast %cst_23 : f32 to vector<24x1xf32>
    %53 = arith.addf %51, %52 : vector<24x1xf32>
    %54 = math.rsqrt %53 : vector<24x1xf32>
    %55 = arith.mulf %5, %54 : vector<24x1xf32>
    %56 = arith.subf %4, %41 : vector<24x1xf32>
    %57 = arith.mulf %56, %55 : vector<24x1xf32>
    %58 = arith.addf %57, %6 : vector<24x1xf32>
    %59 = vector.broadcast %55 : vector<24x1xf32> to vector<24x512xf32>
    %60 = arith.mulf %3, %59 : vector<24x512xf32>
    %61 = vector.broadcast %58 : vector<24x1xf32> to vector<24x512xf32>
    %62 = arith.addf %60, %61 : vector<24x512xf32>
    %cst_24 = arith.constant 0.000000e+00 : f32
    %63 = vector.broadcast %cst_24 : f32 to vector<24x512xf32>
    %64 = arith.cmpf oge, %62, %63 : vector<24x512xf32>
    %65 = vector.broadcast %7 : vector<24x1xf32> to vector<24x512xf32>
    %66 = arith.mulf %62, %65 : vector<24x512xf32>
    %67 = arith.select %64, %62, %66 : vector<24x512xi1>, vector<24x512xf32>
    %68 = vector.extract_strided_slice %67 {offsets = [12, 0], sizes = [4, 512], strides = [1, 1]} : vector<24x512xf32> to vector<4x512xf32>
    %69 = vector.extract_strided_slice %67 {offsets = [16, 0], sizes = [4, 512], strides = [1, 1]} : vector<24x512xf32> to vector<4x512xf32>
    %70 = arith.addf %68, %69 : vector<4x512xf32>
    %71 = vector.extract_strided_slice %67 {offsets = [20, 0], sizes = [4, 512], strides = [1, 1]} : vector<24x512xf32> to vector<4x512xf32>
    %72 = arith.addf %70, %71 : vector<4x512xf32>
    %73 = vector.extract_strided_slice %67 {offsets = [0, 0], sizes = [12, 512], strides = [1, 1]} : vector<24x512xf32> to vector<12x512xf32>
    %74 = tpu.concatenate %73, %72 in 0 : vector<12x512xf32>, vector<4x512xf32> -> vector<16x512xf32>
    %75 = arith.truncf %74 : vector<16x512xf32> to vector<16x512xbf16>
    %c0_25 = arith.constant 0 : index
    %c0_26 = arith.constant 0 : index
    %c0_27 = arith.constant 0 : index
    %76 = vector.load %arg5[%c0_25, %c0_26, %c0_27] : memref<1x16x512xbf16, #tpu.memory_space<vmem>>, vector<1x16x512xbf16>
    %77 = vector.shape_cast %76 : vector<1x16x512xbf16> to vector<16x512xbf16>
    %78 = vector.shape_cast %75 : vector<16x512xbf16> to vector<1x16x512xbf16>
    tpu.vector_store %arg5[%c0_25, %c0_26, %c0_27], %78 {strides = array<i32>} : memref<1x16x512xbf16, #tpu.memory_space<vmem>>, vector<1x16x512xbf16>,
    return
  }
  func.func @transform_0(%arg0: i32) -> (i32, i32, i32) {
    %c0_i32 = arith.constant 0 : i32
    %c0_i32_0 = arith.constant 0 : i32
    %c0_i32_1 = arith.constant 0 : i32
    return %arg0, %c0_i32, %c0_i32_0 : i32, i32, i32
  }
  func.func @transform_1(%arg0: i32) -> (i32, i32) {
    %c0_i32 = arith.constant 0 : i32
    %c0_i32_0 = arith.constant 0 : i32
    %c0_i32_1 = arith.constant 0 : i32
    return %c0_i32, %c0_i32_0 : i32, i32
  }
  func.func @transform_2(%arg0: i32) -> (i32, i32) {
    %c0_i32 = arith.constant 0 : i32
    %c0_i32_0 = arith.constant 0 : i32
    %c0_i32_1 = arith.constant 0 : i32
    return %c0_i32, %c0_i32_0 : i32, i32
  }
  func.func @transform_3(%arg0: i32) -> (i32, i32) {
    %c0_i32 = arith.constant 0 : i32
    %c0_i32_0 = arith.constant 0 : i32
    %c0_i32_1 = arith.constant 0 : i32
    return %c0_i32, %c0_i32_0 : i32, i32
  }
  func.func @transform_4(%arg0: i32) -> (i32, i32, i32) {
    %c0_i32 = arith.constant 0 : i32
    %c0_i32_0 = arith.constant 0 : i32
    %c0_i32_1 = arith.constant 0 : i32
    return %arg0, %c0_i32, %c0_i32_0 : i32, i32, i32
  }
}

module attributes {stable_mosaic.version = 11 : i64} {
  func.func @kernel(%arg0: i32, %arg1: memref<1x16x512xbf16, #tpu.memory_space<vmem>>, %arg2: memref<128x16xbf16, #tpu.memory_space<vmem>>, %arg3: memref<128x4xf32, #tpu.memory_space<vmem>>, %arg4: memref<128x128xf32, #tpu.memory_space<vmem>>, %arg5: memref<1x128x512xf32, #tpu.memory_space<vmem>>) attributes {dimension_semantics = [#tpu.dimension_semantics<parallel>], iteration_bounds = array<i64: 2>, scalar_prefetch = 0 : i64, scratch_operands = 0 : i64, tpu.core_type = #tpu.core_type<tc>, window_params = [{transform_indices = @transform_0, window_bounds = array<i64: 1, 16, 512>}, {pipeline_mode = #tpu.pipeline_mode<synchronous>, transform_indices = @transform_1, window_bounds = array<i64: 128, 16>}, {pipeline_mode = #tpu.pipeline_mode<synchronous>, transform_indices = @transform_2, window_bounds = array<i64: 128, 4>}, {pipeline_mode = #tpu.pipeline_mode<synchronous>, transform_indices = @transform_3, window_bounds = array<i64: 128, 128>}, {transform_indices = @transform_4, window_bounds = array<i64: 1, 128, 512>}]} {
    %c0 = arith.constant 0 : index
    %c0_0 = arith.constant 0 : index
    %c0_1 = arith.constant 0 : index
    %0 = vector.load %arg1[%c0, %c0_0, %c0_1] : memref<1x16x512xbf16, #tpu.memory_space<vmem>>, vector<1x16x512xbf16>
    %1 = vector.shape_cast %0 : vector<1x16x512xbf16> to vector<16x512xbf16>
    %c0_2 = arith.constant 0 : index
    %c0_3 = arith.constant 0 : index
    %2 = vector.load %arg2[%c0_2, %c0_3] : memref<128x16xbf16, #tpu.memory_space<vmem>>, vector<128x16xbf16>
    %cst = arith.constant dense<0.000000e+00> : vector<128x512xf32>
    %3 = tpu.matmul %2, %1, %cst {dimension_numbers = #tpu.dot_dimension_numbers<[1], [0], [0], [1], [0, 0, 1, 1], [], []>} : vector<128x16xbf16>, vector<16x512xbf16>, vector<128x512xf32> -> vector<128x512xf32>
    %c0_4 = arith.constant 0 : index
    %c0_5 = arith.constant 0 : index
    %4 = vector.load %arg3[%c0_4, %c0_5] : memref<128x4xf32, #tpu.memory_space<vmem>>, vector<128x1xf32>
    %c0_6 = arith.constant 0 : index
    %c1 = arith.constant 1 : index
    %5 = vector.load %arg3[%c0_6, %c1] : memref<128x4xf32, #tpu.memory_space<vmem>>, vector<128x1xf32>
    %c0_7 = arith.constant 0 : index
    %c2 = arith.constant 2 : index
    %6 = vector.load %arg3[%c0_7, %c2] : memref<128x4xf32, #tpu.memory_space<vmem>>, vector<128x1xf32>
    %c0_8 = arith.constant 0 : index
    %c3 = arith.constant 3 : index
    %7 = vector.load %arg3[%c0_8, %c3] : memref<128x4xf32, #tpu.memory_space<vmem>>, vector<128x1xf32>
    %cst_9 = arith.constant dense<0.000000e+00> : vector<128xf32>
    %8 = vector.multi_reduction <add>, %3, %cst_9 [1] : vector<128x512xf32> to vector<128xf32>
    %9 = vector.shape_cast %8 : vector<128xf32> to vector<128x1xf32>
    %10 = arith.mulf %3, %3 : vector<128x512xf32>
    %cst_10 = arith.constant dense<0.000000e+00> : vector<128xf32>
    %11 = vector.multi_reduction <add>, %10, %cst_10 [1] : vector<128x512xf32> to vector<128xf32>
    %12 = vector.shape_cast %11 : vector<128xf32> to vector<128x1xf32>
    %cst_11 = arith.constant 5.120000e+02 : f32
    %13 = vector.broadcast %cst_11 : f32 to vector<128x1xf32>
    %14 = arith.mulf %13, %4 : vector<128x1xf32>
    %15 = arith.addf %9, %14 : vector<128x1xf32>
    %cst_12 = arith.constant 2.000000e+00 : f32
    %16 = vector.broadcast %cst_12 : f32 to vector<128x1xf32>
    %17 = arith.mulf %16, %4 : vector<128x1xf32>
    %18 = arith.mulf %17, %9 : vector<128x1xf32>
    %19 = arith.addf %12, %18 : vector<128x1xf32>
    %cst_13 = arith.constant 5.120000e+02 : f32
    %20 = vector.broadcast %cst_13 : f32 to vector<128x1xf32>
    %21 = arith.mulf %20, %4 : vector<128x1xf32>
    %22 = arith.mulf %21, %4 : vector<128x1xf32>
    %23 = arith.addf %19, %22 : vector<128x1xf32>
    %c0_14 = arith.constant 0 : index
    %c0_15 = arith.constant 0 : index
    %24 = vector.load %arg4[%c0_14, %c0_15] : memref<128x128xf32, #tpu.memory_space<vmem>>, vector<128x128xf32>
    %25 = vector.broadcast %15 : vector<128x1xf32> to vector<128x128xf32>
    %26 = arith.mulf %24, %25 : vector<128x128xf32>
    %cst_16 = arith.constant dense<0.000000e+00> : vector<128xf32>
    %27 = vector.multi_reduction <add>, %26, %cst_16 [0] : vector<128x128xf32> to vector<128xf32>
    %28 = vector.shape_cast %27 : vector<128xf32> to vector<1x128xf32>
    %29 = vector.broadcast %23 : vector<128x1xf32> to vector<128x128xf32>
    %30 = arith.mulf %24, %29 : vector<128x128xf32>
    %cst_17 = arith.constant dense<0.000000e+00> : vector<128xf32>
    %31 = vector.multi_reduction <add>, %30, %cst_17 [0] : vector<128x128xf32> to vector<128xf32>
    %32 = vector.shape_cast %31 : vector<128xf32> to vector<1x128xf32>
    %33 = tpu.iota {dimensions = array<i32: 0>} : vector<128x128xi32>
    %34 = tpu.iota {dimensions = array<i32: 1>} : vector<128x128xi32>
    %35 = arith.cmpi eq, %33, %34 : vector<128x128xi32>
    %cst_18 = arith.constant 0.000000e+00 : f32
    %36 = vector.shape_cast %28 : vector<1x128xf32> to vector<1x128xf32>
    %37 = vector.broadcast %36 : vector<1x128xf32> to vector<128x128xf32>
    %38 = vector.broadcast %cst_18 : f32 to vector<128x128xf32>
    %39 = arith.select %35, %37, %38 : vector<128x128xi1>, vector<128x128xf32>
    %cst_19 = arith.constant dense<0.000000e+00> : vector<128xf32>
    %40 = vector.multi_reduction <add>, %39, %cst_19 [1] : vector<128x128xf32> to vector<128xf32>
    %41 = vector.shape_cast %40 : vector<128xf32> to vector<128x1xf32>
    %cst_20 = arith.constant 0.000000e+00 : f32
    %42 = vector.shape_cast %32 : vector<1x128xf32> to vector<1x128xf32>
    %43 = vector.broadcast %42 : vector<1x128xf32> to vector<128x128xf32>
    %44 = vector.broadcast %cst_20 : f32 to vector<128x128xf32>
    %45 = arith.select %35, %43, %44 : vector<128x128xi1>, vector<128x128xf32>
    %cst_21 = arith.constant dense<0.000000e+00> : vector<128xf32>
    %46 = vector.multi_reduction <add>, %45, %cst_21 [1] : vector<128x128xf32> to vector<128xf32>
    %47 = vector.shape_cast %46 : vector<128xf32> to vector<128x1xf32>
    %48 = arith.mulf %41, %41 : vector<128x1xf32>
    %49 = arith.subf %47, %48 : vector<128x1xf32>
    %cst_22 = arith.constant 0.000000e+00 : f32
    %50 = vector.broadcast %cst_22 : f32 to vector<128x1xf32>
    %51 = arith.maximumf %49, %50 : vector<128x1xf32>
    %cst_23 = arith.constant 9.99999974E-6 : f32
    %52 = vector.broadcast %cst_23 : f32 to vector<128x1xf32>
    %53 = arith.addf %51, %52 : vector<128x1xf32>
    %54 = math.rsqrt %53 : vector<128x1xf32>
    %55 = arith.mulf %5, %54 : vector<128x1xf32>
    %56 = arith.subf %4, %41 : vector<128x1xf32>
    %57 = arith.mulf %56, %55 : vector<128x1xf32>
    %58 = arith.addf %57, %6 : vector<128x1xf32>
    %59 = vector.broadcast %55 : vector<128x1xf32> to vector<128x512xf32>
    %60 = arith.mulf %3, %59 : vector<128x512xf32>
    %61 = vector.broadcast %58 : vector<128x1xf32> to vector<128x512xf32>
    %62 = arith.addf %60, %61 : vector<128x512xf32>
    %cst_24 = arith.constant 0.000000e+00 : f32
    %63 = vector.broadcast %cst_24 : f32 to vector<128x512xf32>
    %64 = arith.cmpf oge, %62, %63 : vector<128x512xf32>
    %65 = vector.broadcast %7 : vector<128x1xf32> to vector<128x512xf32>
    %66 = arith.mulf %62, %65 : vector<128x512xf32>
    %67 = arith.select %64, %62, %66 : vector<128x512xi1>, vector<128x512xf32>
    %c0_25 = arith.constant 0 : index
    %c0_26 = arith.constant 0 : index
    %c0_27 = arith.constant 0 : index
    %68 = vector.load %arg5[%c0_25, %c0_26, %c0_27] : memref<1x128x512xf32, #tpu.memory_space<vmem>>, vector<1x128x512xf32>
    %69 = vector.shape_cast %68 : vector<1x128x512xf32> to vector<128x512xf32>
    %70 = vector.shape_cast %67 : vector<128x512xf32> to vector<1x128x512xf32>
    tpu.vector_store %arg5[%c0_25, %c0_26, %c0_27], %70 {strides = array<i32>} : memref<1x128x512xf32, #tpu.memory_space<vmem>>, vector<1x128x512xf32>,
    return
  }
  func.func @transform_0(%arg0: i32) -> (i32, i32, i32) {
    %c0_i32 = arith.constant 0 : i32
    %c0_i32_0 = arith.constant 0 : i32
    %c0_i32_1 = arith.constant 0 : i32
    return %arg0, %c0_i32, %c0_i32_0 : i32, i32, i32
  }
  func.func @transform_1(%arg0: i32) -> (i32, i32) {
    %c0_i32 = arith.constant 0 : i32
    %c0_i32_0 = arith.constant 0 : i32
    %c0_i32_1 = arith.constant 0 : i32
    return %c0_i32, %c0_i32_0 : i32, i32
  }
  func.func @transform_2(%arg0: i32) -> (i32, i32) {
    %c0_i32 = arith.constant 0 : i32
    %c0_i32_0 = arith.constant 0 : i32
    %c0_i32_1 = arith.constant 0 : i32
    return %c0_i32, %c0_i32_0 : i32, i32
  }
  func.func @transform_3(%arg0: i32) -> (i32, i32) {
    %c0_i32 = arith.constant 0 : i32
    %c0_i32_0 = arith.constant 0 : i32
    %c0_i32_1 = arith.constant 0 : i32
    return %c0_i32, %c0_i32_0 : i32, i32
  }
  func.func @transform_4(%arg0: i32) -> (i32, i32, i32) {
    %c0_i32 = arith.constant 0 : i32
    %c0_i32_0 = arith.constant 0 : i32
    %c0_i32_1 = arith.constant 0 : i32
    return %arg0, %c0_i32, %c0_i32_0 : i32, i32, i32
  }
}

</mosaic_0001>

<bundles_post_ra>
// kernel: mul.12
= control target key start
LH: loop header
LB: loop body
LE: loop exit
PB: predicated region body
PF: predicated region fallthrough
CT: control target
= control target key end

     0   :  { %s20_s0 = inlined_call_operand.<no memory space> [shape: f32[], index: 0, kind: input, shape index: {}]   ;;  %s21_s1 = inlined_call_operand.vmem [shape: f32[4], index: 1, kind: output, shape index: {}]  }
   0x1   :  { %v2_v0 = vstv %s20_s0 }
   0x2   :  { %3 = vst [vmem:[%s21_s1] sm:$0x1] %v2_v0 }

// kernel: mul.11
= control target key start
LH: loop header
LB: loop body
LE: loop exit
PB: predicated region body
PF: predicated region fallthrough
CT: control target
= control target key end

     0   :  { %s20_s0 = inlined_call_operand.<no memory space> [shape: f32[], index: 0, kind: input, shape index: {}]   ;;  %s21_s1 = inlined_call_operand.vmem [shape: f32[12], index: 1, kind: output, shape index: {}]  }
   0x1   :  { %v2_v0 = vstv %s20_s0 }
   0x2   :  { %3 = vst [vmem:[%s21_s1] sm:$0x1] %v2_v0 }

// kernel: bottleneck_apply.4
= control target key start
LH: loop header
LB: loop body
LE: loop exit
PB: predicated region body
PF: predicated region fallthrough
CT: control target
= control target key end

     0   :  { %9 = vsyncpa [#allocation3], 0  ;;  %s769_s15 = smov 0   ;;  %s891_s0 = inlined_call_operand.vmem [shape: bf16[2,16,512], index: 0, kind: input, shape index: {}]   ;;  %s892_s1 = inlined_call_operand.vmem [shape: bf16[16,16], index: 1, kind: input, shape index: {}]   ;;  %s893_s2 = inlined_call_operand.vmem [shape: f32[16,4], index: 2, kind: input, shape index: {}]   ;;  %s894_s3 = inlined_call_operand.hbm [shape: f32[16,16], index: 3, kind: input, shape index: {}]   ;;  %s895_s4 = inlined_call_operand.vmem [shape: bf16[2,16,512], index: 4, kind: output, shape index: {}]  }
   0x1 LB: > { %s152_s18 = sshll.u32 %s894_s3, 4  ;;  %s611_s19 = sadd.s32 4294967295, %s734_s15   ;;  %s734_s15 = sphi %s769_s15, %s15_s15   ;;  %s153_s18 = int_to_ptr.hbm [resolvable:$true] %s152_s18 }
   0x2   : > { %p613_p0 = scmp.ge.s32.totalorder %s734_s15, 1  ;;  %p135_p1 = scmp.lt.s32.totalorder %s734_s15, 3 }
   0x3   : > { %p663_p2 = scmp.eq.s32.totalorder %s611_s19, 0  ;;  %s736_s20 = smov [#allocation2]  }
   0x4   : > { %p136_p3 = pnand %p613_p0, %p135_p1  ;;  %s154_s21 = sshll.u32 %s736_s20, 4  ;;  %s155_s21 = int_to_ptr.vmem [resolvable:$true] %s154_s21 }
   0x5   : > { %s737_s22 = smov 128   ;;  %s738_s23 = smov 8  }
   0x6   : > { %p659_p4 = pneg %p136_p3  ;;  %178 = sbr.rel (%p136_p3) target bundleno = 799 (0x31f), region = 36 }
   0x8   : > { %p660_p5 = pnand %p663_p2, %p659_p4 }
   0xa   : > { %662 = dma.hbm_to_vmem [thread:$0]  (!%p660_p5), %s153_s18, 256, %s155_s21, [#allocation3], %s737_s22, %s737_s22, %s738_s23  }
   0xb   : > { %729 = dma.done.wait (%p663_p2), [#allocation3], 256  }
   0xc   : > { %731 = vsyncadd (%p663_p2), [#allocation3], 4294967040  ;;  %p205_p6 = scmp.lt.s32.totalorder %s611_s19, 1  ;;  %v654_v11 = vld [vmem:[%s892_s1] sm:$0xff]  ;;  %vm247_vm0 = vcmask 130048   ;;  %v739_v41 = vmov 0  }
   0xd   : > { %681 = vset.pattern.permute.xlu2 %v739_v41  ;;  %682 = vset.pattern.permute.xlu0 %v739_v41  ;;  %v841_v42 = vld [vmem:[%s893_s2] sm:$0xff]  ;;  %v849_v50 = vld [vmem:[%s893_s2 + $0x8] sm:$0xff]  ;;  %s741_s8 = smov 127   ;;  %s742_s9 = smov 126  }
   0xe   : > { %s897_s19 = smov (!%p205_p6, %s611_s19), 1  ;;  %683 = vset.pattern.permute.xlu1 %v739_v41  ;;  %v341_v43 = vmul.f32 2.0, %v841_v42  ;;  %v337_v44 = vmul.f32 512.0, %v841_v42  ;;  %v338_v53 = vmul.f32 512.0, %v849_v50  ;;  %v342_v54 = vmul.f32 2.0, %v849_v50  ;;  %v351_v63 = vld [vmem:[#allocation2] sm:$0xff] }
   0xf   : > { %s648_s24 = sshll.u32 %s897_s19, 5 }
  0x10   : > { %s209_s27 = scalar_lea.vmem %s891_s0, %s648_s24  ;;  %v347_v47 = vmul.f32 %v337_v44, %v841_v42  ;;  %v348_v58 = vmul.f32 %v338_v53, %v849_v50  ;;  %s214_s12 = scalar_lea.vmem %s895_s4, %s648_s24 }
  0x11   : > { %v628_v0 = vld [vmem:[%s209_s27] sm:$0xf]  ;;  %v652_v1 = vld [vmem:[%s209_s27 + $0xc] sm:$0xf0]  ;;  %v650_v2 = vld [vmem:[%s209_s27 + $0x4] sm:$0xf] }
  0x12   : > { %v629_v3 = vor.u32 %v652_v1, %v628_v0  ;;  %v630_v4 = vld [vmem:[%s209_s27 + $0x10] sm:$0xf0]  ;;  %v636_v5 = vld [vmem:[%s209_s27 + $0x8] sm:$0xf]  ;;  %v653_v6 = vld [vmem:[%s209_s27 + $0x14] sm:$0xf0] }
  0x13   : > { %v633_v7 = vor.u32 %v650_v2, %v630_v4  ;;  %v637_v8 = vor.u32 %v653_v6, %v636_v5  ;;  %v651_v9 = vld [vmem:[%s209_s27 + $0xc] sm:$0xf]  ;;  %v638_v10 = vld [vmem:[%s209_s27 + $0x18] sm:$0xf0]  ;;  %v395_v6 = vlaneseq }
  0x14   : > { %258 = vmatpush.bf16.msra.mxu0 %v629_v3  ;;  %v641_v12 = vor.u32 %v651_v9, %v638_v10  ;;  %v352_v0 = vld [vmem:[#allocation2 + $0x8] sm:$0xff] }
  0x15   : > { %272 = vmatpush.bf16.msra.mxu1 %v633_v7  ;;  %286 = vmatpush.bf16.msra.mxu2 %v637_v8  ;;  %v396_v9 = vshrl.u32 %v395_v6, 7 }
  0x16   : > { %300 = vmatpush.bf16.msra.mxu3 %v641_v12  ;;  %v399_v12 = vand.u32 127, %v395_v6 }
  0x17   : > { %642 = vmatmul.msk.bf16.vlgmr.msra.gmra.mxu0 %vm247_vm0, %v654_v11 }
  0x18   : > { %643 = vmatmul.msk.bf16.vlgmr.msra.gmra.mxu1 %vm247_vm0, %v654_v11  ;;  %644 = vmatmul.msk.bf16.vlgmr.msra.gmra.mxu2 %vm247_vm0, %v654_v11  ;;  %vm400_vm1 = vcmp.eq.s32.totalorder %v396_v9, %v399_v12 }
  0x19   : > { %645 = vmatmul.msk.bf16.vlgmr.msra.gmra.mxu3 %vm247_vm0, %v654_v11 }
  0x94   : > { %v795_v13 = vpop.f32.mrf.mxu0 }
  0x95   : > { %v797_v14 = vpop.f32.mrf.mxu1  ;;  %v319_v15 = vmul.f32 %v795_v13, %v795_v13 }
  0x96   : > { %v320_v16 = vmul.f32 %v797_v14, %v797_v14  ;;  %v309_v17 = vadd.f32 %v797_v14, %v795_v13 }
  0x98   : > { %v327_v18 = vadd.f32 %v320_v16, %v319_v15  ;;  %v397_v15 = vadd.s32 8, %v396_v9 }
  0x9a   : > { %vm401_vm2 = vcmp.eq.s32.totalorder %v397_v15, %v399_v12 }
  0x9b   : > { %v805_v19 = vpop.f32.mrf.mxu2 }
  0x9c   : > { %v321_v20 = vmul.f32 %v805_v19, %v805_v19  ;;  %v809_v21 = vpop.f32.mrf.mxu3  ;;  %v310_v22 = vadd.f32 %v309_v17, %v805_v19  ;;  %v812_v23 = vpop.f32.mrf.mxu0 }
  0x9d   : > { %v814_v24 = vpop.f32.mrf.mxu1  ;;  %v322_v25 = vmul.f32 %v809_v21, %v809_v21  ;;  %v323_v28 = vmul.f32 %v812_v23, %v812_v23 }
  0x9e   : > { %v311_v26 = vadd.f32 %v310_v22, %v809_v21  ;;  %v328_v27 = vadd.f32 %v327_v18, %v321_v20  ;;  %v324_v29 = vmul.f32 %v814_v24, %v814_v24  ;;  %v314_v31 = vadd.f32 %v814_v24, %v812_v23 }
  0xa0   : > { %312 = vadd.xlane.f32.xlu0 %v311_v26  ;;  %v329_v30 = vadd.f32 %v328_v27, %v322_v25  ;;  %v332_v33 = vadd.f32 %v324_v29, %v323_v28 }
  0xa2   : > { %330 = vadd.xlane.f32.xlu1 %v329_v30 }
  0xa3   : > { %v825_v32 = vpop.f32.mrf.mxu2 }
  0xa4   : > { %v315_v34 = vadd.f32 %v314_v31, %v825_v32  ;;  %v325_v35 = vmul.f32 %v825_v32, %v825_v32  ;;  %v830_v36 = vpop.f32.mrf.mxu3 }
  0xa5   : > { %v326_v37 = vmul.f32 %v830_v36, %v830_v36 }
  0xa6   : > { %v316_v38 = vadd.f32 %v315_v34, %v830_v36  ;;  %v333_v39 = vadd.f32 %v332_v33, %v325_v35 }
  0xa8   : > { %317 = vadd.xlane.f32.xlu0 %v316_v38  ;;  %v334_v40 = vadd.f32 %v333_v39, %v326_v37 }
  0xaa   : > { %335 = vadd.xlane.f32.xlu1 %v334_v40 }
 0x113   : > { %v313_v45 = vpop.xlane.xlu0 %312 }
 0x114   : > { %v343_v46 = vmul.f32 %v341_v43, %v313_v45  ;;  %v339_v48 = vadd.f32 %v337_v44, %v313_v45 }
 0x115   : > { %v331_v49 = vpop.xlane.xlu1 %330 }
 0x116   : > { %v345_v51 = vadd.f32 %v343_v46, %v331_v49  ;;  %355 = vperm.xlu2 %681, %v339_v48   ;;  %v740_v48 = vmov 1  }
 0x118   : > { %v349_v52 = vadd.f32 %v347_v47, %v345_v51 }
 0x11a   : > { %376 = vperm.xlu0 %682, %v349_v52  }
 0x11b   : > { %v318_v55 = vpop.xlane.xlu0 %317 }
 0x11c   : > { %v340_v56 = vadd.f32 %v338_v53, %v318_v55  ;;  %v344_v57 = vmul.f32 %v342_v54, %v318_v55 }
 0x11d   : > { %v336_v59 = vpop.xlane.xlu1 %335 }
 0x11e   : > { %v346_v60 = vadd.f32 %v344_v57, %v336_v59  ;;  %360 = vperm.xlu2 %681, %v340_v56  }
 0x120   : > { %v350_v61 = vadd.f32 %v348_v58, %v346_v60 }
 0x122   : > { %381 = vperm.xlu1 %683, %v350_v61   ;;  %684 = vset.pattern.permute.xlu0 %v740_v48 }
 0x126   : > { %685 = vset.pattern.permute.xlu2 %v740_v48 }
 0x170   : > { %v356_v62 = vpop.permute.xlu2 %355 }
 0x171   : > { %v363_v1 = vmul.f32 %v356_v62, %v351_v63 }
 0x173   : > { %v365_v4 = vsel %vm247_vm0, %v363_v1, 0.0 }
 0x178   : > { %v361_v2 = vpop.permute.xlu2 %360 }
 0x179   : > { %v364_v3 = vmul.f32 %v361_v2, %v352_v0 }
 0x17b   : > { %v366_v5 = vsel %vm247_vm0, %v364_v3, 0.0 }
 0x17c   : > { %v367_v7 = vadd.f32 %v366_v5, %v365_v4 }
 0x17e   : > { %v368_v8 = vrot.slane %v367_v7, 4 }
 0x180   : > { %v369_v10 = vadd.f32 %v368_v8, %v367_v7 }
 0x182   : > { %v370_v11 = vrot.slane %v369_v10, 2 }
 0x184   : > { %v371_v16 = vadd.f32 %v370_v11, %v369_v10 }
 0x186   : > { %v372_v17 = vrot.slane %v371_v16, 1 }
 0x188   : > { %v373_v18 = vadd.f32 %v372_v17, %v371_v16  ;;  %v743_v16 = vmov 3  }
 0x18a   : > { %v402_v20 = vsel %vm400_vm1, %v373_v18, 0.0  ;;  %v403_v22 = vsel %vm401_vm2, %v373_v18, 0.0 }
 0x18b   : > { %v404_v25 = vsel %vm247_vm0, %v402_v20, 0.0  ;;  %v407_v26 = vsel %vm247_vm0, %v403_v22, 0.0 }
 0x18c   : > { %405 = vadd.xlane.f32.xlu2 %v404_v25  ;;  %408 = vadd.xlane.f32.xlu1 %v407_v26  ;;  %v377_v27 = vpop.permute.xlu0 %376 }
 0x18d   : > { %v384_v28 = vmul.f32 %v377_v27, %v351_v63 }
 0x18f   : > { %v386_v31 = vsel %vm247_vm0, %v384_v28, 0.0 }
 0x194   : > { %v382_v29 = vpop.permute.xlu1 %381 }
 0x195   : > { %v385_v30 = vmul.f32 %v382_v29, %v352_v0 }
 0x197   : > { %v387_v33 = vsel %vm247_vm0, %v385_v30, 0.0 }
 0x198   : > { %v388_v34 = vadd.f32 %v387_v33, %v386_v31 }
 0x19a   : > { %v389_v35 = vrot.slane %v388_v34, 4 }
 0x19c   : > { %v390_v37 = vadd.f32 %v389_v35, %v388_v34 }
 0x19e   : > { %v391_v38 = vrot.slane %v390_v37, 2 }
 0x1a0   : > { %v392_v39 = vadd.f32 %v391_v38, %v390_v37 }
 0x1a2   : > { %v393_v40 = vrot.slane %v392_v39, 1 }
 0x1a4   : > { %v394_v43 = vadd.f32 %v393_v40, %v392_v39 }
 0x1a6   : > { %v411_v44 = vsel %vm401_vm2, %v394_v43, 0.0  ;;  %v410_v45 = vsel %vm400_vm1, %v394_v43, 0.0 }
 0x1a7   : > { %v415_v46 = vsel %vm247_vm0, %v411_v44, 0.0  ;;  %v412_v47 = vsel %vm247_vm0, %v410_v45, 0.0 }
 0x1a8   : > { %416 = vadd.xlane.f32.xlu2 %v415_v46  ;;  %413 = vadd.xlane.f32.xlu0 %v412_v47 }
 0x1ff   : > { %v406_v49 = vpop.xlane.xlu2 %405  ;;  %v409_v51 = vpop.xlane.xlu1 %408 }
 0x200   : > { %v418_v52 = vmul.f32 %v406_v49, %v406_v49  ;;  %v419_v53 = vmul.f32 %v409_v51, %v409_v51  ;;  %v448_v18 = vsub.f32 %v841_v42, %v406_v49  ;;  %v449_v26 = vsub.f32 %v849_v50, %v409_v51 }
 0x21b   : > { %v417_v54 = vpop.xlane.xlu2 %416  ;;  %v414_v55 = vpop.xlane.xlu0 %413 }
 0x21c   : > { %v421_v56 = vsub.f32 %v417_v54, %v419_v53  ;;  %v420_v57 = vsub.f32 %v414_v55, %v418_v52 }
 0x21e   : > { %v423_v58 = vmax.f32 %v421_v56, 0.0  ;;  %v422_v59 = vmax.f32 %v420_v57, 0.0 }
 0x220   : > { %v425_v60 = vadd.f32 1e-05, %v423_v58  ;;  %v424_v61 = vadd.f32 1e-05, %v422_v59 }
 0x222   : > { %690 = vrsqrt.f32 %v425_v60  ;;  %vm442_vm5 = vweird.f32 %v425_v60  ;;  %vm432_vm7 = vweird.f32 %v424_v61 }
 0x223   : > { %692 = vrsqrt.f32 %v424_v61 }
 0x228   : > { %v691_v62 = vpop.eup %690 }
 0x229   : > { %v693_v63 = vpop.eup %692  ;;  %v437_v0 = vmul.f32 %v691_v62, %v425_v60  ;;  %vm443_vm3 = vweird.f32 %v691_v62 }
 0x22a   : > { %v427_v1 = vmul.f32 %v693_v63, %v424_v61  ;;  %vm433_vm4 = vweird.f32 %v693_v63  ;;  %vm444_vm6 = vmor %vm442_vm5, %vm443_vm3 }
 0x22b   : > { %v438_v2 = vmul.f32 %v691_v62, %v437_v0  ;;  %vm434_vm8 = vmor %vm432_vm7, %vm433_vm4 }
 0x22c   : > { %v428_v3 = vmul.f32 %v693_v63, %v427_v1 }
 0x22d   : > { %v439_v4 = vmul.f32 0.5, %v438_v2 }
 0x22e   : > { %v429_v5 = vmul.f32 0.5, %v428_v3 }
 0x22f   : > { %v440_v6 = vsub.f32 1.5, %v439_v4 }
 0x230   : > { %v430_v7 = vsub.f32 1.5, %v429_v5 }
 0x231   : > { %v441_v8 = vmul.f32 %v691_v62, %v440_v6 }
 0x232   : > { %v431_v9 = vmul.f32 %v693_v63, %v430_v7 }
 0x233   : > { %v445_v10 = vsel %vm444_vm6, %v691_v62, %v441_v8 }
 0x234   : > { %v447_v11 = vmul.f32 %v445_v10, %v849_v50  ;;  %v435_v12 = vsel %vm434_vm8, %v693_v63, %v431_v9 }
 0x235   : > { %v446_v15 = vmul.f32 %v435_v12, %v841_v42 }
 0x236   : > { %454 = vrot.lane.b32.xlu1 %v447_v11, %s741_s8 }
 0x237   : > { %471 = vperm.xlu0 %684, %v446_v15   ;;  %452 = vrot.lane.b32.xlu2 %v446_v15, %s741_s8 }
 0x23f   : > { %462 = vrot.lane.b32.xlu2 %v841_v42, %s742_s9  ;;  %689 = vset.pattern.permute.xlu0 %v743_v16 }
 0x247   : > { %464 = vrot.lane.b32.xlu2 %v849_v50, %s742_s9 }
 0x24f   : > { %475 = vperm.xlu2 %685, %v447_v11  }
 0x257   : > { %686 = vset.pattern.permute.xlu2 %v739_v41 }
 0x291   : > { %v453_v17 = vpop.permute.xlu2 %452 }
 0x292   : > { %v458_v20 = vmul.f32 %v453_v17, %v448_v18 }
 0x299   : > { %v463_v22 = vpop.permute.xlu2 %462 }
 0x29a   : > { %v468_v25 = vadd.f32 %v463_v22, %v458_v20 }
 0x29c   : > { %488 = vperm.xlu1 %683, %v468_v25  }
 0x2a1   : > { %v465_v29 = vpop.permute.xlu2 %464 }
 0x2a4   : > { %687 = vset.pattern.permute.xlu1 %v743_v16 }
 0x2a5   : > { %513 = vperm.xlu1 %687, %v841_v42  }
 0x2a8   : > { %v455_v27 = vpop.permute.xlu1 %454 }
 0x2a9   : > { %v459_v28 = vmul.f32 %v455_v27, %v449_v26  ;;  %v476_v41 = vpop.permute.xlu2 %475  ;;  %v472_v37 = vpop.permute.xlu0 %471 }
 0x2aa   : > { %v482_v33 = vmul.f32 %v476_v41, %v812_v23  ;;  %v483_v34 = vmul.f32 %v476_v41, %v814_v24  ;;  %v484_v35 = vmul.f32 %v476_v41, %v825_v32  ;;  %v485_v42 = vmul.f32 %v476_v41, %v830_v36 }
 0x2ab   : > { %v469_v30 = vadd.f32 %v465_v29, %v459_v28  ;;  %v478_v45 = vmul.f32 %v472_v37, %v795_v13  ;;  %v480_v46 = vmul.f32 %v472_v37, %v805_v19  ;;  %v481_v23 = vmul.f32 %v472_v37, %v809_v21 }
 0x2ad   : > { %493 = vperm.xlu2 %686, %v469_v30  }
 0x2b5   : > { %688 = vset.pattern.permute.xlu2 %v743_v16 }
 0x2b6   : > { %517 = vperm.xlu2 %688, %v849_v50   ;;  %v479_v50 = vmul.f32 %v472_v37, %v797_v14 }
 0x307   : > { %v494_v31 = vpop.permute.xlu2 %493 }
 0x308   : > { %v500_v38 = vadd.f32 %v494_v31, %v482_v33  ;;  %v501_v39 = vadd.f32 %v494_v31, %v483_v34  ;;  %v502_v40 = vadd.f32 %v494_v31, %v484_v35  ;;  %v503_v43 = vadd.f32 %v494_v31, %v485_v42 }
 0x30a   : > { %vm508_vm9 = vcmp.ge.f32.partialorder %v500_v38, 0.0  ;;  %vm509_vm10 = vcmp.ge.f32.partialorder %v501_v39, 0.0  ;;  %vm510_vm11 = vcmp.ge.f32.partialorder %v502_v40, 0.0  ;;  %vm511_vm12 = vcmp.ge.f32.partialorder %v503_v43, 0.0 }
 0x30e   : > { %v489_v44 = vpop.permute.xlu1 %488 }
 0x30f   : > { %v496_v52 = vadd.f32 %v489_v44, %v478_v45  ;;  %v497_v53 = vadd.f32 %v489_v44, %v479_v50  ;;  %v498_v54 = vadd.f32 %v489_v44, %v480_v46  ;;  %v499_v55 = vadd.f32 %v489_v44, %v481_v23 }
 0x310   : > { %v518_v24 = vpop.permute.xlu2 %517 }
 0x311   : > { %v524_v47 = vmul.f32 %v518_v24, %v500_v38  ;;  %v525_v32 = vmul.f32 %v518_v24, %v501_v39  ;;  %v526_v48 = vmul.f32 %v518_v24, %v502_v40  ;;  %v527_v36 = vmul.f32 %v518_v24, %v503_v43 }
 0x312   : > { %vm504_vm13 = vcmp.ge.f32.partialorder %v496_v52, 0.0  ;;  %vm505_vm14 = vcmp.ge.f32.partialorder %v497_v53, 0.0  ;;  %vm506_vm15 = vcmp.ge.f32.partialorder %v498_v54, 0.0  ;;  %vm507_vm0 = vcmp.ge.f32.partialorder %v499_v55, 0.0 }
 0x313   : > { %v532_v13 = vsel %vm508_vm9, %v500_v38, %v524_v47  ;;  %v533_v14 = vsel %vm509_vm10, %v501_v39, %v525_v32  ;;  %v534_v49 = vsel %vm510_vm11, %v502_v40, %v526_v48  ;;  %v535_v19 = vsel %vm511_vm12, %v503_v43, %v527_v36 }
 0x314   : > { %v538_v51 = vpack.c.bf16 %v533_v14, %v532_v13  ;;  %v539_v21 = vpack.c.bf16 %v535_v19, %v534_v49 }
 0x316   : > { %542 = vst [vmem:[%s214_s12 + $0x10] sm:$0xff] %v538_v51 }
 0x317   : > { %543 = vst [vmem:[%s214_s12 + $0x18] sm:$0xff] %v539_v21  ;;  %v514_v56 = vpop.permute.xlu1 %513 }
 0x318   : > { %v520_v57 = vmul.f32 %v514_v56, %v496_v52  ;;  %v521_v58 = vmul.f32 %v514_v56, %v497_v53  ;;  %v522_v59 = vmul.f32 %v514_v56, %v498_v54  ;;  %v523_v60 = vmul.f32 %v514_v56, %v499_v55 }
 0x31a   : > { %v528_v61 = vsel %vm504_vm13, %v496_v52, %v520_v57  ;;  %v529_v62 = vsel %vm505_vm14, %v497_v53, %v521_v58  ;;  %v530_v63 = vsel %vm506_vm15, %v498_v54, %v522_v59  ;;  %v531_v0 = vsel %vm507_vm0, %v499_v55, %v523_v60 }
 0x31b   : > { %v536_v1 = vpack.c.bf16 %v529_v62, %v528_v61  ;;  %v537_v2 = vpack.c.bf16 %v531_v0, %v530_v63 }
 0x31d   : > { %540 = vst [vmem:[%s214_s12] sm:$0xff] %v536_v1 }
 0x31e   : > { %541 = vst [vmem:[%s214_s12 + $0x8] sm:$0xff] %v537_v2 }
 0x31f PF: > { %s15_s15 = sadd.s32 1, %s734_s15  }
 0x320   : > { %p12_p7 = scmp.ge.s32.totalorder %s15_s15, 4  }
 0x322   :  { %14 = sbr.rel (!%p12_p7) target bundleno = 1 (0x1), region = 71 }
 0x327   :  { %565 = vsyncpa [#allocation3], 1 }
 0x328   :  { %567 = vsyncpa [#allocation3 + $0x1], 1 }

// kernel: bottleneck_apply.5
= control target key start
LH: loop header
LB: loop body
LE: loop exit
PB: predicated region body
PF: predicated region fallthrough
CT: control target
= control target key end

     0   :  { %s2262_s15 = smov 0   ;;  %s2755_s0 = inlined_call_operand.vmem [shape: bf16[2,432,512], index: 0, kind: input, shape index: {}]   ;;  %s2756_s1 = inlined_call_operand.vmem [shape: bf16[24,432], index: 1, kind: input, shape index: {}]   ;;  %s2757_s2 = inlined_call_operand.vmem [shape: f32[24,4], index: 2, kind: input, shape index: {}]   ;;  %s2758_s3 = inlined_call_operand.vmem [shape: f32[24,24], index: 3, kind: input, shape index: {}]   ;;  %s2759_s4 = inlined_call_operand.vmem [shape: bf16[2,16,512], index: 4, kind: output, shape index: {}]  }
   0x1 LB: > { %s1606_s16 = sadd.s32 4294967295, %s2230_s15   ;;  %p1610_p0 = scmp.ge.s32.totalorder %s2230_s15, 1  ;;  %s2230_s15 = sphi %s2262_s15, %s14_s15  }
   0x2   : > { %p162_p1 = scmp.lt.s32.totalorder %s2230_s15, 3 }
   0x4   : > { %p163_p2 = pnand %p1610_p0, %p162_p1 }
   0x5   : > { %p188_p3 = scmp.lt.s32.totalorder (!%p163_p2), %s1606_s16, 1  ;;  %s2233_s29 = smov (!%p163_p2), 126  }
   0x6   : > { %166 = sbr.rel (%p163_p2) target bundleno = 952 (0x3b8), region = 36  ;;  %s2236_s30 = smov (!%p163_p2), 127  }
   0xb   : > { %s2761_s16 = smov (!%p188_p3, %s1606_s16), 1  ;;  %v2182_v33 = vld [vmem:[%s2756_s1 + $0xc] sm:$0xf]  ;;  %v1626_v36 = vld [vmem:[%s2756_s1 + $0x18] sm:$0xf0]  ;;  %vm885_vm0 = vcmask 392192  }
   0xc   : > { %s2193_s17 = smul.u32 864, %s2761_s16  ;;  %v2316_v48 = vor.u32 %v2182_v33, %v1626_v36  ;;  %v1616_v33 = vld [vmem:[%s2756_s1] sm:$0xf]  ;;  %v2181_v36 = vld [vmem:[%s2756_s1 + $0x4] sm:$0xf]  ;;  %vm1267_vm1 = vcmask 195584  }
   0xd   : > { %s2072_s5 = sshll.u32 %s2761_s16, 5 }
   0xe   : > { %s2276_s20 = scalar_lea.vmem %s2755_s0, %s2193_s17  ;;  %s197_s16 = scalar_lea.vmem %s2759_s4, %s2072_s5 }
   0xf   : > { %v1744_v0 = vld [vmem:[%s2276_s20 + $0xe0] sm:$0xf]  ;;  %v2103_v1 = vld [vmem:[%s2276_s20 + $0xec] sm:$0xf0]  ;;  %v2101_v44 = vld [vmem:[%s2276_s20 + $0xe4] sm:$0xf] }
  0x10   : > { %v1872_v2 = vld [vmem:[%s2276_s20 + $0x1e0] sm:$0xf]  ;;  %v1745_v3 = vor.u32 %v2103_v1, %v1744_v0  ;;  %v2135_v4 = vld [vmem:[%s2276_s20 + $0x1ec] sm:$0xf0]  ;;  %v1746_v45 = vld [vmem:[%s2276_s20 + $0xf0] sm:$0xf0] }
  0x11   : > { %v2000_v5 = vld [vmem:[%s2276_s20 + $0x2e0] sm:$0xf]  ;;  %v2167_v6 = vld [vmem:[%s2276_s20 + $0x2ec] sm:$0xf0]  ;;  %v1873_v7 = vor.u32 %v2135_v4, %v1872_v2  ;;  %v1749_v47 = vor.u32 %v2101_v44, %v1746_v45  ;;  %v2097_v52 = vld [vmem:[%s2276_s20 + $0xc4] sm:$0xf] }
  0x12   : > { %v2001_v8 = vor.u32 %v2167_v6, %v2000_v5  ;;  %v2048_v9 = vld [vmem:[%s2276_s20 + $0x340] sm:$0xf]  ;;  %v2179_v10 = vld [vmem:[%s2276_s20 + $0x34c] sm:$0xf0]  ;;  %892 = vmatpush.bf16.msra.mxu0 %v1745_v3  ;;  %v1730_v56 = vld [vmem:[%s2276_s20 + $0xd0] sm:$0xf0] }
  0x13   : > { %v1728_v11 = vld [vmem:[%s2276_s20 + $0xc0] sm:$0xf]  ;;  %v2049_v12 = vor.u32 %v2179_v10, %v2048_v9  ;;  %v2099_v13 = vld [vmem:[%s2276_s20 + $0xcc] sm:$0xf0]  ;;  %910 = vmatpush.bf16.msra.mxu1 %v1873_v7  ;;  %v1733_v59 = vor.u32 %v2097_v52, %v1730_v56  ;;  %v2093_v61 = vld [vmem:[%s2276_s20 + $0xa4] sm:$0xf] }
  0x14   : > { %v1856_v14 = vld [vmem:[%s2276_s20 + $0x1c0] sm:$0xf]  ;;  %v2131_v15 = vld [vmem:[%s2276_s20 + $0x1cc] sm:$0xf0]  ;;  %928 = vmatpush.bf16.msra.mxu2 %v2001_v8  ;;  %v1729_v16 = vor.u32 %v2099_v13, %v1728_v11  ;;  %v1714_v62 = vld [vmem:[%s2276_s20 + $0xb0] sm:$0xf0] }
  0x15   : > { %v1857_v17 = vor.u32 %v2131_v15, %v1856_v14  ;;  %v1984_v18 = vld [vmem:[%s2276_s20 + $0x2c0] sm:$0xf]  ;;  %v2163_v19 = vld [vmem:[%s2276_s20 + $0x2cc] sm:$0xf0]  ;;  %951 = vmatpush.bf16.msra.mxu3 %v2049_v12  ;;  %v1717_v7 = vor.u32 %v2093_v61, %v1714_v62  ;;  %v2089_v9 = vld [vmem:[%s2276_s20 + $0x84] sm:$0xf] }
  0x16   : > { %v2032_v20 = vld [vmem:[%s2276_s20 + $0x320] sm:$0xf]  ;;  %v1985_v21 = vor.u32 %v2163_v19, %v1984_v18  ;;  %v2175_v22 = vld [vmem:[%s2276_s20 + $0x32c] sm:$0xf0]  ;;  %893 = vmatpush.bf16.msra.mxu0 %v1729_v16  ;;  %v1698_v10 = vld [vmem:[%s2276_s20 + $0x90] sm:$0xf0] }
  0x17   : > { %v1712_v23 = vld [vmem:[%s2276_s20 + $0xa0] sm:$0xf]  ;;  %v2095_v24 = vld [vmem:[%s2276_s20 + $0xac] sm:$0xf0]  ;;  %v2033_v25 = vor.u32 %v2175_v22, %v2032_v20  ;;  %911 = vmatpush.bf16.msra.mxu1 %v1857_v17  ;;  %v2345_v17 = vld [vmem:[%s2756_s1 + $0x28] sm:$0xff]  ;;  %v1701_v20 = vor.u32 %v2089_v9, %v1698_v10 }
  0x18   : > { %v1840_v26 = vld [vmem:[%s2276_s20 + $0x1a0] sm:$0xf]  ;;  %v2127_v27 = vld [vmem:[%s2276_s20 + $0x1ac] sm:$0xf0]  ;;  %v1713_v29 = vor.u32 %v2095_v24, %v1712_v23  ;;  %929 = vmatpush.bf16.msra.mxu2 %v1985_v21  ;;  %v2085_v24 = vld [vmem:[%s2276_s20 + $0x64] sm:$0xf] }
  0x19   : > { %v1968_v28 = vld [vmem:[%s2276_s20 + $0x2a0] sm:$0xf]  ;;  %v2159_v30 = vld [vmem:[%s2276_s20 + $0x2ac] sm:$0xf0]  ;;  %v1841_v34 = vor.u32 %v2127_v27, %v1840_v26  ;;  %952 = vmatpush.bf16.msra.mxu3 %v2033_v25  ;;  %v1682_v25 = vld [vmem:[%s2276_s20 + $0x70] sm:$0xf0]  ;;  %v330_v27 = vunpack.c.h.b16 %v2345_v17 }
  0x1a   : > { %v2016_v31 = vld [vmem:[%s2276_s20 + $0x300] sm:$0xf]  ;;  %v2171_v32 = vld [vmem:[%s2276_s20 + $0x30c] sm:$0xf0]  ;;  %v1969_v35 = vor.u32 %v2159_v30, %v1968_v28  ;;  %894 = vmatpush.bf16.msra.mxu0 %v1713_v29  ;;  %v1624_v45 = vld [vmem:[%s2756_s1 + $0x8] sm:$0xf] }
  0x1b   : > { %v1696_v37 = vld [vmem:[%s2276_s20 + $0x80] sm:$0xf]  ;;  %v2091_v38 = vld [vmem:[%s2276_s20 + $0x8c] sm:$0xf0]  ;;  %v2017_v39 = vor.u32 %v2171_v32, %v2016_v31  ;;  %912 = vmatpush.bf16.msra.mxu1 %v1841_v34  ;;  %v2165_v52 = vld [vmem:[%s2276_s20 + $0x2e4] sm:$0xf] }
  0x1c   : > { %v1824_v40 = vld [vmem:[%s2276_s20 + $0x180] sm:$0xf]  ;;  %v2123_v41 = vld [vmem:[%s2276_s20 + $0x18c] sm:$0xf0]  ;;  %v1697_v46 = vor.u32 %v2091_v38, %v1696_v37  ;;  %930 = vmatpush.bf16.msra.mxu2 %v1969_v35  ;;  %v1685_v35 = vor.u32 %v2085_v24, %v1682_v25  ;;  %v2133_v37 = vld [vmem:[%s2276_s20 + $0x1e4] sm:$0xf] }
  0x1d   : > { %v1952_v42 = vld [vmem:[%s2276_s20 + $0x280] sm:$0xf]  ;;  %v2155_v43 = vld [vmem:[%s2276_s20 + $0x28c] sm:$0xf0]  ;;  %v1825_v49 = vor.u32 %v2123_v41, %v1824_v40  ;;  %953 = vmatpush.bf16.msra.mxu3 %v2017_v39  ;;  %v1874_v38 = vld [vmem:[%s2276_s20 + $0x1f0] sm:$0xf0] }
  0x1e   : > { %v1680_v50 = vld [vmem:[%s2276_s20 + $0x60] sm:$0xf]  ;;  %v2087_v51 = vld [vmem:[%s2276_s20 + $0x6c] sm:$0xf0]  ;;  %v1953_v53 = vor.u32 %v2155_v43, %v1952_v42  ;;  %895 = vmatpush.bf16.msra.mxu0 %v1697_v46  ;;  %v1618_v40 = vld [vmem:[%s2756_s1 + $0x10] sm:$0xf0]  ;;  %v2374_v43 = vpack.c.b16 %v330_v27, %v330_v27 }
  0x1f   : > { %v1808_v54 = vld [vmem:[%s2276_s20 + $0x160] sm:$0xf]  ;;  %v2119_v55 = vld [vmem:[%s2276_s20 + $0x16c] sm:$0xf0]  ;;  %v1681_v60 = vor.u32 %v2087_v51, %v1680_v50  ;;  %913 = vmatpush.bf16.msra.mxu1 %v1825_v49  ;;  %v2177_v41 = vld [vmem:[%s2276_s20 + $0x344] sm:$0xf]  ;;  %v1877_v51 = vor.u32 %v2133_v37, %v1874_v38 }
  0x20   : > { %v1936_v57 = vld [vmem:[%s2276_s20 + $0x260] sm:$0xf]  ;;  %v2151_v58 = vld [vmem:[%s2276_s20 + $0x26c] sm:$0xf0]  ;;  %2062 = vmatmul.msk.bf16.vlgmr.msra.gmra.mxu3 %vm885_vm0, %v2316_v48  ;;  %v1809_v63 = vor.u32 %v2119_v55, %v1808_v54  ;;  %931 = vmatpush.bf16.msra.mxu2 %v1953_v53  ;;  %v2050_v42 = vld [vmem:[%s2276_s20 + $0x350] sm:$0xf0] }
  0x21   : > { %964 = vmatpush.bf16.msrb.mxu3 %v1749_v47  ;;  %v1664_v0 = vld [vmem:[%s2276_s20 + $0x40] sm:$0xf]  ;;  %v2083_v1 = vld [vmem:[%s2276_s20 + $0x4c] sm:$0xf0]  ;;  %v1937_v2 = vor.u32 %v2151_v58, %v1936_v57  ;;  %v2081_v46 = vld [vmem:[%s2276_s20 + $0x44] sm:$0xf]  ;;  %v2053_v55 = vor.u32 %v2177_v41, %v2050_v42  ;;  %v2390_v58 = vor.u32 %v2181_v36, %v1618_v40  ;;  %v329_v40 = vunpack.c.l.b16 %v2345_v17 }
  0x22   : > { %v1792_v3 = vld [vmem:[%s2276_s20 + $0x140] sm:$0xf]  ;;  %v2115_v4 = vld [vmem:[%s2276_s20 + $0x14c] sm:$0xf0]  ;;  %896 = vmatpush.bf16.msra.mxu0 %v1681_v60  ;;  %v1665_v8 = vor.u32 %v2083_v1, %v1664_v0  ;;  %v1666_v47 = vld [vmem:[%s2276_s20 + $0x50] sm:$0xf0] }
  0x23   : > { %v1920_v5 = vld [vmem:[%s2276_s20 + $0x240] sm:$0xf]  ;;  %v2147_v6 = vld [vmem:[%s2276_s20 + $0x24c] sm:$0xf0]  ;;  %914 = vmatpush.bf16.msra.mxu1 %v1809_v63  ;;  %v1793_v11 = vor.u32 %v2115_v4, %v1792_v3  ;;  %v2184_v50 = vld [vmem:[%s2756_s1 + $0x14] sm:$0xf0]  ;;  %v2440_v17 = vpack.c.b16 %v329_v40, %v329_v40 }
  0x24   : > { %v1648_v12 = vld [vmem:[%s2276_s20 + $0x20] sm:$0xf]  ;;  %v2079_v13 = vld [vmem:[%s2276_s20 + $0x2c] sm:$0xf0]  ;;  %932 = vmatpush.bf16.msra.mxu2 %v1937_v2  ;;  %v1921_v14 = vor.u32 %v2147_v6, %v1920_v5  ;;  %v2002_v53 = vld [vmem:[%s2276_s20 + $0x2f0] sm:$0xf0]  ;;  %v2396_v62 = vor.u32 %v2184_v50, %v1624_v45 }
  0x25   : > { %965 = vmatpush.bf16.msrb.mxu3 %v1733_v59  ;;  %v1776_v15 = vld [vmem:[%s2276_s20 + $0x120] sm:$0xf]  ;;  %v2111_v16 = vld [vmem:[%s2276_s20 + $0x12c] sm:$0xf0]  ;;  %v1649_v22 = vor.u32 %v2079_v13, %v1648_v12  ;;  %v2129_v56 = vld [vmem:[%s2276_s20 + $0x1c4] sm:$0xf]  ;;  %v1669_v59 = vor.u32 %v2081_v46, %v1666_v47  ;;  %v2005_v63 = vor.u32 %v2165_v52, %v2002_v53 }
  0x26   : > { %v1904_v18 = vld [vmem:[%s2276_s20 + $0x220] sm:$0xf]  ;;  %v2143_v19 = vld [vmem:[%s2276_s20 + $0x22c] sm:$0xf0]  ;;  %897 = vmatpush.bf16.msra.mxu0 %v1665_v8  ;;  %v1777_v26 = vor.u32 %v2111_v16, %v1776_v15  ;;  %v1858_v57 = vld [vmem:[%s2276_s20 + $0x1d0] sm:$0xf0] }
  0x27   : > { %v1632_v21 = vld [vmem:[%s2276_s20] sm:$0xf]  ;;  %v2075_v23 = vld [vmem:[%s2276_s20 + $0xc] sm:$0xf0]  ;;  %915 = vmatpush.bf16.msra.mxu1 %v1793_v11  ;;  %v1905_v31 = vor.u32 %v2143_v19, %v1904_v18  ;;  %v2173_v60 = vld [vmem:[%s2276_s20 + $0x324] sm:$0xf]  ;;  %v1861_v2 = vor.u32 %v2129_v56, %v1858_v57 }
  0x28   : > { %v1760_v28 = vld [vmem:[%s2276_s20 + $0x100] sm:$0xf]  ;;  %v2107_v29 = vld [vmem:[%s2276_s20 + $0x10c] sm:$0xf0]  ;;  %933 = vmatpush.bf16.msra.mxu2 %v1921_v14  ;;  %v1633_v39 = vor.u32 %v2075_v23, %v1632_v21  ;;  %v2034_v61 = vld [vmem:[%s2276_s20 + $0x330] sm:$0xf0] }
  0x29   : > { %966 = vmatpush.bf16.msrb.mxu3 %v1717_v7  ;;  %v1888_v30 = vld [vmem:[%s2276_s20 + $0x200] sm:$0xf]  ;;  %v2139_v32 = vld [vmem:[%s2276_s20 + $0x20c] sm:$0xf0]  ;;  %v1761_v44 = vor.u32 %v2107_v29, %v1760_v28  ;;  %v2077_v0 = vld [vmem:[%s2276_s20 + $0x24] sm:$0xf]  ;;  %v2037_v7 = vor.u32 %v2173_v60, %v2034_v61 }
  0x2a   : > { %v2183_v34 = vld [vmem:[%s2756_s1 + $0xc] sm:$0xf0]  ;;  %898 = vmatpush.bf16.msra.mxu0 %v1649_v22  ;;  %v1889_v49 = vor.u32 %v2139_v32, %v1888_v30  ;;  %v1650_v1 = vld [vmem:[%s2276_s20 + $0x30] sm:$0xf0]  ;;  %v2161_v3 = vld [vmem:[%s2276_s20 + $0x2c4] sm:$0xf] }
  0x2b   : > { %916 = vmatpush.bf16.msra.mxu1 %v1777_v26  ;;  %v2386_v54 = vor.u32 %v2183_v34, %v1616_v33  ;;  %v1986_v4 = vld [vmem:[%s2276_s20 + $0x2d0] sm:$0xf0]  ;;  %v2125_v5 = vld [vmem:[%s2276_s20 + $0x1a4] sm:$0xf]  ;;  %v1653_v8 = vor.u32 %v2077_v0, %v1650_v1  ;;  %v1752_v14 = vld [vmem:[%s2276_s20 + $0xe8] sm:$0xf] }
  0x2c   : > { %934 = vmatpush.bf16.msra.mxu2 %v1905_v31  ;;  %v1842_v6 = vld [vmem:[%s2276_s20 + $0x1b0] sm:$0xf0]  ;;  %v2073_v9 = vld [vmem:[%s2276_s20 + $0x4] sm:$0xf]  ;;  %v1989_v11 = vor.u32 %v2161_v3, %v1986_v4  ;;  %v2104_v16 = vld [vmem:[%s2276_s20 + $0xf4] sm:$0xf0] }
  0x2d   : > { %967 = vmatpush.bf16.msrb.mxu3 %v1701_v20  ;;  %v1634_v10 = vld [vmem:[%s2276_s20 + $0x10] sm:$0xf0]  ;;  %v2157_v12 = vld [vmem:[%s2276_s20 + $0x2a4] sm:$0xf]  ;;  %v1845_v15 = vor.u32 %v2125_v5, %v1842_v6  ;;  %v1753_v28 = vor.u32 %v2104_v16, %v1752_v14  ;;  %v2056_v32 = vld [vmem:[%s2276_s20 + $0x348] sm:$0xf] }
  0x2e   : > { %899 = vmatpush.bf16.msra.mxu0 %v1633_v39  ;;  %v1970_v13 = vld [vmem:[%s2276_s20 + $0x2b0] sm:$0xf0]  ;;  %v2169_v18 = vld [vmem:[%s2276_s20 + $0x304] sm:$0xf]  ;;  %v1637_v23 = vor.u32 %v2073_v9, %v1634_v10  ;;  %v1736_v34 = vld [vmem:[%s2276_s20 + $0xc8] sm:$0xf] }
  0x2f   : > { %917 = vmatpush.bf16.msra.mxu1 %v1761_v44  ;;  %v2018_v19 = vld [vmem:[%s2276_s20 + $0x310] sm:$0xf0]  ;;  %v2121_v20 = vld [vmem:[%s2276_s20 + $0x184] sm:$0xf]  ;;  %v1973_v25 = vor.u32 %v2157_v12, %v1970_v13  ;;  %v2180_v36 = vld [vmem:[%s2276_s20 + $0x354] sm:$0xf0] }
  0x30   : > { %2063 = vmatmul.msk.bf16.gmra.mxu3 %vm885_vm0, %v2374_v43  ;;  %935 = vmatpush.bf16.msra.mxu2 %v1889_v49  ;;  %v1826_v21 = vld [vmem:[%s2276_s20 + $0x190] sm:$0xf0]  ;;  %v2021_v22 = vor.u32 %v2169_v18, %v2018_v19  ;;  %v311_v24 = vld [vmem:[%s2756_s1 + $0x20] sm:$0xff]  ;;  %v2057_v38 = vor.u32 %v2180_v36, %v2056_v32  ;;  %v1720_v50 = vld [vmem:[%s2276_s20 + $0xa8] sm:$0xf] }
  0x31   : > { %968 = vmatpush.bf16.msrb.mxu3 %v1685_v35  ;;  %900 = vmatmul.bf16.vlgmr.msra.gmra.mxu0 %v2386_v54  ;;  %v2153_v26 = vld [vmem:[%s2276_s20 + $0x284] sm:$0xf]  ;;  %v1954_v27 = vld [vmem:[%s2276_s20 + $0x290] sm:$0xf0]  ;;  %v1829_v29 = vor.u32 %v2121_v20, %v1826_v21  ;;  %v327_v33 = vunpack.c.l.b16 %v311_v24  ;;  %v2100_v35 = vld [vmem:[%s2276_s20 + $0xd4] sm:$0xf0]  ;;  %v328_v37 = vunpack.c.h.b16 %v311_v24 }
  0x32   : > { %982 = vmatpush.bf16.msrb.mxu0 %v1877_v51  ;;  %918 = vmatmul.bf16.vlgmr.msra.gmra.mxu1 %v2390_v58  ;;  %v2117_v30 = vld [vmem:[%s2276_s20 + $0x164] sm:$0xf]  ;;  %v1810_v31 = vld [vmem:[%s2276_s20 + $0x170] sm:$0xf0]  ;;  %v1957_v39 = vor.u32 %v2153_v26, %v1954_v27  ;;  %v1737_v45 = vor.u32 %v2100_v35, %v1736_v34  ;;  %v2096_v51 = vld [vmem:[%s2276_s20 + $0xb4] sm:$0xf0] }
  0x33   : > { %936 = vmatmul.bf16.vlgmr.msra.gmra.mxu2 %v2396_v62  ;;  %1000 = vmatpush.bf16.msrb.mxu1 %v2005_v63  ;;  %v1813_v41 = vor.u32 %v2117_v30, %v1810_v31  ;;  %v2149_v42 = vld [vmem:[%s2276_s20 + $0x264] sm:$0xf]  ;;  %v1938_v44 = vld [vmem:[%s2276_s20 + $0x270] sm:$0xf0]  ;;  %v2432_v47 = vpack.c.b16 %v327_v33, %v327_v33  ;;  %v2437_v52 = vpack.c.b16 %v328_v37, %v328_v37  ;;  %v2176_v56 = vld [vmem:[%s2276_s20 + $0x334] sm:$0xf0] }
  0x34   : > { %1023 = vmatpush.bf16.msrb.mxu2 %v2053_v55  ;;  %v2113_v46 = vld [vmem:[%s2276_s20 + $0x144] sm:$0xf]  ;;  %v1794_v49 = vld [vmem:[%s2276_s20 + $0x150] sm:$0xf0]  ;;  %v1941_v53 = vor.u32 %v2149_v42, %v1938_v44  ;;  %v2040_v55 = vld [vmem:[%s2276_s20 + $0x328] sm:$0xf]  ;;  %v1721_v61 = vor.u32 %v2096_v51, %v1720_v50 }
  0x35   : > { %969 = vmatpush.bf16.msrb.mxu3 %v1669_v59  ;;  %v1797_v57 = vor.u32 %v2113_v46, %v1794_v49  ;;  %v2145_v59 = vld [vmem:[%s2276_s20 + $0x244] sm:$0xf]  ;;  %v1922_v60 = vld [vmem:[%s2276_s20 + $0x250] sm:$0xf0]  ;;  %v2041_v0 = vor.u32 %v2176_v56, %v2040_v55  ;;  %v2092_v3 = vld [vmem:[%s2276_s20 + $0x94] sm:$0xf0] }
  0x36   : > { %983 = vmatpush.bf16.msrb.mxu0 %v1861_v2  ;;  %v2109_v63 = vld [vmem:[%s2276_s20 + $0x124] sm:$0xf]  ;;  %v1778_v1 = vld [vmem:[%s2276_s20 + $0x130] sm:$0xf0]  ;;  %v1704_v2 = vld [vmem:[%s2276_s20 + $0x88] sm:$0xf]  ;;  %v1925_v4 = vor.u32 %v2145_v59, %v1922_v60 }
  0x37   : > { %1001 = vmatpush.bf16.msrb.mxu1 %v1989_v11  ;;  %v2141_v5 = vld [vmem:[%s2276_s20 + $0x224] sm:$0xf]  ;;  %v1781_v6 = vor.u32 %v2109_v63, %v1778_v1  ;;  %v1762_v10 = vld [vmem:[%s2276_s20 + $0x110] sm:$0xf0]  ;;  %v1688_v11 = vld [vmem:[%s2276_s20 + $0x68] sm:$0xf] }
  0x38   : > { %1024 = vmatpush.bf16.msrb.mxu2 %v2037_v7  ;;  %v1906_v7 = vld [vmem:[%s2276_s20 + $0x230] sm:$0xf0]  ;;  %v2105_v9 = vld [vmem:[%s2276_s20 + $0x104] sm:$0xf]  ;;  %v2088_v12 = vld [vmem:[%s2276_s20 + $0x74] sm:$0xf0] }
  0x39   : > { %970 = vmatpush.bf16.msrb.mxu3 %v1653_v8  ;;  %v1705_v8 = vor.u32 %v2092_v3, %v1704_v2  ;;  %v1880_v13 = vld [vmem:[%s2276_s20 + $0x1e8] sm:$0xf]  ;;  %v2136_v14 = vld [vmem:[%s2276_s20 + $0x1f4] sm:$0xf0]  ;;  %v1909_v18 = vor.u32 %v2141_v5, %v1906_v7  ;;  %v1765_v20 = vor.u32 %v2105_v9, %v1762_v10  ;;  %v2137_v21 = vld [vmem:[%s2276_s20 + $0x204] sm:$0xf] }
  0x3a   : > { %984 = vmatpush.bf16.msrb.mxu0 %v1845_v15  ;;  %v2024_v15 = vld [vmem:[%s2276_s20 + $0x308] sm:$0xf]  ;;  %v2172_v16 = vld [vmem:[%s2276_s20 + $0x314] sm:$0xf0]  ;;  %v1881_v26 = vor.u32 %v2136_v14, %v1880_v13  ;;  %v1754_v55 = vld [vmem:[%s2276_s20 + $0xf8] sm:$0xf0] }
  0x3b   : > { %1002 = vmatpush.bf16.msrb.mxu1 %v1973_v25  ;;  %v2025_v19 = vor.u32 %v2172_v16, %v2024_v15  ;;  %v1672_v24 = vld [vmem:[%s2276_s20 + $0x48] sm:$0xf]  ;;  %v2084_v25 = vld [vmem:[%s2276_s20 + $0x54] sm:$0xf0]  ;;  %v2058_v59 = vld [vmem:[%s2276_s20 + $0x358] sm:$0xf0] }
  0x3c   : > { %1025 = vmatpush.bf16.msrb.mxu2 %v2021_v22  ;;  %v1890_v22 = vld [vmem:[%s2276_s20 + $0x210] sm:$0xf0]  ;;  %v2008_v27 = vld [vmem:[%s2276_s20 + $0x2e8] sm:$0xf]  ;;  %v2132_v31 = vld [vmem:[%s2276_s20 + $0x1d4] sm:$0xf0]  ;;  %v1673_v32 = vor.u32 %v2084_v25, %v1672_v24 }
  0x3d   : > { %971 = vmatpush.bf16.msrb.mxu3 %v1637_v23  ;;  %v1689_v23 = vor.u32 %v2088_v12, %v1688_v11  ;;  %v1864_v30 = vld [vmem:[%s2276_s20 + $0x1c8] sm:$0xf]  ;;  %v2080_v35 = vld [vmem:[%s2276_s20 + $0x34] sm:$0xf0]  ;;  %v1738_v5 = vld [vmem:[%s2276_s20 + $0xd8] sm:$0xf0] }
  0x3e   : > { %985 = vmatpush.bf16.msrb.mxu0 %v1829_v29  ;;  %v1893_v29 = vor.u32 %v2137_v21, %v1890_v22  ;;  %v1656_v34 = vld [vmem:[%s2276_s20 + $0x28] sm:$0xf]  ;;  %v2164_v37 = vld [vmem:[%s2276_s20 + $0x2d4] sm:$0xf0]  ;;  %v2042_v10 = vld [vmem:[%s2276_s20 + $0x338] sm:$0xf0] }
  0x3f   : > { %1003 = vmatpush.bf16.msrb.mxu1 %v1957_v39  ;;  %v1992_v36 = vld [vmem:[%s2276_s20 + $0x2c8] sm:$0xf]  ;;  %v2128_v40 = vld [vmem:[%s2276_s20 + $0x1b4] sm:$0xf0]  ;;  %v2094_v16 = vld [vmem:[%s2276_s20 + $0xac] sm:$0xf] }
  0x40   : > { %1095 = vmatpush.bf16.msra.mxu2 %v2057_v38  ;;  %972 = vmatmul.bf16.vlgmr.msrb.gmra.mxu3 %v2386_v54  ;;  %v1865_v38 = vor.u32 %v2132_v31, %v1864_v30  ;;  %v1848_v39 = vld [vmem:[%s2276_s20 + $0x1a8] sm:$0xf]  ;;  %v1993_v42 = vor.u32 %v2164_v37, %v1992_v36  ;;  %v2160_v49 = vld [vmem:[%s2276_s20 + $0x2b4] sm:$0xf0]  ;;  %v1690_v36 = vld [vmem:[%s2276_s20 + $0x78] sm:$0xf0] }
  0x41   : > { %1036 = vmatpush.bf16.msra.mxu3 %v1753_v28  ;;  %905 = vmatmul.bf16.gmra.mxu0 %v2432_v47  ;;  %v2168_v28 = vld [vmem:[%s2276_s20 + $0x2f4] sm:$0xf0]  ;;  %v1640_v44 = vld [vmem:[%s2276_s20 + $0x8] sm:$0xf]  ;;  %v1849_v50 = vor.u32 %v2128_v40, %v1848_v39  ;;  %v2134_v39 = vld [vmem:[%s2276_s20 + $0x1ec] sm:$0xf] }
  0x42   : > { %986 = vmatpush.bf16.msrb.mxu0 %v1813_v41  ;;  %923 = vmatmul.bf16.gmra.mxu1 %v2437_v52  ;;  %v2009_v33 = vor.u32 %v2168_v28, %v2008_v27  ;;  %v1657_v41 = vor.u32 %v2080_v35, %v1656_v34  ;;  %v1976_v46 = vld [vmem:[%s2276_s20 + $0x2a8] sm:$0xf]  ;;  %v2124_v56 = vld [vmem:[%s2276_s20 + $0x194] sm:$0xf0]  ;;  %v1706_v27 = vld [vmem:[%s2276_s20 + $0x98] sm:$0xf0] }
  0x43   : > { %941 = vmatmul.bf16.gmra.mxu2 %v2440_v17  ;;  %1004 = vmatpush.bf16.msrb.mxu1 %v1941_v53  ;;  %v1832_v51 = vld [vmem:[%s2276_s20 + $0x188] sm:$0xf]  ;;  %v2102_v53 = vld [vmem:[%s2276_s20 + $0xec] sm:$0xf]  ;;  %v2156_v1 = vld [vmem:[%s2276_s20 + $0x294] sm:$0xf0] }
  0x44   : > { %1096 = vmatpush.bf16.msra.mxu2 %v2041_v0  ;;  %v1960_v0 = vld [vmem:[%s2276_s20 + $0x288] sm:$0xf]  ;;  %v1757_v2 = vor.u32 %v2102_v53, %v1754_v55  ;;  %v1833_v3 = vor.u32 %v2124_v56, %v1832_v51  ;;  %v2120_v7 = vld [vmem:[%s2276_s20 + $0x174] sm:$0xf0]  ;;  %v2086_v35 = vld [vmem:[%s2276_s20 + $0x6c] sm:$0xf] }
  0x45   : > { %1037 = vmatpush.bf16.msra.mxu3 %v1737_v45  ;;  %v2076_v45 = vld [vmem:[%s2276_s20 + $0x14] sm:$0xf0]  ;;  %v1961_v9 = vor.u32 %v2156_v1, %v1960_v0  ;;  %v1944_v11 = vld [vmem:[%s2276_s20 + $0x268] sm:$0xf]  ;;  %v1674_v55 = vld [vmem:[%s2276_s20 + $0x58] sm:$0xf0] }
  0x46   : > { %987 = vmatpush.bf16.msrb.mxu0 %v1797_v57  ;;  %v2178_v57 = vld [vmem:[%s2276_s20 + $0x34c] sm:$0xf]  ;;  %v1641_v60 = vor.u32 %v2076_v45, %v1640_v44  ;;  %v2152_v12 = vld [vmem:[%s2276_s20 + $0x274] sm:$0xf0]  ;;  %v1928_v22 = vld [vmem:[%s2276_s20 + $0x248] sm:$0xf] }
  0x47   : > { %1005 = vmatpush.bf16.msrb.mxu1 %v1925_v4  ;;  %v2061_v63 = vor.u32 %v2178_v57, %v2058_v59  ;;  %v2098_v4 = vld [vmem:[%s2276_s20 + $0xcc] sm:$0xf]  ;;  %v1945_v21 = vor.u32 %v2152_v12, %v1944_v11  ;;  %v1784_v28 = vld [vmem:[%s2276_s20 + $0x128] sm:$0xf]  ;;  %v2026_v44 = vld [vmem:[%s2276_s20 + $0x318] sm:$0xf0] }
  0x48   : > { %1097 = vmatpush.bf16.msra.mxu2 %v2025_v19  ;;  %v1741_v13 = vor.u32 %v2098_v4, %v1738_v5  ;;  %v1800_v19 = vld [vmem:[%s2276_s20 + $0x148] sm:$0xf]  ;;  %v2166_v56 = vld [vmem:[%s2276_s20 + $0x2ec] sm:$0xf]  ;;  %v2010_v57 = vld [vmem:[%s2276_s20 + $0x2f8] sm:$0xf0] }
  0x49   : > { %1038 = vmatpush.bf16.msra.mxu3 %v1721_v61  ;;  %v1977_v61 = vor.u32 %v2160_v49, %v1976_v46  ;;  %v1912_v31 = vld [vmem:[%s2276_s20 + $0x228] sm:$0xf]  ;;  %v2140_v46 = vld [vmem:[%s2276_s20 + $0x214] sm:$0xf0]  ;;  %v1693_v49 = vor.u32 %v2086_v35, %v1690_v36  ;;  %v2013_v1 = vor.u32 %v2166_v56, %v2010_v57  ;;  %v2162_v5 = vld [vmem:[%s2276_s20 + $0x2cc] sm:$0xf] }
  0x4a   : > { %988 = vmatpush.bf16.msrb.mxu0 %v1781_v6  ;;  %v1816_v6 = vld [vmem:[%s2276_s20 + $0x168] sm:$0xf]  ;;  %v1642_v11 = vld [vmem:[%s2276_s20 + $0x18] sm:$0xf0]  ;;  %v2110_v36 = vld [vmem:[%s2276_s20 + $0x12c] sm:$0xf] }
  0x4b   : > { %1006 = vmatpush.bf16.msrb.mxu1 %v1909_v18  ;;  %v1817_v15 = vor.u32 %v2120_v7, %v1816_v6  ;;  %v1722_v18 = vld [vmem:[%s2276_s20 + $0xb8] sm:$0xf0]  ;;  %v1768_v37 = vld [vmem:[%s2276_s20 + $0x108] sm:$0xf] }
  0x4c   : > { %v1725_v24 = vor.u32 %v2094_v16, %v1722_v18  ;;  %v1896_v45 = vld [vmem:[%s2276_s20 + $0x208] sm:$0xf]  ;;  %v1994_v6 = vld [vmem:[%s2276_s20 + $0x2d8] sm:$0xf0]  ;;  %v2122_v18 = vld [vmem:[%s2276_s20 + $0x18c] sm:$0xf] }
  0x4d   : > { %1039 = vmatpush.bf16.msra.mxu3 %v1705_v8  ;;  %v2174_v8 = vld [vmem:[%s2276_s20 + $0x32c] sm:$0xf]  ;;  %v1997_v12 = vor.u32 %v2162_v5, %v1994_v6  ;;  %v1930_v35 = vld [vmem:[%s2276_s20 + $0x258] sm:$0xf0] }
  0x4e   : > { %989 = vmatpush.bf16.msrb.mxu0 %v1765_v20  ;;  %v2045_v14 = vor.u32 %v2174_v8, %v2042_v10  ;;  %v2116_v20 = vld [vmem:[%s2276_s20 + $0x154] sm:$0xf0]  ;;  %v2126_v8 = vld [vmem:[%s2276_s20 + $0x1ac] sm:$0xf] }
  0x4f   : > { %1007 = vmatpush.bf16.msrb.mxu1 %v1893_v29  ;;  %v1801_v25 = vor.u32 %v2116_v20, %v1800_v19  ;;  %v2112_v29 = vld [vmem:[%s2276_s20 + $0x134] sm:$0xf0]  ;;  %v2074_v10 = vld [vmem:[%s2276_s20 + $0xc] sm:$0xf]  ;;  %v1834_v19 = vld [vmem:[%s2276_s20 + $0x198] sm:$0xf0] }
  0x50   : > { %977 = vmatmul.bf16.gmra.mxu3 %v2432_v47  ;;  %v1785_v34 = vor.u32 %v2112_v29, %v1784_v28  ;;  %v1645_v16 = vor.u32 %v2074_v10, %v1642_v11  ;;  %v2150_v28 = vld [vmem:[%s2276_s20 + $0x26c] sm:$0xf]  ;;  %v1946_v29 = vld [vmem:[%s2276_s20 + $0x278] sm:$0xf0] }
  0x51   : > { %1040 = vmatpush.bf16.msra.mxu3 %v1689_v23  ;;  %990 = vmatmul.bf16.vlgmr.msrb.gmra.mxu0 %v2390_v58  ;;  %v2148_v23 = vld [vmem:[%s2276_s20 + $0x254] sm:$0xf0] }
  0x52   : > { %1054 = vmatpush.bf16.msra.mxu0 %v1881_v26  ;;  %1008 = vmatmul.bf16.vlgmr.msrb.gmra.mxu1 %v2396_v62  ;;  %v2090_v26 = vld [vmem:[%s2276_s20 + $0x8c] sm:$0xf]  ;;  %v1929_v30 = vor.u32 %v2148_v23, %v1928_v22  ;;  %v1962_v23 = vld [vmem:[%s2276_s20 + $0x298] sm:$0xf0] }
  0x53   : > { %1072 = vmatpush.bf16.msra.mxu1 %v2009_v33  ;;  %2064 = vmatmul.msk.bf16.vlgmr.msrb.gmra.mxu2 %vm885_vm0, %v2316_v48  ;;  %v1709_v33 = vor.u32 %v2090_v26, %v1706_v27  ;;  %v2154_v22 = vld [vmem:[%s2276_s20 + $0x28c] sm:$0xf] }
  0x54   : > { %1167 = vmatpush.bf16.msrb.mxu2 %v2061_v63  ;;  %v1866_v63 = vld [vmem:[%s2276_s20 + $0x1d8] sm:$0xf0]  ;;  %v1965_v26 = vor.u32 %v2154_v22, %v1962_v23 }
  0x55   : > { %1041 = vmatpush.bf16.msra.mxu3 %v1673_v32  ;;  %v2144_v32 = vld [vmem:[%s2276_s20 + $0x234] sm:$0xf0] }
  0x56   : > { %1055 = vmatpush.bf16.msra.mxu0 %v1865_v38  ;;  %v2108_v38 = vld [vmem:[%s2276_s20 + $0x114] sm:$0xf0]  ;;  %v1913_v40 = vor.u32 %v2144_v32, %v1912_v31  ;;  %v1802_v31 = vld [vmem:[%s2276_s20 + $0x158] sm:$0xf0]  ;;  %v1949_v32 = vor.u32 %v2150_v28, %v1946_v29 }
  0x57   : > { %1073 = vmatpush.bf16.msra.mxu1 %v1993_v42  ;;  %v2170_v42 = vld [vmem:[%s2276_s20 + $0x30c] sm:$0xf]  ;;  %v1769_v53 = vor.u32 %v2108_v38, %v1768_v37  ;;  %v1786_v37 = vld [vmem:[%s2276_s20 + $0x138] sm:$0xf0] }
  0x58   : > { %1168 = vmatpush.bf16.msrb.mxu2 %v2045_v14  ;;  %v2029_v51 = vor.u32 %v2170_v42, %v2026_v44  ;;  %v2158_v14 = vld [vmem:[%s2276_s20 + $0x2ac] sm:$0xf]  ;;  %v1770_v44 = vld [vmem:[%s2276_s20 + $0x118] sm:$0xf0] }
  0x59   : > { %1042 = vmatpush.bf16.msra.mxu3 %v1657_v41  ;;  %v1882_v41 = vld [vmem:[%s2276_s20 + $0x1f8] sm:$0xf0]  ;;  %v2106_v42 = vld [vmem:[%s2276_s20 + $0x10c] sm:$0xf] }
  0x5a   : > { %1056 = vmatpush.bf16.msra.mxu0 %v1849_v50  ;;  %v2082_v50 = vld [vmem:[%s2276_s20 + $0x4c] sm:$0xf]  ;;  %v1885_v59 = vor.u32 %v2134_v39, %v1882_v41  ;;  %v1789_v39 = vor.u32 %v2110_v36, %v1786_v37  ;;  %v1914_v41 = vld [vmem:[%s2276_s20 + $0x238] sm:$0xf0] }
  0x5b   : > { %1074 = vmatpush.bf16.msra.mxu1 %v1977_v61  ;;  %v2130_v61 = vld [vmem:[%s2276_s20 + $0x1cc] sm:$0xf]  ;;  %v1677_v0 = vor.u32 %v2082_v50, %v1674_v55 }
  0x5c   : > { %1169 = vmatpush.bf16.msrb.mxu2 %v2029_v51  ;;  %v1869_v4 = vor.u32 %v2130_v61, %v1866_v63 }
  0x5d   : > { %1043 = vmatpush.bf16.msra.mxu3 %v1641_v60  ;;  %v1897_v60 = vor.u32 %v2140_v46, %v1896_v45  ;;  %v1773_v45 = vor.u32 %v2106_v42, %v1770_v44  ;;  %v2138_v46 = vld [vmem:[%s2276_s20 + $0x20c] sm:$0xf] }
  0x5e   : > { %1057 = vmatpush.bf16.msra.mxu0 %v1833_v3  ;;  %v1658_v3 = vld [vmem:[%s2276_s20 + $0x38] sm:$0xf0] }
  0x5f   : > { %1075 = vmatpush.bf16.msra.mxu1 %v1961_v9  ;;  %v1850_v9 = vld [vmem:[%s2276_s20 + $0x1b8] sm:$0xf0] }
  0x60   : > { %1044 = vmatmul.bf16.vlgmr.msra.gmra.mxu3 %v2386_v54 }
  0x61   : > { %1108 = vmatpush.bf16.msrb.mxu3 %v1757_v2  ;;  %995 = vmatmul.bf16.gmra.mxu0 %v2437_v52  ;;  %v2078_v2 = vld [vmem:[%s2276_s20 + $0x2c] sm:$0xf] }
  0x62   : > { %1058 = vmatpush.bf16.msra.mxu0 %v1817_v15  ;;  %1013 = vmatmul.bf16.gmra.mxu1 %v2440_v17  ;;  %v1661_v7 = vor.u32 %v2078_v2, %v1658_v3  ;;  %v1978_v15 = vld [vmem:[%s2276_s20 + $0x2b8] sm:$0xf0] }
  0x63   : > { %1076 = vmatpush.bf16.msra.mxu1 %v1945_v21  ;;  %2065 = vmatmul.msk.bf16.gmra.mxu2 %vm885_vm0, %v2374_v43  ;;  %v1981_v20 = vor.u32 %v2158_v14, %v1978_v15  ;;  %v1837_v21 = vor.u32 %v2122_v18, %v1834_v19 }
  0x65   : > { %1109 = vmatpush.bf16.msrb.mxu3 %v1741_v13  ;;  %v1853_v13 = vor.u32 %v2126_v8, %v1850_v9 }
  0x66   : > { %1059 = vmatpush.bf16.msra.mxu0 %v1801_v25  ;;  %v1818_v25 = vld [vmem:[%s2276_s20 + $0x178] sm:$0xf0] }
  0x67   : > { %1077 = vmatpush.bf16.msra.mxu1 %v1929_v30  ;;  %v2114_v30 = vld [vmem:[%s2276_s20 + $0x14c] sm:$0xf] }
  0x69   : > { %1110 = vmatpush.bf16.msrb.mxu3 %v1725_v24  ;;  %v2118_v24 = vld [vmem:[%s2276_s20 + $0x16c] sm:$0xf] }
  0x6a   : > { %1060 = vmatpush.bf16.msra.mxu0 %v1785_v34  ;;  %v1821_v27 = vor.u32 %v2118_v24, %v1818_v25  ;;  %v2146_v34 = vld [vmem:[%s2276_s20 + $0x24c] sm:$0xf] }
  0x6b   : > { %1078 = vmatpush.bf16.msra.mxu1 %v1913_v40  ;;  %v1933_v38 = vor.u32 %v2146_v34, %v1930_v35  ;;  %v2142_v40 = vld [vmem:[%s2276_s20 + $0x22c] sm:$0xf] }
  0x6d   : > { %1111 = vmatpush.bf16.msrb.mxu3 %v1709_v33  ;;  %v1805_v33 = vor.u32 %v2114_v30, %v1802_v31 }
  0x6e   : > { %1061 = vmatpush.bf16.msra.mxu0 %v1769_v53 }
  0x6f   : > { %1079 = vmatpush.bf16.msra.mxu1 %v1897_v60 }
  0x70   : > { %1049 = vmatmul.bf16.gmra.mxu3 %v2432_v47 }
  0x71   : > { %1112 = vmatpush.bf16.msrb.mxu3 %v1693_v49  ;;  %1062 = vmatmul.bf16.vlgmr.msra.gmra.mxu0 %v2390_v58  ;;  %v1898_v49 = vld [vmem:[%s2276_s20 + $0x218] sm:$0xf0] }
  0x72   : > { %1126 = vmatpush.bf16.msrb.mxu0 %v1885_v59  ;;  %1080 = vmatmul.bf16.vlgmr.msra.gmra.mxu1 %v2396_v62  ;;  %v1901_v50 = vor.u32 %v2138_v46, %v1898_v49 }
  0x73   : > { %1144 = vmatpush.bf16.msrb.mxu1 %v2013_v1  ;;  %2066 = vmatmul.msk.bf16.vlgmr.msra.gmra.mxu2 %vm885_vm0, %v2316_v48 }
  0x75   : > { %1113 = vmatpush.bf16.msrb.mxu3 %v1677_v0 }
  0x76   : > { %1127 = vmatpush.bf16.msrb.mxu0 %v1869_v4 }
  0x77   : > { %1145 = vmatpush.bf16.msrb.mxu1 %v1997_v12 }
  0x79   : > { %1114 = vmatpush.bf16.msrb.mxu3 %v1661_v7 }
  0x7a   : > { %1128 = vmatpush.bf16.msrb.mxu0 %v1853_v13 }
  0x7b   : > { %1146 = vmatpush.bf16.msrb.mxu1 %v1981_v20 }
  0x7d   : > { %1115 = vmatpush.bf16.msrb.mxu3 %v1645_v16 }
  0x7e   : > { %1129 = vmatpush.bf16.msrb.mxu0 %v1837_v21 }
  0x7f   : > { %1147 = vmatpush.bf16.msrb.mxu1 %v1965_v26 }
  0x80   : > { %1116 = vmatmul.bf16.vlgmr.msrb.gmra.mxu3 %v2386_v54  ;;  %v1917_v54 = vor.u32 %v2142_v40, %v1914_v41 }
  0x81   : > { %2185 = vmatpush.bf16.msra.mxu3 %v1885_v59  ;;  %1067 = vmatmul.bf16.gmra.mxu0 %v2437_v52 }
  0x82   : > { %1130 = vmatpush.bf16.msrb.mxu0 %v1821_v27  ;;  %1085 = vmatmul.bf16.gmra.mxu1 %v2440_v17 }
  0x83   : > { %1148 = vmatpush.bf16.msrb.mxu1 %v1949_v32  ;;  %2067 = vmatmul.msk.bf16.gmra.mxu2 %vm885_vm0, %v2374_v43 }
  0x85   : > { %2186 = vmatpush.bf16.msra.mxu3 %v1869_v4 }
  0x86   : > { %1131 = vmatpush.bf16.msrb.mxu0 %v1805_v33 }
  0x87   : > { %1149 = vmatpush.bf16.msrb.mxu1 %v1933_v38 }
  0x89   : > { %2187 = vmatpush.bf16.msra.mxu3 %v1853_v13 }
  0x8a   : > { %1132 = vmatpush.bf16.msrb.mxu0 %v1789_v39 }
  0x8b   : > { %1150 = vmatpush.bf16.msrb.mxu1 %v1917_v54 }
  0x8d   : > { %2188 = vmatpush.bf16.msra.mxu3 %v1837_v21 }
  0x8e   : > { %1133 = vmatpush.bf16.msrb.mxu0 %v1773_v45 }
  0x8f   : > { %1151 = vmatpush.bf16.msrb.mxu1 %v1901_v50 }
  0x90   : > { %1121 = vmatmul.bf16.gmra.mxu3 %v2432_v47 }
  0x91   : > { %2189 = vmatpush.bf16.msra.mxu3 %v1821_v27  ;;  %1134 = vmatmul.bf16.vlgmr.msrb.gmra.mxu0 %v2390_v58 }
  0x92   : > { %1152 = vmatmul.bf16.vlgmr.msrb.gmra.mxu1 %v2396_v62 }
  0x93   : > { %2068 = vmatmul.msk.bf16.vlgmr.msrb.gmra.mxu2 %vm885_vm0, %v2316_v48 }
  0x95   : > { %2190 = vmatpush.bf16.msra.mxu3 %v1805_v33 }
  0x99   : > { %2191 = vmatpush.bf16.msra.mxu3 %v1789_v39 }
  0x9d   : > { %2192 = vmatpush.bf16.msra.mxu3 %v1773_v45 }
  0xa0   : > { %1139 = vmatmul.bf16.vlgmr.msra.gmra.mxu3 %v2437_v52 }
  0xa2   : > { %1157 = vmatmul.bf16.gmra.mxu1 %v2440_v17 }
  0xa3   : > { %v955_v51 = vpop.f32.mrf.mxu3  ;;  %2069 = vmatmul.msk.bf16.gmra.mxu2 %vm885_vm0, %v2374_v43 }
  0xab   : > { %v957_v53 = vpop.f32.mrf.mxu3 }
  0xae   : > { %v901_v55 = vpop.f32.mrf.mxu0 }
  0xaf   : > { %v919_v56 = vpop.f32.mrf.mxu1 }
  0xb0   : > { %v920_v47 = vadd.f32 %v919_v56, %v901_v55 }
  0xb3   : > { %v960_v57 = vpop.f32.mrf.mxu3 }
  0xb6   : > { %v937_v58 = vpop.f32.mrf.mxu2  ;;  %v903_v59 = vpop.f32.mrf.mxu0 }
  0xb7   : > { %v938_v62 = vadd.f32 %v937_v58, %v920_v47  ;;  %v921_v60 = vpop.f32.mrf.mxu1 }
  0xb8   : > { %v922_v61 = vadd.f32 %v921_v60, %v903_v59 }
  0xb9   : > { %v2584_v63 = vadd.f32 %v955_v51, %v938_v62 }
  0xbb   : > { %v962_v48 = vpop.f32.mrf.mxu3 }
  0xbe   : > { %v939_v52 = vpop.f32.mrf.mxu2  ;;  %v906_v0 = vpop.f32.mrf.mxu0 }
  0xbf   : > { %v940_v1 = vadd.f32 %v939_v52, %v922_v61  ;;  %v924_v17 = vpop.f32.mrf.mxu1  ;;  %v1198_v52 = vmul.f32 %v2584_v63, %v2584_v63 }
  0xc0   : > { %v925_v2 = vadd.f32 %v924_v17, %v906_v0 }
  0xc1   : > { %v2586_v3 = vadd.f32 %v957_v53, %v940_v1 }
  0xc3   : > { %v973_v43 = vpop.f32.mrf.mxu3 }
  0xc6   : > { %v942_v4 = vpop.f32.mrf.mxu2  ;;  %v908_v5 = vpop.f32.mrf.mxu0 }
  0xc7   : > { %v943_v6 = vadd.f32 %v942_v4, %v925_v2  ;;  %v926_v7 = vpop.f32.mrf.mxu1 }
  0xc9   : > { %v2588_v8 = vadd.f32 %v960_v57, %v943_v6 }
  0xcb   : > { %v975_v9 = vpop.f32.mrf.mxu3 }
  0xce   : > { %v944_v10 = vpop.f32.mrf.mxu2  ;;  %v991_v11 = vpop.f32.mrf.mxu0 }
  0xcf   : > { %v992_v12 = vadd.f32 %v991_v11, %v973_v43  ;;  %v1009_v13 = vpop.f32.mrf.mxu1 }
  0xd1   : > { %v1010_v14 = vadd.f32 %v1009_v13, %v992_v12 }
  0xd3   : > { %v978_v15 = vpop.f32.mrf.mxu3 }
  0xd6   : > { %v1027_v16 = vpop.f32.mrf.mxu2  ;;  %v993_v18 = vpop.f32.mrf.mxu0 }
  0xd7   : > { %v994_v19 = vadd.f32 %v993_v18, %v975_v9  ;;  %v1011_v20 = vpop.f32.mrf.mxu1  ;;  %v2590_v55 = vadd.f32 %v1027_v16, %v1010_v14 }
  0xd9   : > { %v1012_v21 = vadd.f32 %v1011_v20, %v994_v19  ;;  %v1199_v62 = vmul.f32 %v2590_v55, %v2590_v55  ;;  %v1183_v1 = vadd.f32 %v2590_v55, %v2584_v63  ;;  %v1202_v20 = vmul.f32 %v2586_v3, %v2586_v3 }
  0xdb   : > { %v980_v22 = vpop.f32.mrf.mxu3  ;;  %v1210_v4 = vadd.f32 %v1199_v62, %v1198_v52  ;;  %v2650_v62 = vld [vmem:[%s2757_s2] sm:$0xff] }
  0xde   : > { %v1029_v23 = vpop.f32.mrf.mxu2  ;;  %v996_v24 = vpop.f32.mrf.mxu0 }
  0xdf   : > { %v997_v25 = vadd.f32 %v996_v24, %v978_v15  ;;  %v1014_v26 = vpop.f32.mrf.mxu1  ;;  %v2602_v5 = vadd.f32 %v1029_v23, %v1012_v21 }
  0xe1   : > { %v1015_v27 = vadd.f32 %v1014_v26, %v997_v25  ;;  %v1203_v18 = vmul.f32 %v2602_v5, %v2602_v5  ;;  %v1188_v21 = vadd.f32 %v2602_v5, %v2586_v3 }
  0xe3   : > { %v1045_v28 = vpop.f32.mrf.mxu3 }
  0xe6   : > { %v1032_v29 = vpop.f32.mrf.mxu2  ;;  %v998_v30 = vpop.f32.mrf.mxu0 }
  0xe7   : > { %v1016_v31 = vpop.f32.mrf.mxu1  ;;  %v2620_v26 = vadd.f32 %v1032_v29, %v1015_v27 }
  0xeb   : > { %v1047_v32 = vpop.f32.mrf.mxu3 }
  0xee   : > { %v1034_v33 = vpop.f32.mrf.mxu2  ;;  %v1063_v34 = vpop.f32.mrf.mxu0 }
  0xef   : > { %v1081_v35 = vpop.f32.mrf.mxu1  ;;  %v1064_v50 = vadd.f32 %v1063_v34, %v1045_v28 }
  0xf1   : > { %v1082_v53 = vadd.f32 %v1081_v35, %v1064_v50 }
  0xf3   : > { %v1050_v36 = vpop.f32.mrf.mxu3 }
  0xf6   : > { %v1099_v37 = vpop.f32.mrf.mxu2  ;;  %v1065_v38 = vpop.f32.mrf.mxu0 }
  0xf7   : > { %v1083_v39 = vpop.f32.mrf.mxu1  ;;  %v2592_v59 = vadd.f32 %v1099_v37, %v1082_v53  ;;  %v1066_v60 = vadd.f32 %v1065_v38, %v1047_v32  ;;  %v1215_v32 = vadd.f32 %v1203_v18, %v1202_v20  ;;  %v1207_v38 = vmul.f32 %v2620_v26, %v2620_v26 }
  0xf9   : > { %v1200_v0 = vmul.f32 %v2592_v59, %v2592_v59  ;;  %v1084_v17 = vadd.f32 %v1083_v39, %v1066_v60  ;;  %v1184_v9 = vadd.f32 %v1183_v1, %v2592_v59  ;;  %v1206_v39 = vmul.f32 %v2588_v8, %v2588_v8 }
  0xfa   : > { %v1225_v60 = vmul.f32 512.0, %v2650_v62 }
  0xfb   : > { %v1052_v40 = vpop.f32.mrf.mxu3  ;;  %v1211_v11 = vadd.f32 %v1210_v4, %v1200_v0 }
  0xfc   : > { %v1193_v40 = vadd.f32 %v2620_v26, %v2588_v8  ;;  %v1240_v1 = vmul.f32 %v1225_v60, %v2650_v62 }
  0xfe   : > { %v1101_v41 = vpop.f32.mrf.mxu2  ;;  %v1068_v42 = vpop.f32.mrf.mxu0 }
  0xff   : > { %v1086_v44 = vpop.f32.mrf.mxu1  ;;  %v2607_v10 = vadd.f32 %v1101_v41, %v1084_v17  ;;  %v1069_v12 = vadd.f32 %v1068_v42, %v1050_v36 }
 0x101   : > { %v1087_v22 = vadd.f32 %v1086_v44, %v1069_v12  ;;  %v1204_v24 = vmul.f32 %v2607_v10, %v2607_v10  ;;  %v1189_v30 = vadd.f32 %v1188_v21, %v2607_v10 }
 0x103   : > { %v1117_v54 = vpop.f32.mrf.mxu3  ;;  %v1216_v36 = vadd.f32 %v1215_v32, %v1204_v24 }
 0x106   : > { %v1104_v45 = vpop.f32.mrf.mxu2  ;;  %v1070_v46 = vpop.f32.mrf.mxu0 }
 0x107   : > { %v1088_v49 = vpop.f32.mrf.mxu1  ;;  %v2625_v33 = vadd.f32 %v1104_v45, %v1087_v22  ;;  %v1220_v46 = vadd.f32 %v1207_v38, %v1206_v39  ;;  %v1248_v38 = vld [vmem:[%s2758_s3 + $0x10] sm:$0xff] }
 0x109   : > { %v1208_v41 = vmul.f32 %v2625_v33, %v2625_v33  ;;  %v1194_v45 = vadd.f32 %v1193_v40, %v2625_v33 }
 0x10b   : > { %v1119_v51 = vpop.f32.mrf.mxu3  ;;  %v1221_v53 = vadd.f32 %v1220_v46, %v1208_v41 }
 0x10e   : > { %v1106_v56 = vpop.f32.mrf.mxu2  ;;  %v1135_v47 = vpop.f32.mrf.mxu0 }
 0x10f   : > { %v1136_v57 = vadd.f32 %v1135_v47, %v1117_v54  ;;  %v1153_v58 = vpop.f32.mrf.mxu1 }
 0x111   : > { %v1154_v48 = vadd.f32 %v1153_v58, %v1136_v57  ;;  %v2232_v58 = vmov 0  }
 0x112   : > { %2207 = vset.pattern.permute.xlu0 %v2232_v58  ;;  %2208 = vset.pattern.permute.xlu2 %v2232_v58 }
 0x113   : > { %v1122_v61 = vpop.f32.mrf.mxu3  ;;  %2209 = vset.pattern.permute.xlu1 %v2232_v58 }
 0x116   : > { %v1171_v2 = vpop.f32.mrf.mxu2  ;;  %v1137_v43 = vpop.f32.mrf.mxu0 }
 0x117   : > { %v2604_v6 = vadd.f32 %v1171_v2, %v1154_v48  ;;  %v1155_v7 = vpop.f32.mrf.mxu1  ;;  %v1138_v13 = vadd.f32 %v1137_v43, %v1119_v51  ;;  %v2658_v2 = vld [vmem:[%s2757_s2 + $0x8] sm:$0xff] }
 0x119   : > { %v1185_v14 = vadd.f32 %v1184_v9, %v2604_v6  ;;  %v1201_v15 = vmul.f32 %v2604_v6, %v2604_v6  ;;  %v1156_v23 = vadd.f32 %v1155_v7, %v1138_v13  ;;  %v1226_v7 = vmul.f32 512.0, %v2658_v2 }
 0x11a   : > { %v1232_v9 = vmul.f32 2.0, %v2658_v2 }
 0x11b   : > { %v1124_v16 = vpop.f32.mrf.mxu3  ;;  %1186 = vadd.xlane.f32.xlu0 %v1185_v14  ;;  %v1212_v19 = vadd.f32 %v1211_v11, %v1201_v15  ;;  %v2665_v15 = vld [vmem:[%s2757_s2 + $0x10] sm:$0xff] }
 0x11c   : > { %v1241_v16 = vmul.f32 %v1226_v7, %v2658_v2  ;;  %v1233_v20 = vmul.f32 2.0, %v2665_v15 }
 0x11d   : > { %1213 = vadd.xlane.f32.xlu1 %v1212_v19  ;;  %v1227_v19 = vmul.f32 512.0, %v2665_v15 }
 0x11e   : > { %v1173_v25 = vpop.f32.mrf.mxu2 }
 0x11f   : > { %v2622_v28 = vadd.f32 %v1173_v25, %v1156_v23  ;;  %v1158_v31 = vpop.f32.mrf.mxu1 }
 0x121   : > { %v1190_v34 = vadd.f32 %v1189_v30, %v2622_v28  ;;  %v1205_v35 = vmul.f32 %v2622_v28, %v2622_v28  ;;  %v1242_v30 = vmul.f32 %v1227_v19, %v2665_v15 }
 0x123   : > { %v1140_v37 = vpop.f32.mrf.mxu3  ;;  %1191 = vadd.xlane.f32.xlu0 %v1190_v34  ;;  %v1217_v29 = vadd.f32 %v1216_v36, %v1205_v35 }
 0x124   : > { %v1141_v27 = vadd.f32 %v1140_v37, %v1122_v61  ;;  %v1231_v61 = vmul.f32 2.0, %v2650_v62  ;;  %v1246_v37 = vld [vmem:[%s2758_s3] sm:$0xff] }
 0x125   : > { %1218 = vadd.xlane.f32.xlu2 %v1217_v29 }
 0x126   : > { %v1159_v42 = vadd.f32 %v1158_v31, %v1141_v27  ;;  %v1176_v44 = vpop.f32.mrf.mxu2  ;;  %v1247_v27 = vld [vmem:[%s2758_s3 + $0x8] sm:$0xff] }
 0x127   : > { %v1160_v49 = vpop.f32.mrf.mxu1 }
 0x128   : > { %v2638_v54 = vadd.f32 %v1176_v44, %v1159_v42  ;;  %v1308_v49 = vlaneseq }
 0x12a   : > { %v1195_v50 = vadd.f32 %v1194_v45, %v2638_v54  ;;  %v1209_v51 = vmul.f32 %v2638_v54, %v2638_v54 }
 0x12b   : > { %v1142_v56 = vpop.f32.mrf.mxu3 }
 0x12c   : > { %1196 = vadd.xlane.f32.xlu1 %v1195_v50  ;;  %v1222_v47 = vadd.f32 %v1221_v53, %v1209_v51 }
 0x12e   : > { %1223 = vadd.xlane.f32.xlu2 %v1222_v47  ;;  %v1178_v57 = vpop.f32.mrf.mxu2 }
 0x18e   : > { %v1187_v48 = vpop.xlane.xlu0 %1186 }
 0x18f   : > { %v1228_v52 = vadd.f32 %v1225_v60, %v1187_v48  ;;  %v1234_v0 = vmul.f32 %v1231_v61, %v1187_v48  ;;  %v1309_v61 = vshrl.u32 %v1308_v49, 7 }
 0x190   : > { %v1214_v17 = vpop.xlane.xlu1 %1213 }
 0x191   : > { %v1237_v43 = vadd.f32 %v1234_v0, %v1214_v17  ;;  %1251 = vperm.xlu0 %2207, %v1228_v52  }
 0x193   : > { %v1243_v4 = vadd.f32 %v1240_v1, %v1237_v43 }
 0x195   : > { %1281 = vperm.xlu2 %2208, %v1243_v4   ;;  %v1311_v4 = vadd.s32 16, %v1309_v61 }
 0x196   : > { %v1192_v11 = vpop.xlane.xlu0 %1191 }
 0x197   : > { %v1229_v12 = vadd.f32 %v1226_v7, %v1192_v11  ;;  %v1235_v13 = vmul.f32 %v1232_v9, %v1192_v11  ;;  %v1313_v7 = vand.u32 127, %v1308_v49  ;;  %v1310_v9 = vadd.s32 8, %v1309_v61 }
 0x198   : > { %v1219_v14 = vpop.xlane.xlu2 %1218 }
 0x199   : > { %1256 = vperm.xlu1 %2209, %v1229_v12   ;;  %v1238_v18 = vadd.f32 %v1235_v13, %v1219_v14  ;;  %vm1316_vm2 = vcmp.eq.s32.totalorder %v1311_v4, %v1313_v7  ;;  %vm1315_vm3 = vcmp.eq.s32.totalorder %v1310_v9, %v1313_v7  ;;  %vm1314_vm4 = vcmp.eq.s32.totalorder %v1309_v61, %v1313_v7 }
 0x19b   : > { %v1244_v22 = vadd.f32 %v1241_v16, %v1238_v18 }
 0x19f   : > { %v1197_v21 = vpop.xlane.xlu1 %1196 }
 0x1a0   : > { %v1230_v23 = vadd.f32 %v1227_v19, %v1197_v21  ;;  %v1236_v24 = vmul.f32 %v1233_v20, %v1197_v21 }
 0x1a1   : > { %v1224_v25 = vpop.xlane.xlu2 %1223  ;;  %1286 = vperm.xlu1 %2209, %v1244_v22  }
 0x1a2   : > { %1261 = vperm.xlu2 %2208, %v1230_v23   ;;  %v1239_v31 = vadd.f32 %v1236_v24, %v1224_v25 }
 0x1a4   : > { %v1245_v32 = vadd.f32 %v1242_v30, %v1239_v31 }
 0x1aa   : > { %1291 = vperm.xlu2 %2208, %v1245_v32  }
 0x1ef   : > { %v1282_v34 = vpop.permute.xlu2 %1281 }
 0x1f0   : > { %v1294_v53 = vmul.f32 %v1282_v34, %v1246_v37 }
 0x1f2   : > { %v1297_v52 = vsel %vm1267_vm1, %v1294_v53, 0.0 }
 0x1fc   : > { %v1262_v35 = vpop.permute.xlu2 %1261 }
 0x1fd   : > { %v1266_v40 = vmul.f32 %v1262_v35, %v1248_v38 }
 0x1ff   : > { %v1271_v46 = vsel %vm1267_vm1, %v1266_v40, 0.0 }
 0x203   : > { %v1252_v36 = vpop.permute.xlu0 %1251 }
 0x204   : > { %v1264_v29 = vmul.f32 %v1252_v36, %v1246_v37  ;;  %v1292_v50 = vpop.permute.xlu2 %1291 }
 0x205   : > { %v1296_v57 = vmul.f32 %v1292_v50, %v1248_v38 }
 0x206   : > { %v1268_v42 = vsel %vm1267_vm1, %v1264_v29, 0.0 }
 0x207   : > { %v1300_v43 = vsel %vm1267_vm1, %v1296_v57, 0.0 }
 0x20b   : > { %v1257_v39 = vpop.permute.xlu1 %1256 }
 0x20c   : > { %v1265_v41 = vmul.f32 %v1257_v39, %v1247_v27 }
 0x20e   : > { %v1269_v44 = vsel %vm1267_vm1, %v1265_v41, 0.0 }
 0x20f   : > { %v1270_v45 = vadd.f32 %v1269_v44, %v1268_v42 }
 0x211   : > { %v1272_v51 = vadd.f32 %v1271_v46, %v1270_v45 }
 0x213   : > { %v1273_v56 = vrot.slane %v1272_v51, 4  ;;  %v1287_v47 = vpop.permute.xlu1 %1286 }
 0x214   : > { %v1295_v60 = vmul.f32 %v1287_v47, %v1247_v27 }
 0x215   : > { %v1274_v48 = vadd.f32 %v1273_v56, %v1272_v51  ;;  %v2234_v56 = vmov 3  }
 0x216   : > { %v1298_v0 = vsel %vm1267_vm1, %v1295_v60, 0.0  ;;  %2211 = vset.pattern.permute.xlu1 %v2234_v56  ;;  %2210 = vset.pattern.permute.xlu2 %v2234_v56 }
 0x217   : > { %v1275_v1 = vrot.slane %v1274_v48, 2  ;;  %v1299_v17 = vadd.f32 %v1298_v0, %v1297_v52 }
 0x219   : > { %v1301_v11 = vadd.f32 %v1300_v43, %v1299_v17  ;;  %v1276_v12 = vadd.f32 %v1275_v1, %v1274_v48  ;;  %v2235_v48 = vmov 1  }
 0x21a   : > { %2213 = vset.pattern.permute.xlu0 %v2235_v48 }
 0x21b   : > { %v1302_v13 = vrot.slane %v1301_v11, 4  ;;  %v1277_v14 = vrot.slane %v1276_v12, 1 }
 0x21d   : > { %v1303_v16 = vadd.f32 %v1302_v13, %v1301_v11  ;;  %v1278_v18 = vadd.f32 %v1277_v14, %v1276_v12 }
 0x21f   : > { %v1304_v19 = vrot.slane %v1303_v16, 2  ;;  %v1319_v20 = vsel %vm1316_vm2, %v1278_v18, 0.0  ;;  %v1318_v21 = vsel %vm1315_vm3, %v1278_v18, 0.0  ;;  %v1317_v38 = vsel %vm1314_vm4, %v1278_v18, 0.0 }
 0x220   : > { %v1326_v22 = vsel %vm1267_vm1, %v1319_v20, 0.0  ;;  %v1323_v23 = vsel %vm1267_vm1, %v1318_v21, 0.0  ;;  %v1320_v27 = vsel %vm1267_vm1, %v1317_v38, 0.0 }
 0x221   : > { %1327 = vadd.xlane.f32.xlu1 %v1326_v22  ;;  %1324 = vadd.xlane.f32.xlu0 %v1323_v23  ;;  %v1305_v24 = vadd.f32 %v1304_v19, %v1303_v16 }
 0x223   : > { %v1306_v25 = vrot.slane %v1305_v24, 1 }
 0x225   : > { %v1307_v30 = vadd.f32 %v1306_v25, %v1305_v24 }
 0x227   : > { %v1331_v31 = vsel %vm1316_vm2, %v1307_v30, 0.0  ;;  %v1330_v32 = vsel %vm1315_vm3, %v1307_v30, 0.0  ;;  %v1329_v34 = vsel %vm1314_vm4, %v1307_v30, 0.0  ;;  %vm1538_vm2 = vcmask 1043456  }
 0x228   : > { %v1338_v35 = vsel %vm1267_vm1, %v1331_v31, 0.0  ;;  %v1335_v36 = vsel %vm1267_vm1, %v1330_v32, 0.0  ;;  %v1332_v37 = vsel %vm1267_vm1, %v1329_v34, 0.0 }
 0x229   : > { %1339 = vadd.xlane.f32.xlu2 %v1338_v35  ;;  %1336 = vadd.xlane.f32.xlu1 %v1335_v36 }
 0x22a   : > { %1333 = vadd.xlane.f32.xlu0 %v1332_v37 }
 0x231   : > { %1321 = vadd.xlane.f32.xlu2 %v1320_v27 }
 0x23e   : > { %1411 = vrot.lane.b32.xlu0 %v2665_v15, %s2233_s29 }
 0x294   : > { %v2694_v29 = vpop.xlane.xlu1 %1327  ;;  %v2696_v39 = vpop.xlane.xlu0 %1324 }
 0x295   : > { %v1342_v40 = vmul.f32 %v2696_v39, %v2696_v39  ;;  %v1343_v41 = vmul.f32 %v2694_v29, %v2694_v29  ;;  %v1388_v36 = vsub.f32 %v2665_v15, %v2694_v29 }
 0x29c   : > { %v1340_v42 = vpop.xlane.xlu2 %1339  ;;  %v1337_v44 = vpop.xlane.xlu1 %1336 }
 0x29d   : > { %v1346_v45 = vsub.f32 %v1340_v42, %v1343_v41  ;;  %v1345_v46 = vsub.f32 %v1337_v44, %v1342_v40  ;;  %v1334_v60 = vpop.xlane.xlu0 %1333  ;;  %v1387_v42 = vsub.f32 %v2658_v2, %v2696_v39 }
 0x29f   : > { %v1349_v49 = vmax.f32 %v1346_v45, 0.0  ;;  %v1348_v50 = vmax.f32 %v1345_v46, 0.0 }
 0x2a1   : > { %v1352_v51 = vadd.f32 1e-05, %v1349_v49  ;;  %v1351_v53 = vadd.f32 1e-05, %v1348_v50 }
 0x2a3   : > { %2218 = vrsqrt.f32 %v1352_v51  ;;  %vm1379_vm7 = vweird.f32 %v1352_v51  ;;  %vm1369_vm9 = vweird.f32 %v1351_v53 }
 0x2a4   : > { %2220 = vrsqrt.f32 %v1351_v53  ;;  %v2704_v47 = vpop.xlane.xlu2 %1321 }
 0x2a5   : > { %v1341_v57 = vmul.f32 %v2704_v47, %v2704_v47  ;;  %v1386_v46 = vsub.f32 %v2650_v62, %v2704_v47 }
 0x2a7   : > { %v1344_v61 = vsub.f32 %v1334_v60, %v1341_v57 }
 0x2a9   : > { %v2219_v52 = vpop.eup %2218  ;;  %v1347_v0 = vmax.f32 %v1344_v61, 0.0 }
 0x2aa   : > { %v2221_v1 = vpop.eup %2220  ;;  %v1374_v17 = vmul.f32 %v2219_v52, %v1352_v51  ;;  %vm1380_vm5 = vweird.f32 %v2219_v52 }
 0x2ab   : > { %v1364_v43 = vmul.f32 %v2221_v1, %v1351_v53  ;;  %v1350_v4 = vadd.f32 1e-05, %v1347_v0  ;;  %vm1370_vm6 = vweird.f32 %v2221_v1  ;;  %vm1381_vm8 = vmor %vm1379_vm7, %vm1380_vm5 }
 0x2ac   : > { %v1375_v7 = vmul.f32 %v2219_v52, %v1374_v17  ;;  %vm1371_vm10 = vmor %vm1369_vm9, %vm1370_vm6 }
 0x2ad   : > { %v1365_v9 = vmul.f32 %v2221_v1, %v1364_v43  ;;  %2222 = vrsqrt.f32 %v1350_v4  ;;  %vm1359_vm12 = vweird.f32 %v1350_v4 }
 0x2ae   : > { %v1376_v11 = vmul.f32 0.5, %v1375_v7 }
 0x2af   : > { %v1366_v12 = vmul.f32 0.5, %v1365_v9 }
 0x2b0   : > { %v1377_v13 = vsub.f32 1.5, %v1376_v11  ;;  %v1412_v38 = vpop.permute.xlu0 %1411 }
 0x2b1   : > { %v1367_v14 = vsub.f32 1.5, %v1366_v12 }
 0x2b2   : > { %v1378_v16 = vmul.f32 %v2219_v52, %v1377_v13 }
 0x2b3   : > { %v2223_v18 = vpop.eup %2222  ;;  %v1368_v19 = vmul.f32 %v2221_v1, %v1367_v14 }
 0x2b4   : > { %v1354_v20 = vmul.f32 %v2223_v18, %v1350_v4  ;;  %v1382_v21 = vsel %vm1381_vm8, %v2219_v52, %v1378_v16  ;;  %vm1360_vm11 = vweird.f32 %v2223_v18 }
 0x2b5   : > { %v1385_v22 = vmul.f32 %v1382_v21, %v2665_v15  ;;  %v1372_v23 = vsel %vm1371_vm10, %v2221_v1, %v1368_v19  ;;  %vm1361_vm13 = vmor %vm1359_vm12, %vm1360_vm11 }
 0x2b6   : > { %v1355_v24 = vmul.f32 %v2223_v18, %v1354_v20  ;;  %v1384_v25 = vmul.f32 %v1372_v23, %v2658_v2 }
 0x2b7   : > { %1396 = vrot.lane.b32.xlu1 %v1385_v22, %s2236_s30 }
 0x2b8   : > { %v1356_v30 = vmul.f32 0.5, %v1355_v24  ;;  %1394 = vrot.lane.b32.xlu2 %v1384_v25, %s2236_s30 }
 0x2ba   : > { %v1357_v31 = vsub.f32 1.5, %v1356_v30 }
 0x2bc   : > { %v1358_v32 = vmul.f32 %v2223_v18, %v1357_v31 }
 0x2be   : > { %v1362_v34 = vsel %vm1361_vm13, %v2223_v18, %v1358_v32 }
 0x2bf   : > { %1409 = vrot.lane.b32.xlu1 %v2658_v2, %s2233_s29  ;;  %v1383_v35 = vmul.f32 %v1362_v34, %v2650_v62 }
 0x2c0   : > { %1407 = vrot.lane.b32.xlu2 %v2650_v62, %s2233_s29 }
 0x2c1   : > { %1392 = vrot.lane.b32.xlu0 %v1383_v35, %s2236_s30 }
 0x2c7   : > { %1487 = vperm.xlu1 %2211, %v2658_v2  }
 0x2c8   : > { %1491 = vperm.xlu2 %2210, %v2665_v15  }
 0x2c9   : > { %1424 = vperm.xlu0 %2213, %v1384_v25  }
 0x2cf   : > { %2212 = vset.pattern.permute.xlu1 %v2235_v48 }
 0x2d0   : > { %1428 = vperm.xlu1 %2212, %v1385_v22   ;;  %2214 = vset.pattern.permute.xlu2 %v2232_v58 }
 0x2d1   : > { %1420 = vperm.xlu0 %2213, %v1383_v35  }
 0x2d8   : > { %2215 = vset.pattern.permute.xlu1 %v2232_v58 }
 0x2d9   : > { %2217 = vset.pattern.permute.xlu0 %v2234_v56 }
 0x312   : > { %v1395_v40 = vpop.permute.xlu2 %1394 }
 0x313   : > { %v1402_v44 = vmul.f32 %v1395_v40, %v1387_v42 }
 0x31a   : > { %v1408_v50 = vpop.permute.xlu2 %1407 }
 0x322   : > { %v1492_v53 = vpop.permute.xlu2 %1491 }
 0x329   : > { %v1397_v37 = vpop.permute.xlu1 %1396 }
 0x32a   : > { %v1403_v27 = vmul.f32 %v1397_v37, %v1388_v36 }
 0x32c   : > { %v1418_v41 = vadd.f32 %v1412_v38, %v1403_v27 }
 0x32e   : > { %1455 = vperm.xlu2 %2214, %v1418_v41  }
 0x331   : > { %v1410_v45 = vpop.permute.xlu1 %1409 }
 0x332   : > { %v1417_v58 = vadd.f32 %v1410_v45, %v1402_v44 }
 0x333   : > { %v1393_v49 = vpop.permute.xlu0 %1392 }
 0x334   : > { %v1401_v51 = vmul.f32 %v1393_v49, %v1386_v46  ;;  %1450 = vperm.xlu1 %2215, %v1417_v58  }
 0x336   : > { %v1416_v15 = vadd.f32 %v1408_v50, %v1401_v51 }
 0x338   : > { %1445 = vperm.xlu2 %2214, %v1416_v15  }
 0x339   : > { %v1488_v29 = vpop.permute.xlu1 %1487 }
 0x33b   : > { %v1425_v2 = vpop.permute.xlu0 %1424 }
 0x33c   : > { %2216 = vset.pattern.permute.xlu1 %v2234_v56 }
 0x33d   : > { %1483 = vperm.xlu1 %2216, %v2650_v62  }
 0x342   : > { %v1429_v39 = vpop.permute.xlu1 %1428 }
 0x343   : > { %v1439_v60 = vmul.f32 %v1429_v39, %v2588_v8  ;;  %v1440_v47 = vmul.f32 %v1429_v39, %v2620_v26  ;;  %v1441_v61 = vmul.f32 %v1429_v39, %v2625_v33  ;;  %v1442_v48 = vmul.f32 %v1429_v39, %v2638_v54  ;;  %v1421_v56 = vpop.permute.xlu0 %1420 }
 0x344   : > { %v1435_v8 = vmul.f32 %v1425_v2, %v2586_v3  ;;  %v1436_v26 = vmul.f32 %v1425_v2, %v2602_v5  ;;  %v1437_v33 = vmul.f32 %v1425_v2, %v2607_v10  ;;  %v1438_v54 = vmul.f32 %v1425_v2, %v2622_v28 }
 0x345   : > { %v1431_v9 = vmul.f32 %v1421_v56, %v2584_v63  ;;  %v1432_v11 = vmul.f32 %v1421_v56, %v2590_v55  ;;  %v1433_v12 = vmul.f32 %v1421_v56, %v2592_v59  ;;  %v1434_v13 = vmul.f32 %v1421_v56, %v2604_v6 }
 0x388   : > { %v1456_v57 = vpop.permute.xlu2 %1455 }
 0x389   : > { %v1466_v52 = vadd.f32 %v1456_v57, %v1439_v60  ;;  %v1467_v0 = vadd.f32 %v1456_v57, %v1440_v47  ;;  %v1468_v1 = vadd.f32 %v1456_v57, %v1441_v61  ;;  %v1469_v17 = vadd.f32 %v1456_v57, %v1442_v48 }
 0x38b   : > { %v1502_v43 = vmul.f32 %v1492_v53, %v1466_v52  ;;  %v1503_v62 = vmul.f32 %v1492_v53, %v1467_v0  ;;  %v1504_v4 = vmul.f32 %v1492_v53, %v1468_v1  ;;  %v1505_v7 = vmul.f32 %v1492_v53, %v1469_v17 }
 0x38c   : > { %vm1478_vm14 = vcmp.ge.f32.partialorder %v1466_v52, 0.0  ;;  %vm1479_vm15 = vcmp.ge.f32.partialorder %v1467_v0, 0.0  ;;  %vm1480_vm0 = vcmp.ge.f32.partialorder %v1468_v1, 0.0  ;;  %vm1481_vm1 = vcmp.ge.f32.partialorder %v1469_v17, 0.0 }
 0x38d   : > { %v1514_v16 = vsel %vm1478_vm14, %v1466_v52, %v1502_v43  ;;  %v1515_v18 = vsel %vm1479_vm15, %v1467_v0, %v1503_v62  ;;  %v1516_v19 = vsel %vm1480_vm0, %v1468_v1, %v1504_v4  ;;  %v1517_v20 = vsel %vm1481_vm1, %v1469_v17, %v1505_v7 }
 0x38e   : > { %v1522_v30 = vrot.slane %v1514_v16, 4  ;;  %v1523_v31 = vrot.slane %v1515_v18, 4  ;;  %v1524_v32 = vrot.slane %v1516_v19, 4  ;;  %v1525_v34 = vrot.slane %v1517_v20, 4 }
 0x392   : > { %v1446_v14 = vpop.permute.xlu2 %1445 }
 0x393   : > { %v1458_v28 = vadd.f32 %v1446_v14, %v1431_v9  ;;  %v1459_v23 = vadd.f32 %v1446_v14, %v1432_v11  ;;  %v1460_v63 = vadd.f32 %v1446_v14, %v1433_v12  ;;  %v1461_v24 = vadd.f32 %v1446_v14, %v1434_v13 }
 0x395   : > { %vm1470_vm7 = vcmp.ge.f32.partialorder %v1458_v28, 0.0  ;;  %vm1471_vm8 = vcmp.ge.f32.partialorder %v1459_v23, 0.0  ;;  %vm1472_vm9 = vcmp.ge.f32.partialorder %v1460_v63, 0.0  ;;  %vm1473_vm10 = vcmp.ge.f32.partialorder %v1461_v24, 0.0 }
 0x3a6   : > { %v1451_v3 = vpop.permute.xlu1 %1450 }
 0x3a7   : > { %v1462_v5 = vadd.f32 %v1451_v3, %v1435_v8  ;;  %v1463_v21 = vadd.f32 %v1451_v3, %v1436_v26  ;;  %v1464_v10 = vadd.f32 %v1451_v3, %v1437_v33  ;;  %v1465_v22 = vadd.f32 %v1451_v3, %v1438_v54 }
 0x3a9   : > { %vm1474_vm3 = vcmp.ge.f32.partialorder %v1462_v5, 0.0  ;;  %vm1475_vm4 = vcmp.ge.f32.partialorder %v1463_v21, 0.0  ;;  %vm1476_vm5 = vcmp.ge.f32.partialorder %v1464_v10, 0.0  ;;  %vm1477_vm6 = vcmp.ge.f32.partialorder %v1465_v22, 0.0 }
 0x3aa   : > { %v1498_v55 = vmul.f32 %v1488_v29, %v1462_v5  ;;  %v1499_v59 = vmul.f32 %v1488_v29, %v1463_v21  ;;  %v1500_v6 = vmul.f32 %v1488_v29, %v1464_v10  ;;  %v1501_v25 = vmul.f32 %v1488_v29, %v1465_v22 }
 0x3ac   : > { %v1510_v35 = vsel %vm1474_vm3, %v1462_v5, %v1498_v55  ;;  %v1511_v36 = vsel %vm1475_vm4, %v1463_v21, %v1499_v59  ;;  %v1512_v37 = vsel %vm1476_vm5, %v1464_v10, %v1500_v6  ;;  %v1513_v38 = vsel %vm1477_vm6, %v1465_v22, %v1501_v25 }
 0x3ad   : > { %v1530_v27 = vadd.f32 %v1522_v30, %v1510_v35  ;;  %v1531_v40 = vadd.f32 %v1523_v31, %v1511_v36  ;;  %v1532_v41 = vadd.f32 %v1524_v32, %v1512_v37  ;;  %v1533_v42 = vadd.f32 %v1525_v34, %v1513_v38 }
 0x3af   : > { %v1534_v44 = vadd.f32 %v1530_v27, %v1514_v16  ;;  %v1535_v45 = vadd.f32 %v1531_v40, %v1515_v18  ;;  %v1536_v46 = vadd.f32 %v1532_v41, %v1516_v19  ;;  %v1537_v58 = vadd.f32 %v1533_v42, %v1517_v20  ;;  %v1484_v49 = vpop.permute.xlu1 %1483 }
 0x3b0   : > { %v1494_v50 = vmul.f32 %v1484_v49, %v1458_v28  ;;  %v1495_v51 = vmul.f32 %v1484_v49, %v1459_v23  ;;  %v1496_v15 = vmul.f32 %v1484_v49, %v1460_v63  ;;  %v1497_v29 = vmul.f32 %v1484_v49, %v1461_v24 }
 0x3b1   : > { %v1539_v53 = vsel %vm1538_vm2, %v1510_v35, %v1534_v44  ;;  %v1540_v2 = vsel %vm1538_vm2, %v1511_v36, %v1535_v45  ;;  %v1541_v39 = vsel %vm1538_vm2, %v1512_v37, %v1536_v46  ;;  %v1542_v57 = vsel %vm1538_vm2, %v1513_v38, %v1537_v58 }
 0x3b2   : > { %v1545_v60 = vpack.c.bf16 %v1540_v2, %v1539_v53  ;;  %v1546_v47 = vpack.c.bf16 %v1542_v57, %v1541_v39  ;;  %v1506_v61 = vsel %vm1470_vm7, %v1458_v28, %v1494_v50  ;;  %v1507_v48 = vsel %vm1471_vm8, %v1459_v23, %v1495_v51 }
 0x3b3   : > { %v1508_v52 = vsel %vm1472_vm9, %v1460_v63, %v1496_v15  ;;  %v1509_v0 = vsel %vm1473_vm10, %v1461_v24, %v1497_v29  ;;  %v1543_v1 = vpack.c.bf16 %v1507_v48, %v1506_v61 }
 0x3b4   : > { %1549 = vst [vmem:[%s197_s16 + $0x10] sm:$0xff] %v1545_v60  ;;  %v1544_v17 = vpack.c.bf16 %v1509_v0, %v1508_v52 }
 0x3b5   : > { %1550 = vst [vmem:[%s197_s16 + $0x18] sm:$0xff] %v1546_v47 }
 0x3b6   : > { %1547 = vst [vmem:[%s197_s16] sm:$0xff] %v1543_v1 }
 0x3b7   : > { %1548 = vst [vmem:[%s197_s16 + $0x8] sm:$0xff] %v1544_v17 }
 0x3b8 PF: > { %s14_s15 = sadd.s32 1, %s2230_s15  }
 0x3b9   : > { %p11_p4 = scmp.ge.s32.totalorder %s14_s15, 4  }
 0x3bb   :  { %13 = sbr.rel (!%p11_p4) target bundleno = 1 (0x1), region = 66 }

// kernel: bottleneck_apply.7
= control target key start
LH: loop header
LB: loop body
LE: loop exit
PB: predicated region body
PF: predicated region fallthrough
CT: control target
= control target key end

     0   :  { %s2515_s15 = smov 0   ;;  %s4321_s0 = inlined_call_operand.vmem [shape: bf16[2,16,512], index: 0, kind: input, shape index: {}]   ;;  %s4322_s1 = inlined_call_operand.vmem [shape: bf16[128,16], index: 1, kind: input, shape index: {}]   ;;  %s4323_s2 = inlined_call_operand.vmem [shape: f32[128,4], index: 2, kind: input, shape index: {}]   ;;  %s4324_s3 = inlined_call_operand.vmem [shape: f32[128,128], index: 3, kind: input, shape index: {}]   ;;  %s4325_s4 = inlined_call_operand.vmem [shape: f32[2,128,512], index: 4, kind: output, shape index: {}]  }
   0x1 LB: > { %s2296_s16 = sadd.s32 4294967295, %s2483_s15   ;;  %p2300_p0 = scmp.ge.s32.totalorder %s2483_s15, 1  ;;  %s2483_s15 = sphi %s2515_s15, %s14_s15  }
   0x2   : > { %p162_p1 = scmp.lt.s32.totalorder %s2483_s15, 3 }
   0x4   : > { %p163_p2 = pnand %p2300_p0, %p162_p1 }
   0x6   : > { %166 = sbr.rel (%p163_p2) target bundleno = 1015 (0x3f7), region = 36 }
   0xb   : > { %p188_p3 = scmp.lt.s32.totalorder %s2296_s16, 1  ;;  %v2526_v0 = vld [vmem:[%s4323_s2] sm:$0xff]  ;;  %s2485_s19 = smov 126   ;;  %v2533_v1 = vld [vmem:[%s4323_s2 + $0x10] sm:$0xff]  ;;  %v2546_v2 = vld [vmem:[%s4323_s2 + $0x18] sm:$0xff]  ;;  %vm279_vm0 = vcmask 130048  }
   0xc   : > { %1585 = vrot.lane.b32.xlu0 %v2526_v0, %s2485_s19  ;;  %1589 = vrot.lane.b32.xlu1 %v2533_v1, %s2485_s19  ;;  %v2393_v6 = vld [vmem:[%s4322_s1] sm:$0xff]  ;;  %v2554_v15 = vld [vmem:[%s4323_s2 + $0x28] sm:$0xff]  ;;  %v4326_v25 = vmov 3   ;;  %s2488_s7 = smov 127  }
   0xd   : > { %s4631_s16 = smov (!%p188_p3, %s2296_s16), 1  ;;  %v2567_v17 = vld [vmem:[%s4323_s2 + $0x30] sm:$0xff]  ;;  %v2572_v18 = vld [vmem:[%s4323_s2 + $0x8] sm:$0xff]  ;;  %v2579_v19 = vld [vmem:[%s4323_s2 + $0x40] sm:$0xff]  ;;  %2414 = vset.pattern.permute.xlu1 %v4326_v25  ;;  %2415 = vset.pattern.permute.xlu0 %v4326_v25 }
   0xe   : > { %s2387_s22 = sshll.u32 %s4631_s16, 5  ;;  %1587 = vrot.lane.b32.xlu2 %v2572_v18, %s2485_s19  ;;  %v2588_v20 = vld [vmem:[%s4323_s2 + $0x48] sm:$0xff]  ;;  %v2596_v22 = vld [vmem:[%s4323_s2 + $0x58] sm:$0xff]  ;;  %v2609_v23 = vld [vmem:[%s4323_s2 + $0x20] sm:$0xff] }
   0xf   : > { %s192_s25 = scalar_lea.vmem %s4321_s0, %s2387_s22  ;;  %v2394_v21 = vld [vmem:[%s4322_s1 + $0x8] sm:$0xff]  ;;  %v2614_v24 = vld [vmem:[%s4323_s2 + $0x60] sm:$0xff]  ;;  %v2622_v26 = vld [vmem:[%s4323_s2 + $0x70] sm:$0xff]  ;;  %2416 = vset.pattern.permute.xlu2 %v4326_v25 }
  0x10   : > { %v2339_v3 = vld [vmem:[%s192_s25] sm:$0xf]  ;;  %v2391_v4 = vld [vmem:[%s192_s25 + $0xc] sm:$0xf0]  ;;  %v2389_v5 = vld [vmem:[%s192_s25 + $0x4] sm:$0xf] }
  0x11   : > { %v2340_v7 = vor.u32 %v2391_v4, %v2339_v3  ;;  %v2341_v8 = vld [vmem:[%s192_s25 + $0x10] sm:$0xf0]  ;;  %v2347_v9 = vld [vmem:[%s192_s25 + $0x8] sm:$0xf]  ;;  %v2392_v10 = vld [vmem:[%s192_s25 + $0x14] sm:$0xf0] }
  0x12   : > { %v2344_v11 = vor.u32 %v2389_v5, %v2341_v8  ;;  %v2348_v12 = vor.u32 %v2392_v10, %v2347_v9  ;;  %v2390_v13 = vld [vmem:[%s192_s25 + $0xc] sm:$0xf]  ;;  %v2349_v14 = vld [vmem:[%s192_s25 + $0x18] sm:$0xf0]  ;;  %v2395_v29 = vld [vmem:[%s4322_s1 + $0x10] sm:$0xff] }
  0x13   : > { %311 = vmatpush.bf16.msra.mxu0 %v2340_v7  ;;  %v2352_v16 = vor.u32 %v2390_v13, %v2349_v14  ;;  %v2633_v27 = vld [vmem:[%s4323_s2 + $0x38] sm:$0xff]  ;;  %v2655_v30 = vld [vmem:[%s4323_s2 + $0x50] sm:$0xff]  ;;  %v2664_v31 = vld [vmem:[%s4323_s2 + $0x68] sm:$0xff] }
  0x14   : > { %1591 = vrot.lane.b32.xlu0 %v2546_v2, %s2485_s19  ;;  %360 = vmatpush.bf16.msra.mxu1 %v2344_v11  ;;  %v2638_v28 = vld [vmem:[%s4323_s2 + $0x78] sm:$0xff]  ;;  %v2397_v33 = vld [vmem:[%s4322_s1 + $0x20] sm:$0xff]  ;;  %v2398_v34 = vld [vmem:[%s4322_s1 + $0x28] sm:$0xff] }
  0x15   : > { %409 = vmatpush.bf16.msra.mxu2 %v2348_v12  ;;  %458 = vmatpush.bf16.msra.mxu3 %v2352_v16  ;;  %v2396_v32 = vld [vmem:[%s4322_s1 + $0x18] sm:$0xff]  ;;  %v2399_v35 = vld [vmem:[%s4322_s1 + $0x30] sm:$0xff] }
  0x16   : > { %1595 = vrot.lane.b32.xlu1 %v2554_v15, %s2485_s19  ;;  %2353 = vmatmul.msk.bf16.vlgmr.msra.gmra.mxu0 %vm279_vm0, %v2393_v6  ;;  %v2400_v36 = vld [vmem:[%s4322_s1 + $0x38] sm:$0xff] }
  0x17   : > { %2361 = vmatmul.msk.bf16.vlgmr.msra.gmra.mxu1 %vm279_vm0, %v2393_v6  ;;  %1593 = vrot.lane.b32.xlu2 %v2609_v23, %s2485_s19 }
  0x18   : > { %2369 = vmatmul.msk.bf16.vlgmr.msra.gmra.mxu2 %vm279_vm0, %v2393_v6  ;;  %2377 = vmatmul.msk.bf16.vlgmr.msra.gmra.mxu3 %vm279_vm0, %v2393_v6 }
  0x1c   : > { %1597 = vrot.lane.b32.xlu0 %v2567_v17, %s2485_s19 }
  0x1e   : > { %1601 = vrot.lane.b32.xlu1 %v2579_v19, %s2485_s19 }
  0x1f   : > { %1599 = vrot.lane.b32.xlu2 %v2633_v27, %s2485_s19 }
  0x24   : > { %1603 = vrot.lane.b32.xlu0 %v2588_v20, %s2485_s19 }
  0x26   : > { %1607 = vrot.lane.b32.xlu1 %v2596_v22, %s2485_s19  ;;  %2354 = vmatmul.msk.bf16.gmra.mxu0 %vm279_vm0, %v2394_v21 }
  0x27   : > { %2362 = vmatmul.msk.bf16.gmra.mxu1 %vm279_vm0, %v2394_v21  ;;  %1605 = vrot.lane.b32.xlu2 %v2655_v30, %s2485_s19 }
  0x28   : > { %2370 = vmatmul.msk.bf16.gmra.mxu2 %vm279_vm0, %v2394_v21  ;;  %2378 = vmatmul.msk.bf16.gmra.mxu3 %vm279_vm0, %v2394_v21 }
  0x2c   : > { %1609 = vrot.lane.b32.xlu0 %v2614_v24, %s2485_s19 }
  0x2e   : > { %1613 = vrot.lane.b32.xlu1 %v2622_v26, %s2485_s19 }
  0x2f   : > { %1611 = vrot.lane.b32.xlu2 %v2664_v31, %s2485_s19 }
  0x34   : > { %1615 = vrot.lane.b32.xlu0 %v2638_v28, %s2485_s19 }
  0x36   : > { %1986 = vperm.xlu1 %2414, %v2526_v0   ;;  %2355 = vmatmul.msk.bf16.gmra.mxu0 %vm279_vm0, %v2395_v29 }
  0x37   : > { %2363 = vmatmul.msk.bf16.gmra.mxu1 %vm279_vm0, %v2395_v29  ;;  %1994 = vperm.xlu2 %2416, %v2533_v1  }
  0x38   : > { %2371 = vmatmul.msk.bf16.gmra.mxu2 %vm279_vm0, %v2395_v29  ;;  %2379 = vmatmul.msk.bf16.gmra.mxu3 %vm279_vm0, %v2395_v29 }
  0x3c   : > { %1990 = vperm.xlu0 %2415, %v2572_v18  }
  0x3e   : > { %1998 = vperm.xlu1 %2414, %v2546_v2  }
  0x3f   : > { %2002 = vperm.xlu2 %2416, %v2609_v23  }
  0x44   : > { %2010 = vperm.xlu0 %2415, %v2567_v17  }
  0x46   : > { %2006 = vperm.xlu1 %2414, %v2554_v15   ;;  %2356 = vmatmul.msk.bf16.gmra.mxu0 %vm279_vm0, %v2396_v32 }
  0x47   : > { %2364 = vmatmul.msk.bf16.gmra.mxu1 %vm279_vm0, %v2396_v32  ;;  %2014 = vperm.xlu2 %2416, %v2633_v27  }
  0x48   : > { %2372 = vmatmul.msk.bf16.gmra.mxu2 %vm279_vm0, %v2396_v32  ;;  %2380 = vmatmul.msk.bf16.gmra.mxu3 %vm279_vm0, %v2396_v32 }
  0x4c   : > { %2022 = vperm.xlu0 %2415, %v2588_v20  }
  0x4e   : > { %2018 = vperm.xlu1 %2414, %v2579_v19  }
  0x4f   : > { %2026 = vperm.xlu2 %2416, %v2655_v30  }
  0x54   : > { %2034 = vperm.xlu0 %2415, %v2614_v24  }
  0x56   : > { %2030 = vperm.xlu1 %2414, %v2596_v22   ;;  %2357 = vmatmul.msk.bf16.gmra.mxu0 %vm279_vm0, %v2397_v33 }
  0x57   : > { %2365 = vmatmul.msk.bf16.gmra.mxu1 %vm279_vm0, %v2397_v33 }
  0x58   : > { %2373 = vmatmul.msk.bf16.gmra.mxu2 %vm279_vm0, %v2397_v33  ;;  %2381 = vmatmul.msk.bf16.gmra.mxu3 %vm279_vm0, %v2397_v33 }
  0x66   : > { %2358 = vmatmul.msk.bf16.gmra.mxu0 %vm279_vm0, %v2398_v34 }
  0x67   : > { %2366 = vmatmul.msk.bf16.gmra.mxu1 %vm279_vm0, %v2398_v34 }
  0x68   : > { %2374 = vmatmul.msk.bf16.gmra.mxu2 %vm279_vm0, %v2398_v34  ;;  %2382 = vmatmul.msk.bf16.gmra.mxu3 %vm279_vm0, %v2398_v34  ;;  %v2873_v25 = vpop.permute.xlu2 %1587 }
  0x76   : > { %2359 = vmatmul.msk.bf16.gmra.mxu0 %vm279_vm0, %v2399_v35 }
  0x77   : > { %2367 = vmatmul.msk.bf16.gmra.mxu1 %vm279_vm0, %v2399_v35 }
  0x78   : > { %2375 = vmatmul.msk.bf16.gmra.mxu2 %vm279_vm0, %v2399_v35  ;;  %2383 = vmatmul.msk.bf16.gmra.mxu3 %vm279_vm0, %v2399_v35 }
  0x86   : > { %2360 = vmatmul.msk.bf16.gmra.mxu0 %vm279_vm0, %v2400_v36 }
  0x87   : > { %2368 = vmatmul.msk.bf16.gmra.mxu1 %vm279_vm0, %v2400_v36 }
  0x88   : > { %2376 = vmatmul.msk.bf16.gmra.mxu2 %vm279_vm0, %v2400_v36  ;;  %2384 = vmatmul.msk.bf16.gmra.mxu3 %vm279_vm0, %v2400_v36 }
  0x93   : > { %v2713_v37 = vpop.f32.mrf.mxu0 }
  0x94   : > { %4414 = vst [vmem:[#allocation2_spill] sm:$0xff] %v2713_v37  ;;  %v2715_v38 = vpop.f32.mrf.mxu1  ;;  %v596_v39 = vmul.f32 %v2713_v37, %v2713_v37 }
  0x95   : > { %4415 = vst [vmem:[#allocation3_spill] sm:$0xff] %v2715_v38  ;;  %v597_v40 = vmul.f32 %v2715_v38, %v2715_v38  ;;  %v516_v41 = vadd.f32 %v2715_v38, %v2713_v37 }
  0x97   : > { %v660_v42 = vadd.f32 %v597_v40, %v596_v39 }
  0x9b   : > { %v2723_v43 = vpop.f32.mrf.mxu2  ;;  %v2727_v45 = vpop.f32.mrf.mxu3 }
  0x9c   : > { %4416 = vst [vmem:[#allocation4_spill] sm:$0xff] %v2723_v43  ;;  %v598_v44 = vmul.f32 %v2723_v43, %v2723_v43  ;;  %v2729_v46 = vpop.f32.mrf.mxu0  ;;  %v517_v47 = vadd.f32 %v516_v41, %v2723_v43  ;;  %v2732_v48 = vpop.f32.mrf.mxu1  ;;  %v599_v49 = vmul.f32 %v2727_v45, %v2727_v45  ;;  %v743_v43 = vmul.f32 512.0, %v2546_v2 }
  0x9d   : > { %4417 = vst [vmem:[#allocation5_spill] sm:$0xff] %v2727_v45  ;;  %v600_v52 = vmul.f32 %v2729_v46, %v2729_v46  ;;  %v601_v53 = vmul.f32 %v2732_v48, %v2732_v48  ;;  %v521_v55 = vadd.f32 %v2732_v48, %v2729_v46 }
  0x9e   : > { %4418 = vst [vmem:[#allocation6_spill] sm:$0xff] %v2729_v46  ;;  %v518_v50 = vadd.f32 %v517_v47, %v2727_v45  ;;  %v661_v51 = vadd.f32 %v660_v42, %v598_v44  ;;  %v2790_v44 = vpop.permute.xlu0 %1585 }
  0x9f   : > { %4419 = vst [vmem:[#allocation7_spill] sm:$0xff] %v2732_v48  ;;  %v665_v61 = vadd.f32 %v601_v53, %v600_v52 }
  0xa0   : > { %519 = vadd.xlane.f32.xlu0 %v518_v50  ;;  %v662_v54 = vadd.f32 %v661_v51, %v599_v49 }
  0xa2   : > { %663 = vadd.xlane.f32.xlu1 %v662_v54 }
  0xa3   : > { %v2743_v56 = vpop.f32.mrf.mxu2  ;;  %v2747_v58 = vpop.f32.mrf.mxu3 }
  0xa4   : > { %4420 = vst [vmem:[#allocation8_spill] sm:$0xff] %v2743_v56  ;;  %v602_v57 = vmul.f32 %v2743_v56, %v2743_v56  ;;  %v2749_v59 = vpop.f32.mrf.mxu0  ;;  %v522_v60 = vadd.f32 %v521_v55, %v2743_v56  ;;  %v2754_v63 = vpop.f32.mrf.mxu1  ;;  %v603_v5 = vmul.f32 %v2747_v58, %v2747_v58 }
  0xa5   : > { %4421 = vst [vmem:[#allocation9_spill] sm:$0xff] %v2747_v58  ;;  %v604_v62 = vmul.f32 %v2749_v59, %v2749_v59  ;;  %v605_v3 = vmul.f32 %v2754_v63, %v2754_v63  ;;  %v526_v7 = vadd.f32 %v2754_v63, %v2749_v59 }
  0xa6   : > { %4422 = vst [vmem:[#allocation10_spill] sm:$0xff] %v2749_v59  ;;  %v523_v4 = vadd.f32 %v522_v60, %v2747_v58  ;;  %v666_v6 = vadd.f32 %v665_v61, %v602_v57  ;;  %v2803_v57 = vpop.permute.xlu1 %1589 }
  0xa7   : > { %4423 = vst [vmem:[#allocation11_spill] sm:$0xff] %v2754_v63  ;;  %v670_v9 = vadd.f32 %v605_v3, %v604_v62 }
  0xa8   : > { %524 = vadd.xlane.f32.xlu0 %v523_v4  ;;  %v667_v8 = vadd.f32 %v666_v6, %v603_v5 }
  0xaa   : > { %668 = vadd.xlane.f32.xlu2 %v667_v8 }
  0xab   : > { %v2763_v10 = vpop.f32.mrf.mxu2  ;;  %v2767_v12 = vpop.f32.mrf.mxu3 }
  0xac   : > { %4424 = vst [vmem:[#allocation12_spill] sm:$0xff] %v2763_v10  ;;  %v606_v11 = vmul.f32 %v2763_v10, %v2763_v10  ;;  %v2769_v13 = vpop.f32.mrf.mxu0  ;;  %v527_v14 = vadd.f32 %v526_v7, %v2763_v10  ;;  %v2772_v16 = vpop.f32.mrf.mxu1  ;;  %v607_v21 = vmul.f32 %v2767_v12, %v2767_v12 }
  0xad   : > { %4425 = vst [vmem:[#allocation13_spill] sm:$0xff] %v2767_v12  ;;  %v531_v34 = vadd.f32 %v2772_v16, %v2769_v13  ;;  %v608_v36 = vmul.f32 %v2769_v13, %v2769_v13  ;;  %v609_v39 = vmul.f32 %v2772_v16, %v2772_v16 }
  0xae   : > { %4426 = vst [vmem:[#allocation14_spill] sm:$0xff] %v2769_v13  ;;  %v528_v29 = vadd.f32 %v527_v14, %v2767_v12  ;;  %v671_v32 = vadd.f32 %v670_v9, %v606_v11  ;;  %v2819_v11 = vpop.permute.xlu0 %1591 }
  0xaf   : > { %4427 = vst [vmem:[#allocation15_spill] sm:$0xff] %v2772_v16  ;;  %v675_v52 = vadd.f32 %v609_v39, %v608_v36 }
  0xb0   : > { %529 = vadd.xlane.f32.xlu1 %v528_v29  ;;  %v672_v33 = vadd.f32 %v671_v32, %v607_v21 }
  0xb2   : > { %673 = vadd.xlane.f32.xlu0 %v672_v33 }
  0xb3   : > { %v2779_v35 = vpop.f32.mrf.mxu2  ;;  %v2785_v40 = vpop.f32.mrf.mxu3 }
  0xb4   : > { %4428 = vst [vmem:[#allocation16_spill] sm:$0xff] %v2779_v35  ;;  %v2787_v41 = vpop.f32.mrf.mxu0  ;;  %v532_v42 = vadd.f32 %v531_v34, %v2779_v35  ;;  %v2792_v47 = vpop.f32.mrf.mxu1  ;;  %v610_v49 = vmul.f32 %v2779_v35, %v2779_v35  ;;  %v611_v3 = vmul.f32 %v2785_v40, %v2785_v40 }
  0xb5   : > { %4429 = vst [vmem:[#allocation17_spill] sm:$0xff] %v2785_v40  ;;  %v536_v51 = vadd.f32 %v2792_v47, %v2787_v41  ;;  %v612_v53 = vmul.f32 %v2787_v41, %v2787_v41  ;;  %v613_v54 = vmul.f32 %v2792_v47, %v2792_v47 }
  0xb6   : > { %4430 = vst [vmem:[#allocation18_spill] sm:$0xff] %v2787_v41  ;;  %v533_v50 = vadd.f32 %v532_v42, %v2785_v40  ;;  %v676_v55 = vadd.f32 %v675_v52, %v610_v49  ;;  %v2835_v49 = vpop.permute.xlu1 %1595 }
  0xb7   : > { %4431 = vst [vmem:[#allocation19_spill] sm:$0xff] %v2792_v47  ;;  %v680_v7 = vadd.f32 %v613_v54, %v612_v53  ;;  %v2901_v47 = vpop.permute.xlu2 %1593 }
  0xb8   : > { %534 = vadd.xlane.f32.xlu1 %v533_v50  ;;  %v677_v8 = vadd.f32 %v676_v55, %v611_v3 }
  0xbb   : > { %v2805_v60 = vpop.f32.mrf.mxu2  ;;  %v2807_v61 = vpop.f32.mrf.mxu3 }
  0xbc   : > { %4432 = vst [vmem:[#allocation20_spill] sm:$0xff] %v2805_v60  ;;  %v2809_v62 = vpop.f32.mrf.mxu0  ;;  %v537_v4 = vadd.f32 %v536_v51, %v2805_v60  ;;  %v614_v5 = vmul.f32 %v2805_v60, %v2805_v60  ;;  %v2816_v6 = vpop.f32.mrf.mxu1  ;;  %v615_v29 = vmul.f32 %v2807_v61, %v2807_v61 }
  0xbd   : > { %4433 = vst [vmem:[#allocation21_spill] sm:$0xff] %v2807_v61  ;;  %v616_v14 = vmul.f32 %v2809_v62, %v2809_v62  ;;  %v617_v21 = vmul.f32 %v2816_v6, %v2816_v6  ;;  %v541_v3 = vadd.f32 %v2816_v6, %v2809_v62 }
  0xbe   : > { %4434 = vst [vmem:[#allocation22_spill] sm:$0xff] %v2809_v62  ;;  %v538_v9 = vadd.f32 %v537_v4, %v2807_v61  ;;  %v681_v32 = vadd.f32 %v680_v7, %v614_v5  ;;  %v2849_v7 = vpop.permute.xlu0 %1597 }
  0xbf   : > { %4435 = vst [vmem:[#allocation23_spill] sm:$0xff] %v2816_v6  ;;  %v685_v42 = vadd.f32 %v617_v21, %v616_v14 }
  0xc0   : > { %678 = vadd.xlane.f32.xlu1 %v677_v8  ;;  %539 = vadd.xlane.f32.xlu2 %v538_v9  ;;  %v682_v51 = vadd.f32 %v681_v32, %v615_v29 }
  0xc3   : > { %v2827_v33 = vpop.f32.mrf.mxu2  ;;  %v2831_v36 = vpop.f32.mrf.mxu3 }
  0xc4   : > { %4436 = vst [vmem:[#allocation24_spill] sm:$0xff] %v2827_v33  ;;  %v618_v34 = vmul.f32 %v2827_v33, %v2827_v33  ;;  %v2833_v39 = vpop.f32.mrf.mxu0  ;;  %v2837_v50 = vpop.f32.mrf.mxu1  ;;  %v619_v54 = vmul.f32 %v2831_v36, %v2831_v36  ;;  %v542_v8 = vadd.f32 %v541_v3, %v2827_v33 }
  0xc5   : > { %4437 = vst [vmem:[#allocation25_spill] sm:$0xff] %v2831_v36  ;;  %v620_v52 = vmul.f32 %v2833_v39, %v2833_v39  ;;  %v621_v53 = vmul.f32 %v2837_v50, %v2837_v50  ;;  %v546_v4 = vadd.f32 %v2837_v50, %v2833_v39 }
  0xc6   : > { %4438 = vst [vmem:[#allocation26_spill] sm:$0xff] %v2833_v39  ;;  %v686_v55 = vadd.f32 %v685_v42, %v618_v34 }
  0xc7   : > { %4439 = vst [vmem:[#allocation27_spill] sm:$0xff] %v2837_v50  ;;  %v690_v9 = vadd.f32 %v621_v53, %v620_v52  ;;  %v2866_v52 = vpop.permute.xlu1 %1601 }
  0xc8   : > { %683 = vadd.xlane.f32.xlu2 %v682_v51  ;;  %v687_v5 = vadd.f32 %v686_v55, %v619_v54  ;;  %v543_v54 = vadd.f32 %v542_v8, %v2831_v36  ;;  %v2877_v8 = vpop.permute.xlu0 %1603 }
  0xc9   : > { %4444 = vst [vmem:[#allocation32_spill] sm:$0xff] %v2877_v8 }
  0xca   : > { %688 = vadd.xlane.f32.xlu0 %v687_v5 }
  0xcb   : > { %v2852_v14 = vpop.f32.mrf.mxu2  ;;  %v2856_v29 = vpop.f32.mrf.mxu3 }
  0xcc   : > { %4440 = vst [vmem:[#allocation28_spill] sm:$0xff] %v2852_v14  ;;  %v622_v21 = vmul.f32 %v2852_v14, %v2852_v14  ;;  %v2858_v32 = vpop.f32.mrf.mxu0  ;;  %v547_v34 = vadd.f32 %v546_v4, %v2852_v14  ;;  %v2861_v42 = vpop.f32.mrf.mxu1  ;;  %v623_v51 = vmul.f32 %v2856_v29, %v2856_v29 }
  0xcd   : > { %4441 = vst [vmem:[#allocation29_spill] sm:$0xff] %v2856_v29  ;;  %v624_v53 = vmul.f32 %v2858_v32, %v2858_v32  ;;  %v625_v3 = vmul.f32 %v2861_v42, %v2861_v42  ;;  %v551_v14 = vadd.f32 %v2861_v42, %v2858_v32 }
  0xce   : > { %4442 = vst [vmem:[#allocation30_spill] sm:$0xff] %v2858_v32  ;;  %v691_v55 = vadd.f32 %v690_v9, %v622_v21  ;;  %v548_v4 = vadd.f32 %v547_v34, %v2856_v29 }
  0xcf   : > { %4443 = vst [vmem:[#allocation31_spill] sm:$0xff] %v2861_v42 }
  0xd0   : > { %544 = vadd.xlane.f32.xlu2 %v543_v54  ;;  %v692_v5 = vadd.f32 %v691_v55, %v623_v51  ;;  %v695_v51 = vadd.f32 %v625_v3, %v624_v53  ;;  %v2899_v3 = vpop.permute.xlu1 %1607 }
  0xd1   : > { %4449 = vst [vmem:[#allocation37_spill] sm:$0xff] %v2899_v3 }
  0xd2   : > { %693 = vadd.xlane.f32.xlu1 %v692_v5  ;;  %549 = vadd.xlane.f32.xlu0 %v548_v4 }
  0xd3   : > { %v2879_v9 = vpop.f32.mrf.mxu2  ;;  %v2883_v50 = vpop.f32.mrf.mxu3 }
  0xd4   : > { %4445 = vst [vmem:[#allocation33_spill] sm:$0xff] %v2879_v9  ;;  %v626_v21 = vmul.f32 %v2879_v9, %v2879_v9  ;;  %v2885_v54 = vpop.f32.mrf.mxu0  ;;  %v552_v34 = vadd.f32 %v551_v14, %v2879_v9  ;;  %v2888_v55 = vpop.f32.mrf.mxu1  ;;  %v627_v29 = vmul.f32 %v2883_v50, %v2883_v50 }
  0xd5   : > { %4446 = vst [vmem:[#allocation34_spill] sm:$0xff] %v2883_v50  ;;  %v628_v5 = vmul.f32 %v2885_v54, %v2885_v54  ;;  %v629_v4 = vmul.f32 %v2888_v55, %v2888_v55  ;;  %v556_v61 = vadd.f32 %v2888_v55, %v2885_v54 }
  0xd6   : > { %4447 = vst [vmem:[#allocation35_spill] sm:$0xff] %v2885_v54  ;;  %v696_v39 = vadd.f32 %v695_v51, %v626_v21  ;;  %v553_v53 = vadd.f32 %v552_v34, %v2883_v50 }
  0xd7   : > { %4448 = vst [vmem:[#allocation36_spill] sm:$0xff] %v2888_v55  ;;  %v700_v14 = vadd.f32 %v629_v4, %v628_v5 }
  0xd8   : > { %v697_v60 = vadd.f32 %v696_v39, %v627_v29  ;;  %v2912_v29 = vpop.permute.xlu0 %1609  ;;  %v2925_v32 = vpop.permute.xlu1 %1613 }
  0xd9   : > { %4453 = vst [vmem:[#allocation41_spill] sm:$0xff] %v2912_v29 }
  0xda   : > { %698 = vadd.xlane.f32.xlu2 %v697_v60  ;;  %554 = vadd.xlane.f32.xlu1 %v553_v53  ;;  %4455 = vst [vmem:[#allocation43_spill] sm:$0xff] %v2925_v32 }
  0xdb   : > { %v2903_v41 = vpop.f32.mrf.mxu2  ;;  %v2907_v42 = vpop.f32.mrf.mxu3 }
  0xdc   : > { %4450 = vst [vmem:[#allocation38_spill] sm:$0xff] %v2903_v41  ;;  %v630_v9 = vmul.f32 %v2903_v41, %v2903_v41  ;;  %v2909_v21 = vpop.f32.mrf.mxu0  ;;  %v557_v39 = vadd.f32 %v556_v61, %v2903_v41  ;;  %v2914_v51 = vpop.f32.mrf.mxu1  ;;  %v631_v60 = vmul.f32 %v2907_v42, %v2907_v42 }
  0xdd   : > { %4451 = vst [vmem:[#allocation39_spill] sm:$0xff] %v2907_v42  ;;  %v632_v5 = vmul.f32 %v2909_v21, %v2909_v21  ;;  %v633_v4 = vmul.f32 %v2914_v51, %v2914_v51  ;;  %v561_v61 = vadd.f32 %v2914_v51, %v2909_v21 }
  0xde   : > { %4452 = vst [vmem:[#allocation40_spill] sm:$0xff] %v2909_v21  ;;  %v701_v34 = vadd.f32 %v700_v14, %v630_v9  ;;  %v558_v50 = vadd.f32 %v557_v39, %v2907_v42  ;;  %v2936_v39 = vpop.permute.xlu2 %1599 }
  0xdf   : > { %4454 = vst [vmem:[#allocation42_spill] sm:$0xff] %v2914_v51  ;;  %v705_v54 = vadd.f32 %v633_v4, %v632_v5 }
  0xe0   : > { %v702_v53 = vadd.f32 %v701_v34, %v631_v60  ;;  %v2946_v42 = vpop.permute.xlu0 %1615 }
  0xe1   : > { %4460 = vst [vmem:[#allocation48_spill] sm:$0xff] %v2946_v42 }
  0xe2   : > { %703 = vadd.xlane.f32.xlu0 %v702_v53  ;;  %559 = vadd.xlane.f32.xlu2 %v558_v50 }
  0xe3   : > { %v2927_v41 = vpop.f32.mrf.mxu2  ;;  %v2931_v14 = vpop.f32.mrf.mxu3 }
  0xe4   : > { %4456 = vst [vmem:[#allocation44_spill] sm:$0xff] %v2927_v41  ;;  %v634_v9 = vmul.f32 %v2927_v41, %v2927_v41  ;;  %v2933_v55 = vpop.f32.mrf.mxu0  ;;  %v562_v60 = vadd.f32 %v561_v61, %v2927_v41  ;;  %v2938_v34 = vpop.f32.mrf.mxu1  ;;  %v635_v51 = vmul.f32 %v2931_v14, %v2931_v14 }
  0xe5   : > { %4457 = vst [vmem:[#allocation45_spill] sm:$0xff] %v2931_v14  ;;  %v636_v50 = vmul.f32 %v2933_v55, %v2933_v55  ;;  %v637_v53 = vmul.f32 %v2938_v34, %v2938_v34  ;;  %v566_v5 = vadd.f32 %v2938_v34, %v2933_v55 }
  0xe6   : > { %4458 = vst [vmem:[#allocation46_spill] sm:$0xff] %v2933_v55  ;;  %v706_v21 = vadd.f32 %v705_v54, %v634_v9  ;;  %v563_v61 = vadd.f32 %v562_v60, %v2931_v14  ;;  %v2960_v9 = vpop.permute.xlu1 %1986  ;;  %v2966_v60 = vpop.permute.xlu2 %1605 }
  0xe7   : > { %4459 = vst [vmem:[#allocation47_spill] sm:$0xff] %v2938_v34  ;;  %v710_v41 = vadd.f32 %v637_v53, %v636_v50 }
  0xe8   : > { %v707_v4 = vadd.f32 %v706_v21, %v635_v51  ;;  %4464 = vst [vmem:[#allocation52_spill] sm:$0xff] %v2960_v9 }
  0xe9   : > { %4466 = vst [vmem:[#allocation54_spill] sm:$0xff] %v2966_v60 }
  0xea   : > { %708 = vadd.xlane.f32.xlu1 %v707_v4  ;;  %564 = vadd.xlane.f32.xlu0 %v563_v61 }
  0xeb   : > { %v2951_v12 = vpop.f32.mrf.mxu2  ;;  %v2955_v63 = vpop.f32.mrf.mxu3 }
  0xec   : > { %4461 = vst [vmem:[#allocation49_spill] sm:$0xff] %v2951_v12  ;;  %v638_v10 = vmul.f32 %v2951_v12, %v2951_v12  ;;  %v2957_v59 = vpop.f32.mrf.mxu0  ;;  %v567_v54 = vadd.f32 %v566_v5, %v2951_v12  ;;  %v2962_v34 = vpop.f32.mrf.mxu1  ;;  %v639_v21 = vmul.f32 %v2955_v63, %v2955_v63 }
  0xed   : > { %4462 = vst [vmem:[#allocation50_spill] sm:$0xff] %v2955_v63  ;;  %v640_v50 = vmul.f32 %v2957_v59, %v2957_v59  ;;  %v641_v53 = vmul.f32 %v2962_v34, %v2962_v34  ;;  %v2973_v5 = vpop.permute.xlu0 %1990  ;;  %v571_v9 = vadd.f32 %v2962_v34, %v2957_v59 }
  0xee   : > { %4463 = vst [vmem:[#allocation51_spill] sm:$0xff] %v2957_v59  ;;  %v711_v51 = vadd.f32 %v710_v41, %v638_v10  ;;  %v568_v61 = vadd.f32 %v567_v54, %v2955_v63 }
  0xef   : > { %4465 = vst [vmem:[#allocation53_spill] sm:$0xff] %v2962_v34  ;;  %v715_v55 = vadd.f32 %v641_v53, %v640_v50  ;;  %v2994_v34 = vpop.permute.xlu1 %1998  ;;  %v2999_v53 = vpop.permute.xlu2 %1611 }
  0xf0   : > { %v712_v4 = vadd.f32 %v711_v51, %v639_v21  ;;  %4467 = vst [vmem:[#allocation55_spill] sm:$0xff] %v2973_v5 }
  0xf1   : > { %4472 = vst [vmem:[#allocation60_spill] sm:$0xff] %v2994_v34 }
  0xf2   : > { %713 = vadd.xlane.f32.xlu2 %v712_v4  ;;  %569 = vadd.xlane.f32.xlu1 %v568_v61  ;;  %4473 = vst [vmem:[#allocation61_spill] sm:$0xff] %v2999_v53 }
  0xf3   : > { %v2977_v14 = vpop.f32.mrf.mxu2  ;;  %v2981_v41 = vpop.f32.mrf.mxu3 }
  0xf4   : > { %4468 = vst [vmem:[#allocation56_spill] sm:$0xff] %v2977_v14  ;;  %v642_v10 = vmul.f32 %v2977_v14, %v2977_v14  ;;  %v2983_v12 = vpop.f32.mrf.mxu0  ;;  %v572_v21 = vadd.f32 %v571_v9, %v2977_v14  ;;  %v2986_v54 = vpop.f32.mrf.mxu1  ;;  %v643_v61 = vmul.f32 %v2981_v41, %v2981_v41 }
  0xf5   : > { %4469 = vst [vmem:[#allocation57_spill] sm:$0xff] %v2981_v41  ;;  %v644_v51 = vmul.f32 %v2983_v12, %v2983_v12  ;;  %v645_v4 = vmul.f32 %v2986_v54, %v2986_v54  ;;  %v576_v59 = vadd.f32 %v2986_v54, %v2983_v12  ;;  %v3001_v36 = vpop.permute.xlu0 %2010 }
  0xf6   : > { %4470 = vst [vmem:[#allocation58_spill] sm:$0xff] %v2983_v12  ;;  %v716_v63 = vadd.f32 %v715_v55, %v642_v10  ;;  %v573_v9 = vadd.f32 %v572_v21, %v2981_v41 }
  0xf7   : > { %4471 = vst [vmem:[#allocation59_spill] sm:$0xff] %v2986_v54  ;;  %v720_v14 = vadd.f32 %v645_v4, %v644_v51  ;;  %v3021_v12 = vpop.permute.xlu1 %2006 }
  0xf8   : > { %v717_v50 = vadd.f32 %v716_v63, %v643_v61  ;;  %4474 = vst [vmem:[#allocation62_spill] sm:$0xff] %v3001_v36 }
  0xf9   : > { %4479 = vst [vmem:[#allocation67_spill] sm:$0xff] %v3021_v12 }
  0xfa   : > { %718 = vadd.xlane.f32.xlu0 %v717_v50  ;;  %574 = vadd.xlane.f32.xlu2 %v573_v9 }
  0xfb   : > { %v3003_v33 = vpop.f32.mrf.mxu2  ;;  %v3007_v10 = vpop.f32.mrf.mxu3 }
  0xfc   : > { %4475 = vst [vmem:[#allocation63_spill] sm:$0xff] %v3003_v33  ;;  %v646_v55 = vmul.f32 %v3003_v33, %v3003_v33  ;;  %v3009_v34 = vpop.f32.mrf.mxu0  ;;  %v577_v63 = vadd.f32 %v576_v59, %v3003_v33  ;;  %v3012_v61 = vpop.f32.mrf.mxu1  ;;  %v647_v21 = vmul.f32 %v3007_v10, %v3007_v10 }
  0xfd   : > { %4476 = vst [vmem:[#allocation64_spill] sm:$0xff] %v3007_v10  ;;  %v648_v51 = vmul.f32 %v3009_v34, %v3009_v34  ;;  %v649_v4 = vmul.f32 %v3012_v61, %v3012_v61  ;;  %v581_v59 = vadd.f32 %v3012_v61, %v3009_v34  ;;  %v3025_v33 = vpop.permute.xlu2 %1994 }
  0xfe   : > { %4477 = vst [vmem:[#allocation65_spill] sm:$0xff] %v3009_v34  ;;  %v721_v50 = vadd.f32 %v720_v14, %v646_v55  ;;  %v578_v54 = vadd.f32 %v577_v63, %v3007_v10 }
  0xff   : > { %4478 = vst [vmem:[#allocation66_spill] sm:$0xff] %v3012_v61 }
 0x100   : > { %v722_v9 = vadd.f32 %v721_v50, %v647_v21  ;;  %4480 = vst [vmem:[#allocation68_spill] sm:$0xff] %v3025_v33  ;;  %v725_v21 = vadd.f32 %v649_v4, %v648_v51  ;;  %v3036_v50 = vpop.permute.xlu0 %2022 }
 0x101   : > { %4484 = vst [vmem:[#allocation72_spill] sm:$0xff] %v3036_v50  ;;  %v3051_v50 = vpop.permute.xlu1 %2018 }
 0x102   : > { %723 = vadd.xlane.f32.xlu1 %v722_v9  ;;  %579 = vadd.xlane.f32.xlu0 %v578_v54  ;;  %4486 = vst [vmem:[#allocation74_spill] sm:$0xff] %v3051_v50 }
 0x103   : > { %v3027_v36 = vpop.f32.mrf.mxu2  ;;  %v3031_v55 = vpop.f32.mrf.mxu3 }
 0x104   : > { %4481 = vst [vmem:[#allocation69_spill] sm:$0xff] %v3027_v36  ;;  %v650_v14 = vmul.f32 %v3027_v36, %v3027_v36  ;;  %v3033_v41 = vpop.f32.mrf.mxu0  ;;  %v582_v63 = vadd.f32 %v581_v59, %v3027_v36  ;;  %v3038_v12 = vpop.f32.mrf.mxu1  ;;  %v651_v61 = vmul.f32 %v3031_v55, %v3031_v55  ;;  %v4375_v59 = vmov 0  }
 0x105   : > { %4482 = vst [vmem:[#allocation70_spill] sm:$0xff] %v3031_v55  ;;  %v652_v54 = vmul.f32 %v3033_v41, %v3033_v41  ;;  %v653_v9 = vmul.f32 %v3038_v12, %v3038_v12  ;;  %v586_v10 = vadd.f32 %v3038_v12, %v3033_v41  ;;  %2417 = vset.pattern.permute.xlu2 %v4375_v59 }
 0x106   : > { %4483 = vst [vmem:[#allocation71_spill] sm:$0xff] %v3033_v41  ;;  %v726_v33 = vadd.f32 %v725_v21, %v650_v14  ;;  %v583_v4 = vadd.f32 %v582_v63, %v3031_v55  ;;  %2419 = vset.pattern.permute.xlu0 %v4375_v59  ;;  %2418 = vset.pattern.permute.xlu1 %v4375_v59 }
 0x107   : > { %4485 = vst [vmem:[#allocation73_spill] sm:$0xff] %v3038_v12  ;;  %v730_v36 = vadd.f32 %v653_v9, %v652_v54 }
 0x108   : > { %v727_v51 = vadd.f32 %v726_v33, %v651_v61  ;;  %v3070_v59 = vpop.permute.xlu0 %2034 }
 0x109   : > { %4492 = vst [vmem:[#allocation80_spill] sm:$0xff] %v3070_v59  ;;  %v3085_v59 = vpop.permute.xlu1 %2030 }
 0x10a   : > { %728 = vadd.xlane.f32.xlu2 %v727_v51  ;;  %584 = vadd.xlane.f32.xlu1 %v583_v4  ;;  %v3068_v4 = vpop.permute.xlu2 %2002  ;;  %4495 = vst [vmem:[#allocation83_spill] sm:$0xff] %v3085_v59  ;;  %v774_v59 = vmul.f32 2.0, %v2533_v1 }
 0x10b   : > { %v3053_v34 = vpop.f32.mrf.mxu2  ;;  %v3058_v33 = vpop.f32.mrf.mxu3  ;;  %4491 = vst [vmem:[#allocation79_spill] sm:$0xff] %v3068_v4 }
 0x10c   : > { %4487 = vst [vmem:[#allocation75_spill] sm:$0xff] %v3053_v34  ;;  %v654_v14 = vmul.f32 %v3053_v34, %v3053_v34  ;;  %v587_v61 = vadd.f32 %v586_v10, %v3053_v34  ;;  %v3061_v21 = vpop.f32.mrf.mxu0  ;;  %v3063_v63 = vpop.f32.mrf.mxu1  ;;  %v655_v54 = vmul.f32 %v3058_v33, %v3058_v33 }
 0x10d   : > { %4488 = vst [vmem:[#allocation76_spill] sm:$0xff] %v3058_v33  ;;  %v656_v55 = vmul.f32 %v3061_v21, %v3061_v21  ;;  %v657_v10 = vmul.f32 %v3063_v63, %v3063_v63  ;;  %v591_v34 = vadd.f32 %v3063_v63, %v3061_v21 }
 0x10e   : > { %4489 = vst [vmem:[#allocation77_spill] sm:$0xff] %v3061_v21  ;;  %v731_v9 = vadd.f32 %v730_v36, %v654_v14  ;;  %v588_v51 = vadd.f32 %v587_v61, %v3058_v33  ;;  %v772_v21 = vmul.f32 2.0, %v2526_v0 }
 0x10f   : > { %4490 = vst [vmem:[#allocation78_spill] sm:$0xff] %v3063_v63  ;;  %v735_v36 = vadd.f32 %v657_v10, %v656_v55 }
 0x110   : > { %v732_v50 = vadd.f32 %v731_v9, %v655_v54 }
 0x112   : > { %733 = vadd.xlane.f32.xlu0 %v732_v50  ;;  %589 = vadd.xlane.f32.xlu2 %v588_v51  ;;  %v3090_v51 = vpop.permute.xlu2 %2014 }
 0x113   : > { %v3078_v12 = vpop.f32.mrf.mxu2  ;;  %v3083_v4 = vpop.f32.mrf.mxu3  ;;  %4496 = vst [vmem:[#allocation84_spill] sm:$0xff] %v3090_v51 }
 0x114   : > { %4493 = vst [vmem:[#allocation81_spill] sm:$0xff] %v3078_v12  ;;  %v592_v14 = vadd.f32 %v591_v34, %v3078_v12  ;;  %v658_v61 = vmul.f32 %v3078_v12, %v3078_v12  ;;  %v659_v54 = vmul.f32 %v3083_v4, %v3083_v4  ;;  %v520_v33 = vpop.xlane.xlu0 %519  ;;  %v740_v12 = vmul.f32 512.0, %v2526_v0 }
 0x115   : > { %4494 = vst [vmem:[#allocation82_spill] sm:$0xff] %v3083_v4  ;;  %v664_v34 = vpop.xlane.xlu1 %663 }
 0x116   : > { %v736_v9 = vadd.f32 %v735_v36, %v658_v61  ;;  %v593_v50 = vadd.f32 %v592_v14, %v3083_v4  ;;  %v756_v36 = vadd.f32 %v740_v12, %v520_v33  ;;  %v741_v61 = vmul.f32 512.0, %v2572_v18 }
 0x117   : > { %v773_v14 = vmul.f32 2.0, %v2572_v18  ;;  %v820_v40 = vmul.f32 %v740_v12, %v2526_v0  ;;  %v744_v12 = vmul.f32 512.0, %v2609_v23 }
 0x118   : > { %v737_v63 = vadd.f32 %v736_v9, %v659_v54  ;;  %v788_v9 = vmul.f32 %v772_v21, %v520_v33  ;;  %v821_v16 = vmul.f32 %v741_v61, %v2572_v18 }
 0x11a   : > { %738 = vadd.xlane.f32.xlu1 %v737_v63  ;;  %594 = vadd.xlane.f32.xlu0 %v593_v50  ;;  %v3092_v10 = vpop.permute.xlu2 %2026  ;;  %v742_v50 = vmul.f32 512.0, %v2533_v1  ;;  %v804_v35 = vadd.f32 %v788_v9, %v664_v34 }
 0x11b   : > { %4497 = vst [vmem:[#allocation85_spill] sm:$0xff] %v3092_v10 }
 0x11c   : > { %v525_v55 = vpop.xlane.xlu0 %524  ;;  %v822_v6 = vmul.f32 %v742_v50, %v2533_v1  ;;  %v836_v33 = vadd.f32 %v820_v40, %v804_v35  ;;  %v776_v1 = vmul.f32 2.0, %v2609_v23  ;;  %v824_v35 = vmul.f32 %v744_v12, %v2609_v23 }
 0x11d   : > { %v757_v10 = vadd.f32 %v741_v61, %v525_v55  ;;  %v789_v4 = vmul.f32 %v773_v14, %v525_v55  ;;  %v775_v55 = vmul.f32 2.0, %v2546_v2  ;;  %v777_v61 = vmul.f32 2.0, %v2554_v15 }
 0x122   : > { %v669_v51 = vpop.xlane.xlu2 %668 }
 0x123   : > { %v530_v41 = vpop.xlane.xlu1 %529  ;;  %v805_v13 = vadd.f32 %v789_v4, %v669_v51 }
 0x124   : > { %v790_v54 = vmul.f32 %v774_v59, %v530_v41  ;;  %v758_v34 = vadd.f32 %v742_v50, %v530_v41  ;;  %v745_v41 = vmul.f32 512.0, %v2554_v15  ;;  %v778_v50 = vmul.f32 2.0, %v2567_v17 }
 0x125   : > { %v674_v63 = vpop.xlane.xlu0 %673 }
 0x126   : > { %v806_v62 = vadd.f32 %v790_v54, %v674_v63  ;;  %v825_v23 = vmul.f32 %v745_v41, %v2554_v15 }
 0x128   : > { %v838_v45 = vadd.f32 %v822_v6, %v806_v62 }
 0x12a   : > { %870 = vperm.xlu2 %2417, %v756_v36   ;;  %v837_v36 = vadd.f32 %v821_v16, %v805_v13  ;;  %v823_v16 = vmul.f32 %v743_v43, %v2546_v2 }
 0x12b   : > { %v535_v59 = vpop.xlane.xlu1 %534 }
 0x12c   : > { %v759_v0 = vadd.f32 %v743_v43, %v535_v59 }
 0x12e   : > { %875 = vperm.xlu0 %2419, %v757_v10  }
 0x132   : > { %997 = vperm.xlu2 %2417, %v838_v45   ;;  %v791_v45 = vmul.f32 %v775_v55, %v535_v59  ;;  %v747_v55 = vmul.f32 512.0, %v2633_v27 }
 0x133   : > { %v540_v21 = vpop.xlane.xlu2 %539  ;;  %987 = vperm.xlu1 %2418, %v836_v33   ;;  %v679_v18 = vpop.xlane.xlu1 %678 }
 0x134   : > { %v792_v62 = vmul.f32 %v776_v1, %v540_v21  ;;  %v807_v6 = vadd.f32 %v791_v45, %v679_v18  ;;  %v760_v10 = vadd.f32 %v744_v12, %v540_v21  ;;  %v746_v1 = vmul.f32 512.0, %v2567_v17 }
 0x135   : > { %v827_v18 = vmul.f32 %v747_v55, %v2633_v27 }
 0x136   : > { %992 = vperm.xlu0 %2419, %v837_v36   ;;  %v839_v14 = vadd.f32 %v823_v16, %v807_v6  ;;  %v779_v36 = vmul.f32 2.0, %v2633_v27  ;;  %v780_v16 = vmul.f32 2.0, %v2579_v19  ;;  %v748_v6 = vmul.f32 512.0, %v2579_v19 }
 0x13a   : > { %885 = vperm.xlu2 %2417, %v759_v0   ;;  %v826_v0 = vmul.f32 %v746_v1, %v2567_v17  ;;  %v828_v17 = vmul.f32 %v748_v6, %v2579_v19 }
 0x13b   : > { %v684_v40 = vpop.xlane.xlu2 %683  ;;  %880 = vperm.xlu1 %2418, %v758_v34  }
 0x13c   : > { %v808_v13 = vadd.f32 %v792_v62, %v684_v40 }
 0x13d   : > { %v689_v4 = vpop.xlane.xlu0 %688 }
 0x13e   : > { %v840_v51 = vadd.f32 %v824_v35, %v808_v13 }
 0x140   : > { %1007 = vperm.xlu0 %2419, %v840_v51  }
 0x142   : > { %890 = vperm.xlu2 %2417, %v760_v10  }
 0x143   : > { %v545_v54 = vpop.xlane.xlu2 %544  ;;  %1002 = vperm.xlu1 %2418, %v839_v14  }
 0x144   : > { %v793_v9 = vmul.f32 %v777_v61, %v545_v54  ;;  %v761_v33 = vadd.f32 %v745_v41, %v545_v54  ;;  %v781_v54 = vmul.f32 2.0, %v2588_v20 }
 0x145   : > { %v694_v63 = vpop.xlane.xlu1 %693  ;;  %v550_v43 = vpop.xlane.xlu0 %549 }
 0x146   : > { %v809_v2 = vadd.f32 %v793_v9, %v689_v4  ;;  %v794_v21 = vmul.f32 %v778_v50, %v550_v43  ;;  %v762_v35 = vadd.f32 %v746_v1, %v550_v43 }
 0x148   : > { %v841_v59 = vadd.f32 %v825_v23, %v809_v2  ;;  %v810_v15 = vadd.f32 %v794_v21, %v694_v63  ;;  %v749_v23 = vmul.f32 512.0, %v2588_v20  ;;  %v750_v21 = vmul.f32 512.0, %v2655_v30 }
 0x14a   : > { %1012 = vperm.xlu2 %2417, %v841_v59   ;;  %v842_v40 = vadd.f32 %v826_v0, %v810_v15  ;;  %v829_v50 = vmul.f32 %v749_v23, %v2588_v20  ;;  %v783_v20 = vmul.f32 2.0, %v2596_v22 }
 0x14b   : > { %895 = vperm.xlu1 %2418, %v761_v33   ;;  %v782_v33 = vmul.f32 2.0, %v2655_v30 }
 0x14d   : > { %v699_v12 = vpop.xlane.xlu2 %698  ;;  %v555_v34 = vpop.xlane.xlu1 %554 }
 0x14e   : > { %v795_v62 = vmul.f32 %v779_v36, %v555_v34  ;;  %v763_v14 = vadd.f32 %v747_v55, %v555_v34  ;;  %v830_v55 = vmul.f32 %v750_v21, %v2655_v30  ;;  %v784_v30 = vmul.f32 2.0, %v2614_v24 }
 0x150   : > { %v811_v45 = vadd.f32 %v795_v62, %v699_v12 }
 0x152   : > { %900 = vperm.xlu2 %2417, %v762_v35   ;;  %v843_v13 = vadd.f32 %v827_v18, %v811_v45  ;;  %v751_v18 = vmul.f32 512.0, %v2596_v22 }
 0x153   : > { %1017 = vperm.xlu1 %2418, %v842_v40  }
 0x154   : > { %1022 = vperm.xlu0 %2419, %v843_v13   ;;  %v831_v45 = vmul.f32 %v751_v18, %v2596_v22  ;;  %v785_v22 = vmul.f32 2.0, %v2664_v31 }
 0x155   : > { %v704_v4 = vpop.xlane.xlu0 %703  ;;  %v560_v51 = vpop.xlane.xlu2 %559 }
 0x156   : > { %v796_v10 = vmul.f32 %v780_v16, %v560_v51  ;;  %v764_v27 = vadd.f32 %v748_v6, %v560_v51 }
 0x158   : > { %v812_v61 = vadd.f32 %v796_v10, %v704_v4  ;;  %v752_v4 = vmul.f32 512.0, %v2614_v24 }
 0x15a   : > { %v844_v41 = vadd.f32 %v828_v17, %v812_v61  ;;  %v832_v10 = vmul.f32 %v752_v4, %v2614_v24  ;;  %v754_v24 = vmul.f32 512.0, %v2622_v26 }
 0x15b   : > { %905 = vperm.xlu1 %2418, %v763_v14  }
 0x15c   : > { %1027 = vperm.xlu2 %2417, %v844_v41   ;;  %910 = vperm.xlu0 %2419, %v764_v27  }
 0x15d   : > { %v709_v9 = vpop.xlane.xlu1 %708  ;;  %v565_v63 = vpop.xlane.xlu0 %564 }
 0x15e   : > { %v797_v2 = vmul.f32 %v781_v54, %v565_v63  ;;  %v765_v59 = vadd.f32 %v749_v23, %v565_v63  ;;  %v753_v54 = vmul.f32 512.0, %v2664_v31 }
 0x160   : > { %v813_v43 = vadd.f32 %v797_v2, %v709_v9  ;;  %v833_v63 = vmul.f32 %v753_v54, %v2664_v31  ;;  %v787_v31 = vmul.f32 2.0, %v2638_v28 }
 0x162   : > { %v845_v19 = vadd.f32 %v829_v50, %v813_v43 }
 0x164   : > { %915 = vperm.xlu2 %2417, %v765_v59   ;;  %1032 = vperm.xlu1 %2418, %v845_v19   ;;  %v786_v19 = vmul.f32 2.0, %v2622_v26 }
 0x165   : > { %v714_v36 = vpop.xlane.xlu2 %713  ;;  %v570_v1 = vpop.xlane.xlu1 %569 }
 0x166   : > { %v798_v0 = vmul.f32 %v782_v33, %v570_v1  ;;  %v766_v12 = vadd.f32 %v750_v21, %v570_v1 }
 0x168   : > { %v814_v15 = vadd.f32 %v798_v0, %v714_v36  ;;  %v834_v36 = vmul.f32 %v754_v24, %v2622_v26 }
 0x16a   : > { %v846_v34 = vadd.f32 %v830_v55, %v814_v15 }
 0x16c   : > { %920 = vperm.xlu1 %2418, %v766_v12   ;;  %1037 = vperm.xlu0 %2419, %v846_v34   ;;  %v755_v34 = vmul.f32 512.0, %v2638_v28 }
 0x16d   : > { %v719_v62 = vpop.xlane.xlu0 %718  ;;  %v575_v35 = vpop.xlane.xlu2 %574 }
 0x16e   : > { %v799_v40 = vmul.f32 %v783_v20, %v575_v35  ;;  %v767_v16 = vadd.f32 %v751_v18, %v575_v35  ;;  %v835_v18 = vmul.f32 %v755_v34, %v2638_v28  ;;  %v853_v28 = vld [vmem:[%s4324_s3 + $0x8] sm:$0xff] }
 0x170   : > { %v815_v13 = vadd.f32 %v799_v40, %v719_v62 }
 0x172   : > { %v847_v6 = vadd.f32 %v831_v45, %v815_v13 }
 0x174   : > { %1042 = vperm.xlu2 %2417, %v847_v6   ;;  %925 = vperm.xlu0 %2419, %v767_v16  }
 0x175   : > { %v724_v51 = vpop.xlane.xlu1 %723  ;;  %v580_v17 = vpop.xlane.xlu0 %579 }
 0x176   : > { %v800_v61 = vmul.f32 %v784_v30, %v580_v17  ;;  %v768_v27 = vadd.f32 %v752_v4, %v580_v17  ;;  %v852_v4 = vld [vmem:[%s4324_s3] sm:$0xff] }
 0x178   : > { %v816_v14 = vadd.f32 %v800_v61, %v724_v51  ;;  %v854_v51 = vld [vmem:[%s4324_s3 + $0x10] sm:$0xff] }
 0x17a   : > { %v848_v41 = vadd.f32 %v832_v10, %v816_v14 }
 0x17c   : > { %930 = vperm.xlu2 %2417, %v768_v27   ;;  %1047 = vperm.xlu1 %2418, %v848_v41  }
 0x17d   : > { %v729_v23 = vpop.xlane.xlu2 %728  ;;  %v585_v9 = vpop.xlane.xlu1 %584 }
 0x17e   : > { %v801_v50 = vmul.f32 %v785_v22, %v585_v9  ;;  %v769_v43 = vadd.f32 %v753_v54, %v585_v9  ;;  %v855_v9 = vld [vmem:[%s4324_s3 + $0x18] sm:$0xff] }
 0x180   : > { %v817_v2 = vadd.f32 %v801_v50, %v729_v23 }
 0x182   : > { %v849_v59 = vadd.f32 %v833_v63, %v817_v2 }
 0x184   : > { %935 = vperm.xlu1 %2418, %v769_v43   ;;  %1052 = vperm.xlu0 %2419, %v849_v59   ;;  %v856_v43 = vld [vmem:[%s4324_s3 + $0x20] sm:$0xff]  ;;  %v857_v59 = vld [vmem:[%s4324_s3 + $0x28] sm:$0xff] }
 0x185   : > { %v734_v33 = vpop.xlane.xlu0 %733  ;;  %v590_v21 = vpop.xlane.xlu2 %589 }
 0x186   : > { %v802_v1 = vmul.f32 %v786_v19, %v590_v21  ;;  %v770_v55 = vadd.f32 %v754_v24, %v590_v21 }
 0x188   : > { %v818_v0 = vadd.f32 %v802_v1, %v734_v33 }
 0x18a   : > { %v850_v15 = vadd.f32 %v834_v36, %v818_v0  ;;  %v859_v0 = vld [vmem:[%s4324_s3 + $0x38] sm:$0xff] }
 0x18c   : > { %1057 = vperm.xlu2 %2417, %v850_v15   ;;  %940 = vperm.xlu0 %2419, %v770_v55   ;;  %v858_v15 = vld [vmem:[%s4324_s3 + $0x30] sm:$0xff] }
 0x18d   : > { %v871_v12 = vpop.permute.xlu2 %870  ;;  %v595_v20 = vpop.xlane.xlu0 %594 }
 0x18e   : > { %v803_v62 = vmul.f32 %v787_v31, %v595_v20  ;;  %v739_v35 = vpop.xlane.xlu1 %738  ;;  %v771_v40 = vadd.f32 %v755_v34, %v595_v20 }
 0x190   : > { %v819_v45 = vadd.f32 %v803_v62, %v739_v35 }
 0x192   : > { %v851_v13 = vadd.f32 %v835_v18, %v819_v45  ;;  %v860_v18 = vld [vmem:[%s4324_s3 + $0x40] sm:$0xff] }
 0x194   : > { %945 = vperm.xlu2 %2417, %v771_v40   ;;  %1062 = vperm.xlu1 %2418, %v851_v13  }
 0x195   : > { %v998_v26 = vpop.permute.xlu2 %997 }
 0x196   : > { %v1067_v27 = vmul.f32 %v998_v26, %v854_v51 }
 0x19d   : > { %v886_v16 = vpop.permute.xlu2 %885 }
 0x1a0   : > { %v876_v6 = vpop.permute.xlu0 %875 }
 0x1a5   : > { %v988_v30 = vpop.permute.xlu1 %987  ;;  %v891_v10 = vpop.permute.xlu2 %890 }
 0x1a6   : > { %v1065_v61 = vmul.f32 %v988_v30, %v852_v4 }
 0x1a8   : > { %v993_v17 = vpop.permute.xlu0 %992 }
 0x1a9   : > { %v1066_v14 = vmul.f32 %v993_v17, %v853_v28  ;;  %v949_v17 = vmul.f32 %v876_v6, %v853_v28 }
 0x1ab   : > { %v1081_v41 = vadd.f32 %v1066_v14, %v1065_v61  ;;  %v948_v14 = vmul.f32 %v871_v12, %v852_v4 }
 0x1ad   : > { %v881_v22 = vpop.permute.xlu1 %880  ;;  %v1082_v54 = vadd.f32 %v1081_v41, %v1067_v27  ;;  %v1013_v23 = vpop.permute.xlu2 %1012  ;;  %v964_v41 = vadd.f32 %v949_v17, %v948_v14 }
 0x1ae   : > { %v1070_v33 = vmul.f32 %v1013_v23, %v857_v59  ;;  %v950_v27 = vmul.f32 %v881_v22, %v854_v51 }
 0x1b2   : > { %v1008_v63 = vpop.permute.xlu0 %1007 }
 0x1b3   : > { %v1069_v24 = vmul.f32 %v1008_v63, %v856_v43  ;;  %v965_v63 = vadd.f32 %v964_v41, %v950_v27  ;;  %v866_v27 = vld [vmem:[%s4324_s3 + $0x70] sm:$0xff]  ;;  %v867_v41 = vld [vmem:[%s4324_s3 + $0x78] sm:$0xff] }
 0x1b5   : > { %v1003_v50 = vpop.permute.xlu1 %1002  ;;  %v901_v1 = vpop.permute.xlu2 %900 }
 0x1b6   : > { %v1068_v2 = vmul.f32 %v1003_v50, %v855_v9  ;;  %v951_v50 = vmul.f32 %v886_v16, %v855_v9  ;;  %v861_v16 = vld [vmem:[%s4324_s3 + $0x48] sm:$0xff] }
 0x1b8   : > { %v1083_v19 = vadd.f32 %v1082_v54, %v1068_v2  ;;  %v966_v2 = vadd.f32 %v965_v63, %v951_v50 }
 0x1ba   : > { %v1084_v21 = vadd.f32 %v1083_v19, %v1069_v24  ;;  %v952_v19 = vmul.f32 %v891_v10, %v856_v43  ;;  %v862_v10 = vld [vmem:[%s4324_s3 + $0x50] sm:$0xff] }
 0x1bc   : > { %v1085_v36 = vadd.f32 %v1084_v21, %v1070_v33 }
 0x1bd   : > { %v896_v55 = vpop.permute.xlu1 %895  ;;  %v1028_v62 = vpop.permute.xlu2 %1027 }
 0x1be   : > { %v1073_v40 = vmul.f32 %v1028_v62, %v860_v18  ;;  %v953_v33 = vmul.f32 %v896_v55, %v857_v59  ;;  %v863_v59 = vld [vmem:[%s4324_s3 + $0x58] sm:$0xff] }
 0x1c5   : > { %v1018_v31 = vpop.permute.xlu1 %1017  ;;  %v916_v61 = vpop.permute.xlu2 %915 }
 0x1c6   : > { %v1071_v34 = vmul.f32 %v1018_v31, %v858_v15  ;;  %v1023_v20 = vpop.permute.xlu0 %1022  ;;  %v957_v9 = vmul.f32 %v916_v61, %v861_v16 }
 0x1c7   : > { %v1072_v35 = vmul.f32 %v1023_v20, %v859_v0  ;;  %v954_v20 = vmul.f32 %v901_v1, %v858_v15 }
 0x1c8   : > { %v1086_v45 = vadd.f32 %v1085_v36, %v1071_v34  ;;  %v967_v36 = vadd.f32 %v966_v2, %v952_v19 }
 0x1ca   : > { %v1087_v13 = vadd.f32 %v1086_v45, %v1072_v35  ;;  %v968_v34 = vadd.f32 %v967_v36, %v953_v33  ;;  %v864_v45 = vld [vmem:[%s4324_s3 + $0x60] sm:$0xff]  ;;  %v1102_v36 = vlaneseq }
 0x1cc   : > { %v3169_v26 = vadd.f32 %v1087_v13, %v1073_v40  ;;  %v969_v35 = vadd.f32 %v968_v34, %v954_v20  ;;  %v865_v40 = vld [vmem:[%s4324_s3 + $0x68] sm:$0xff]  ;;  %v3192_v20 = vshrl.u32 %v1102_v36, 7 }
 0x1cd   : > { %v906_v30 = vpop.permute.xlu1 %905 }
 0x1ce   : > { %v911_v54 = vpop.permute.xlu0 %910  ;;  %v1043_v24 = vpop.permute.xlu2 %1042  ;;  %v955_v62 = vmul.f32 %v906_v30, %v859_v0 }
 0x1cf   : > { %v956_v12 = vmul.f32 %v911_v54, %v860_v18 }
 0x1d0   : > { %v970_v28 = vadd.f32 %v969_v35, %v955_v62 }
 0x1d2   : > { %v971_v22 = vadd.f32 %v970_v28, %v956_v12  ;;  %v3195_v28 = vadd.s32 16, %v3192_v20  ;;  %v3197_v12 = vand.u32 127, %v1102_v36 }
 0x1d4   : > { %v972_v55 = vadd.f32 %v971_v22, %v957_v9  ;;  %vm1123_vm1 = vcmp.eq.s32.totalorder %v3195_v28, %v3197_v12  ;;  %vm1121_vm3 = vcmp.eq.s32.totalorder %v3192_v20, %v3197_v12 }
 0x1d6   : > { %v1033_v23 = vpop.permute.xlu1 %1032  ;;  %v931_v6 = vpop.permute.xlu2 %930 }
 0x1d7   : > { %v960_v17 = vmul.f32 %v931_v6, %v864_v45  ;;  %v1074_v35 = vmul.f32 %v1033_v23, %v861_v16 }
 0x1de   : > { %v1038_v21 = vpop.permute.xlu0 %1037  ;;  %v921_v31 = vpop.permute.xlu1 %920 }
 0x1df   : > { %v958_v43 = vmul.f32 %v921_v31, %v862_v10  ;;  %v1075_v22 = vmul.f32 %v1038_v21, %v862_v10 }
 0x1e1   : > { %v973_v18 = vadd.f32 %v972_v55, %v958_v43  ;;  %v1089_v43 = vadd.f32 %v3169_v26, %v1074_v35  ;;  %v1113_v35 = vadd.s32 80, %v3192_v20 }
 0x1e3   : > { %v1090_v23 = vadd.f32 %v1089_v43, %v1075_v22  ;;  %vm1131_vm12 = vcmp.eq.s32.totalorder %v1113_v35, %v3197_v12 }
 0x1e6   : > { %v926_v4 = vpop.permute.xlu0 %925  ;;  %v1058_v1 = vpop.permute.xlu2 %1057 }
 0x1e7   : > { %v959_v0 = vmul.f32 %v926_v4, %v863_v59  ;;  %v3200_v4 = vadd.s32 8, %v3192_v20 }
 0x1e9   : > { %v974_v30 = vadd.f32 %v973_v18, %v959_v0  ;;  %vm1122_vm2 = vcmp.eq.s32.totalorder %v3200_v4, %v3197_v12  ;;  %v1076_v0 = vmul.f32 %v1043_v24, %v863_v59  ;;  %v3224_v24 = vadd.s32 40, %v3192_v20 }
 0x1eb   : > { %v975_v14 = vadd.f32 %v974_v30, %v960_v17  ;;  %v1091_v59 = vadd.f32 %v1090_v23, %v1076_v0  ;;  %vm1126_vm4 = vcmp.eq.s32.totalorder %v3224_v24, %v3197_v12  ;;  %v1117_v23 = vadd.s32 112, %v3192_v20 }
 0x1ec   : > { %v1115_v0 = vadd.s32 96, %v3192_v20 }
 0x1ed   : > { %vm1135_vm13 = vcmp.eq.s32.totalorder %v1117_v23, %v3197_v12 }
 0x1ee   : > { %v1048_v51 = vpop.permute.xlu1 %1047  ;;  %v946_v54 = vpop.permute.xlu2 %945  ;;  %vm1133_vm14 = vcmp.eq.s32.totalorder %v1115_v0, %v3197_v12 }
 0x1ef   : > { %v963_v19 = vmul.f32 %v946_v54, %v867_v41  ;;  %v1077_v18 = vmul.f32 %v1048_v51, %v864_v45  ;;  %v3227_v51 = vadd.s32 24, %v3192_v20 }
 0x1f1   : > { %v1092_v30 = vadd.f32 %v1091_v59, %v1077_v18  ;;  %vm1124_vm5 = vcmp.eq.s32.totalorder %v3227_v51, %v3197_v12  ;;  %v1116_v18 = vadd.s32 104, %v3192_v20 }
 0x1f3   : > { %vm1134_vm15 = vcmp.eq.s32.totalorder %v1116_v18, %v3197_v12 }
 0x1f6   : > { %v1053_v15 = vpop.permute.xlu0 %1052  ;;  %v936_v13 = vpop.permute.xlu1 %935 }
 0x1f7   : > { %v961_v61 = vmul.f32 %v936_v13, %v865_v40  ;;  %v1078_v45 = vmul.f32 %v1053_v15, %v865_v40  ;;  %v3230_v13 = vadd.s32 32, %v3192_v20 }
 0x1f9   : > { %v976_v50 = vadd.f32 %v975_v14, %v961_v61  ;;  %v1093_v61 = vadd.f32 %v1092_v30, %v1078_v45  ;;  %vm1125_vm6 = vcmp.eq.s32.totalorder %v3230_v13, %v3197_v12  ;;  %v1079_v14 = vmul.f32 %v1058_v1, %v866_v27 }
 0x1fa   : > { %v3251_v1 = vadd.s32 64, %v3192_v20  ;;  %v1118_v30 = vadd.s32 120, %v3192_v20 }
 0x1fc   : > { %vm1129_vm7 = vcmp.eq.s32.totalorder %v3251_v1, %v3197_v12  ;;  %vm1136_vm0 = vcmp.eq.s32.totalorder %v1118_v30, %v3197_v12 }
 0x1fe   : > { %v941_v63 = vpop.permute.xlu0 %940 }
 0x1ff   : > { %v962_v2 = vmul.f32 %v941_v63, %v866_v27  ;;  %v3254_v27 = vadd.s32 48, %v3192_v20 }
 0x201   : > { %v977_v33 = vadd.f32 %v976_v50, %v962_v2  ;;  %v1110_v50 = vadd.s32 56, %v3192_v20  ;;  %vm1127_vm8 = vcmp.eq.s32.totalorder %v3254_v27, %v3197_v12 }
 0x203   : > { %v978_v31 = vadd.f32 %v977_v33, %v963_v19  ;;  %vm1128_vm9 = vcmp.eq.s32.totalorder %v1110_v50, %v3197_v12 }
 0x205   : > { %v979_v34 = vrot.slane %v978_v31, 4 }
 0x206   : > { %v1063_v17 = vpop.permute.xlu1 %1062 }
 0x207   : > { %v980_v62 = vadd.f32 %v979_v34, %v978_v31  ;;  %v1080_v54 = vmul.f32 %v1063_v17, %v867_v41  ;;  %v1094_v41 = vadd.f32 %v1093_v61, %v1079_v14  ;;  %v1114_v34 = vadd.s32 88, %v3192_v20 }
 0x209   : > { %v981_v6 = vrot.slane %v980_v62, 2  ;;  %v1095_v2 = vadd.f32 %v1094_v41, %v1080_v54  ;;  %vm1132_vm10 = vcmp.eq.s32.totalorder %v1114_v34, %v3197_v12 }
 0x20b   : > { %v982_v9 = vadd.f32 %v981_v6, %v980_v62  ;;  %v1096_v19 = vrot.slane %v1095_v2, 4  ;;  %v1112_v62 = vadd.s32 72, %v3192_v20 }
 0x20d   : > { %v983_v55 = vrot.slane %v982_v9, 1  ;;  %v1097_v6 = vadd.f32 %v1096_v19, %v1095_v2  ;;  %vm1130_vm11 = vcmp.eq.s32.totalorder %v1112_v62, %v3197_v12 }
 0x20f   : > { %v3209_v16 = vadd.f32 %v983_v55, %v982_v9  ;;  %v1098_v22 = vrot.slane %v1097_v6, 2 }
 0x211   : > { %v1139_v26 = vsel %vm1123_vm1, %v3209_v16, 0.0  ;;  %v1138_v21 = vsel %vm1122_vm2, %v3209_v16, 0.0  ;;  %v1137_v10 = vsel %vm1121_vm3, %v3209_v16, 0.0  ;;  %v1142_v15 = vsel %vm1126_vm4, %v3209_v16, 0.0 }
 0x212   : > { %1157 = vadd.xlane.f32.xlu1 %v1139_v26  ;;  %1155 = vadd.xlane.f32.xlu2 %v1138_v21  ;;  %v1140_v40 = vsel %vm1124_vm5, %v3209_v16, 0.0  ;;  %v1141_v63 = vsel %vm1125_vm6, %v3209_v16, 0.0  ;;  %v1145_v33 = vsel %vm1129_vm7, %v3209_v16, 0.0  ;;  %v1143_v36 = vsel %vm1127_vm8, %v3209_v16, 0.0 }
 0x213   : > { %1153 = vadd.xlane.f32.xlu0 %v1137_v10  ;;  %v1144_v31 = vsel %vm1128_vm9, %v3209_v16, 0.0  ;;  %v1148_v9 = vsel %vm1132_vm10, %v3209_v16, 0.0  ;;  %v1146_v43 = vsel %vm1130_vm11, %v3209_v16, 0.0  ;;  %v1147_v55 = vsel %vm1131_vm12, %v3209_v16, 0.0 }
 0x214   : > { %v1099_v26 = vadd.f32 %v1098_v22, %v1097_v6  ;;  %v1151_v10 = vsel %vm1135_vm13, %v3209_v16, 0.0  ;;  %v1149_v59 = vsel %vm1133_vm14, %v3209_v16, 0.0  ;;  %v1150_v45 = vsel %vm1134_vm15, %v3209_v16, 0.0 }
 0x215   : > { %v1152_v14 = vsel %vm1136_vm0, %v3209_v16, 0.0 }
 0x216   : > { %v1100_v21 = vrot.slane %v1099_v26, 1 }
 0x218   : > { %v1101_v17 = vadd.f32 %v1100_v21, %v1099_v26 }
 0x21a   : > { %1163 = vadd.xlane.f32.xlu1 %v1142_v15  ;;  %1159 = vadd.xlane.f32.xlu2 %v1140_v40  ;;  %v1186_v61 = vsel %vm1122_vm2, %v1101_v17, 0.0  ;;  %v1185_v54 = vsel %vm1121_vm3, %v1101_v17, 0.0  ;;  %v1189_v15 = vsel %vm1125_vm6, %v1101_v17, 0.0  ;;  %v1187_v4 = vsel %vm1123_vm1, %v1101_v17, 0.0 }
 0x21b   : > { %1161 = vadd.xlane.f32.xlu0 %v1141_v63  ;;  %v1188_v16 = vsel %vm1124_vm5, %v1101_v17, 0.0  ;;  %v1192_v20 = vsel %vm1128_vm9, %v1101_v17, 0.0  ;;  %v1190_v40 = vsel %vm1126_vm4, %v1101_v17, 0.0  ;;  %v1191_v28 = vsel %vm1127_vm8, %v1101_v17, 0.0 }
 0x21c   : > { %v1195_v13 = vsel %vm1131_vm12, %v1101_v17, 0.0  ;;  %v1193_v51 = vsel %vm1129_vm7, %v1101_v17, 0.0  ;;  %v1194_v24 = vsel %vm1130_vm11, %v1101_v17, 0.0  ;;  %v1198_v63 = vsel %vm1134_vm15, %v1101_v17, 0.0 }
 0x21d   : > { %v1196_v27 = vsel %vm1132_vm10, %v1101_v17, 0.0  ;;  %v1197_v41 = vsel %vm1133_vm14, %v1101_v17, 0.0  ;;  %v1199_v1 = vsel %vm1135_vm13, %v1101_v17, 0.0  ;;  %v1200_v50 = vsel %vm1136_vm0, %v1101_v17, 0.0 }
 0x222   : > { %1169 = vadd.xlane.f32.xlu1 %v1145_v33  ;;  %1165 = vadd.xlane.f32.xlu2 %v1143_v36 }
 0x223   : > { %1167 = vadd.xlane.f32.xlu0 %v1144_v31 }
 0x22a   : > { %1175 = vadd.xlane.f32.xlu1 %v1148_v9  ;;  %1171 = vadd.xlane.f32.xlu2 %v1146_v43 }
 0x22b   : > { %1173 = vadd.xlane.f32.xlu0 %v1147_v55 }
 0x232   : > { %1181 = vadd.xlane.f32.xlu1 %v1151_v10  ;;  %1177 = vadd.xlane.f32.xlu2 %v1149_v59 }
 0x233   : > { %1179 = vadd.xlane.f32.xlu0 %v1150_v45 }
 0x23a   : > { %1203 = vadd.xlane.f32.xlu1 %v1186_v61  ;;  %1183 = vadd.xlane.f32.xlu2 %v1152_v14 }
 0x23b   : > { %1201 = vadd.xlane.f32.xlu0 %v1185_v54 }
 0x242   : > { %1209 = vadd.xlane.f32.xlu1 %v1189_v15  ;;  %1205 = vadd.xlane.f32.xlu2 %v1187_v4 }
 0x243   : > { %1207 = vadd.xlane.f32.xlu0 %v1188_v16 }
 0x24a   : > { %1215 = vadd.xlane.f32.xlu1 %v1192_v20  ;;  %1211 = vadd.xlane.f32.xlu2 %v1190_v40 }
 0x24b   : > { %1213 = vadd.xlane.f32.xlu0 %v1191_v28 }
 0x252   : > { %1221 = vadd.xlane.f32.xlu1 %v1195_v13  ;;  %1217 = vadd.xlane.f32.xlu2 %v1193_v51 }
 0x253   : > { %1219 = vadd.xlane.f32.xlu0 %v1194_v24 }
 0x25a   : > { %1227 = vadd.xlane.f32.xlu1 %v1198_v63  ;;  %1223 = vadd.xlane.f32.xlu2 %v1196_v27 }
 0x25b   : > { %1225 = vadd.xlane.f32.xlu0 %v1197_v41 }
 0x262   : > { %1229 = vadd.xlane.f32.xlu2 %v1199_v1 }
 0x263   : > { %1231 = vadd.xlane.f32.xlu0 %v1200_v50 }
 0x285   : > { %v3348_v2 = vpop.xlane.xlu1 %1157  ;;  %v3350_v19 = vpop.xlane.xlu2 %1155 }
 0x286   : > { %v3352_v33 = vpop.xlane.xlu0 %1153  ;;  %v1234_v0 = vmul.f32 %v3350_v19, %v3350_v19  ;;  %v1235_v54 = vmul.f32 %v3348_v2, %v3348_v2 }
 0x287   : > { %v1233_v18 = vmul.f32 %v3352_v33, %v3352_v33 }
 0x28d   : > { %v3354_v36 = vpop.xlane.xlu1 %1163  ;;  %v3356_v31 = vpop.xlane.xlu2 %1159 }
 0x28e   : > { %v3358_v34 = vpop.xlane.xlu0 %1161  ;;  %v1236_v4 = vmul.f32 %v3356_v31, %v3356_v31 }
 0x28f   : > { %v1237_v15 = vmul.f32 %v3358_v34, %v3358_v34 }
 0x295   : > { %v3360_v62 = vpop.xlane.xlu1 %1169  ;;  %v3362_v35 = vpop.xlane.xlu2 %1165 }
 0x296   : > { %v3364_v6 = vpop.xlane.xlu0 %1167 }
 0x29d   : > { %v3366_v12 = vpop.xlane.xlu1 %1175  ;;  %v3368_v22 = vpop.xlane.xlu2 %1171 }
 0x29e   : > { %4498 = vst [vmem:[#allocation86_spill] sm:$0xff] %v3368_v22  ;;  %v3370_v9 = vpop.xlane.xlu0 %1173 }
 0x29f   : > { %4499 = vst [vmem:[#allocation87_spill] sm:$0xff] %v3370_v9 }
 0x2a5   : > { %v3372_v43 = vpop.xlane.xlu1 %1181  ;;  %v3374_v55 = vpop.xlane.xlu2 %1177 }
 0x2a6   : > { %4500 = vst [vmem:[#allocation88_spill] sm:$0xff] %v3372_v43  ;;  %v3376_v23 = vpop.xlane.xlu0 %1179 }
 0x2a7   : > { %4501 = vst [vmem:[#allocation89_spill] sm:$0xff] %v3374_v55 }
 0x2a8   : > { %4502 = vst [vmem:[#allocation90_spill] sm:$0xff] %v3376_v23 }
 0x2ad   : > { %v1204_v26 = vpop.xlane.xlu1 %1203  ;;  %v3382_v21 = vpop.xlane.xlu2 %1183 }
 0x2ae   : > { %4503 = vst [vmem:[#allocation91_spill] sm:$0xff] %v3382_v21  ;;  %v1250_v10 = vsub.f32 %v1204_v26, %v1234_v0  ;;  %v1202_v59 = vpop.xlane.xlu0 %1201 }
 0x2af   : > { %v1249_v45 = vsub.f32 %v1202_v59, %v1233_v18  ;;  %v1240_v59 = vmul.f32 %v3364_v6, %v3364_v6 }
 0x2b0   : > { %v1266_v30 = vmax.f32 %v1250_v10, 0.0  ;;  %v1238_v10 = vmul.f32 %v3354_v36, %v3354_v36 }
 0x2b1   : > { %v1265_v17 = vmax.f32 %v1249_v45, 0.0 }
 0x2b2   : > { %v3384_v61 = vadd.f32 1e-05, %v1266_v30  ;;  %v1239_v30 = vmul.f32 %v3362_v35, %v3362_v35 }
 0x2b3   : > { %v3386_v14 = vadd.f32 1e-05, %v1265_v17 }
 0x2b4   : > { %2429 = vrsqrt.f32 %v3384_v61  ;;  %vm1313_vm2 = vweird.f32 %v3384_v61 }
 0x2b5   : > { %2431 = vrsqrt.f32 %v3386_v14  ;;  %v1210_v16 = vpop.xlane.xlu1 %1209  ;;  %v1206_v20 = vpop.xlane.xlu2 %1205  ;;  %vm1303_vm5 = vweird.f32 %v3386_v14 }
 0x2b6   : > { %v1253_v40 = vsub.f32 %v1210_v16, %v1237_v15  ;;  %v1251_v28 = vsub.f32 %v1206_v20, %v1235_v54  ;;  %v1208_v13 = vpop.xlane.xlu0 %1207 }
 0x2b7   : > { %v1252_v51 = vsub.f32 %v1208_v13, %v1236_v4 }
 0x2b8   : > { %v1269_v24 = vmax.f32 %v1253_v40, 0.0  ;;  %v1267_v63 = vmax.f32 %v1251_v28, 0.0 }
 0x2b9   : > { %v1268_v27 = vmax.f32 %v1252_v51, 0.0 }
 0x2ba   : > { %v3396_v41 = vpop.eup %2429  ;;  %v3398_v1 = vadd.f32 1e-05, %v1269_v24  ;;  %v3400_v50 = vadd.f32 1e-05, %v1267_v63 }
 0x2bb   : > { %v3402_v0 = vpop.eup %2431  ;;  %v1308_v18 = vmul.f32 %v3396_v41, %v3384_v61  ;;  %v3406_v26 = vadd.f32 1e-05, %v1268_v27  ;;  %vm1314_vm1 = vweird.f32 %v3396_v41 }
 0x2bc   : > { %v1298_v45 = vmul.f32 %v3402_v0, %v3386_v14  ;;  %2433 = vrsqrt.f32 %v3398_v1  ;;  %vm3456_vm3 = vmor %vm1313_vm2, %vm1314_vm1  ;;  %vm1304_vm4 = vweird.f32 %v3402_v0  ;;  %vm1323_vm7 = vweird.f32 %v3400_v50 }
 0x2bd   : > { %v1309_v17 = vmul.f32 %v3396_v41, %v1308_v18  ;;  %2435 = vrsqrt.f32 %v3400_v50  ;;  %v1216_v54 = vpop.xlane.xlu1 %1215  ;;  %v1212_v15 = vpop.xlane.xlu2 %1211  ;;  %vm3496_vm6 = vmor %vm1303_vm5, %vm1304_vm4  ;;  %vm1333_vm10 = vweird.f32 %v3406_v26  ;;  %vm1343_vm11 = vweird.f32 %v3398_v1 }
 0x2be   : > { %v1299_v4 = vmul.f32 %v3402_v0, %v1298_v45  ;;  %2437 = vrsqrt.f32 %v3406_v26  ;;  %v1256_v16 = vsub.f32 %v1216_v54, %v1240_v59  ;;  %v1254_v20 = vsub.f32 %v1212_v15, %v1238_v10  ;;  %v1214_v40 = vpop.xlane.xlu0 %1213 }
 0x2bf   : > { %v1310_v28 = vmul.f32 0.5, %v1309_v17  ;;  %v1255_v13 = vsub.f32 %v1214_v40, %v1239_v30  ;;  %v1241_v59 = vmul.f32 %v3360_v62, %v3360_v62  ;;  %v1243_v54 = vmul.f32 %v3370_v9, %v3370_v9 }
 0x2c0   : > { %v1272_v51 = vmax.f32 %v1256_v16, 0.0  ;;  %v1270_v24 = vmax.f32 %v1254_v20, 0.0  ;;  %v1300_v27 = vmul.f32 0.5, %v1299_v4  ;;  %v1242_v20 = vmul.f32 %v3368_v22, %v3368_v22 }
 0x2c1   : > { %v1311_v63 = vsub.f32 1.5, %v1310_v28  ;;  %v1271_v38 = vmax.f32 %v1255_v13, 0.0  ;;  %v3452_v13 = vmul.f32 %v3366_v12, %v3366_v12 }
 0x2c2   : > { %v3421_v37 = vpop.eup %2433  ;;  %v3423_v18 = vadd.f32 1e-05, %v1272_v51  ;;  %v3425_v5 = vadd.f32 1e-05, %v1270_v24  ;;  %v1301_v15 = vsub.f32 1.5, %v1300_v27 }
 0x2c3   : > { %v3427_v58 = vpop.eup %2435  ;;  %v3431_v10 = vadd.f32 1e-05, %v1271_v38  ;;  %v1312_v17 = vmul.f32 %v3396_v41, %v1311_v63  ;;  %v1338_v24 = vmul.f32 %v3421_v37, %v3398_v1  ;;  %vm1344_vm8 = vweird.f32 %v3421_v37 }
 0x2c4   : > { %v3433_v45 = vpop.eup %2437  ;;  %v1318_v30 = vmul.f32 %v3427_v58, %v3400_v50  ;;  %2439 = vrsqrt.f32 %v3423_v18  ;;  %v1302_v53 = vmul.f32 %v3402_v0, %v1301_v15  ;;  %v1246_v15 = vmul.f32 %v3376_v23, %v3376_v23  ;;  %vm3604_vm2 = vmor %vm1343_vm11, %vm1344_vm8 }
 0x2c5   : > { %v1328_v4 = vmul.f32 %v3433_v45, %v3406_v26  ;;  %2441 = vrsqrt.f32 %v3425_v5  ;;  %v1222_v38 = vpop.xlane.xlu1 %1221  ;;  %v1218_v16 = vpop.xlane.xlu2 %1217  ;;  %v1316_v56 = vsel %vm3456_vm3, %v3396_v41, %v1312_v17  ;;  %vm1324_vm9 = vweird.f32 %v3427_v58 }
 0x2c6   : > { %v1319_v40 = vmul.f32 %v3427_v58, %v1318_v30  ;;  %2443 = vrsqrt.f32 %v3431_v10  ;;  %v1220_v28 = vpop.xlane.xlu0 %1219  ;;  %v1259_v63 = vsub.f32 %v1222_v38, %v1243_v54  ;;  %v1257_v61 = vsub.f32 %v1218_v16, %v1241_v59  ;;  %v3479_v38 = vld [vmem:[%s4323_s2 + $0x8] sm:$0xff]  ;;  %vm3542_vm13 = vmor %vm1323_vm7, %vm1324_vm9 }
 0x2c7   : > { %v1329_v27 = vmul.f32 %v3433_v45, %v1328_v4  ;;  %v1258_v30 = vsub.f32 %v1220_v28, %v1242_v20  ;;  %v3472_v54 = vmul.f32 %v3372_v43, %v3372_v43  ;;  %v1245_v59 = vmul.f32 %v3374_v55, %v3374_v55  ;;  %v3531_v28 = vld [vmem:[%s4323_s2] sm:$0xff] }
 0x2c8   : > { %v1320_v48 = vmul.f32 0.5, %v1319_v40  ;;  %v1275_v46 = vmax.f32 %v1259_v63, 0.0  ;;  %v1273_v42 = vmax.f32 %v1257_v61, 0.0  ;;  %v3482_v41 = vmul.f32 %v3479_v38, %v1316_v56 }
 0x2c9   : > { %v1274_v4 = vmax.f32 %v1258_v30, 0.0  ;;  %v1339_v16 = vmul.f32 %v3421_v37, %v1338_v24  ;;  %v1330_v56 = vmul.f32 0.5, %v1329_v27  ;;  %v1306_v24 = vsel %vm3496_vm6, %v3402_v0, %v1302_v53 }
 0x2ca   : > { %v3468_v29 = vpop.eup %2439  ;;  %v3490_v20 = vadd.f32 1e-05, %v1275_v46  ;;  %v3502_v63 = vadd.f32 1e-05, %v1273_v42  ;;  %1507 = vrot.lane.b32.xlu2 %v3482_v41, %s2488_s7  ;;  %v1321_v46 = vsub.f32 1.5, %v1320_v48  ;;  %v3516_v42 = vmul.f32 %v3382_v21, %v3382_v21 }
 0x2cb   : > { %v3484_v17 = vpop.eup %2441  ;;  %v3504_v61 = vadd.f32 1e-05, %v1274_v4  ;;  %v1340_v23 = vmul.f32 0.5, %v1339_v16  ;;  %v1368_v53 = vmul.f32 %v3468_v29, %v3423_v18  ;;  %v3534_v16 = vmul.f32 %v3531_v28, %v1306_v24 }
 0x2cc   : > { %v3492_v40 = vpop.eup %2443  ;;  %v1348_v51 = vmul.f32 %v3484_v17, %v3425_v5  ;;  %2445 = vrsqrt.f32 %v3490_v20  ;;  %v1331_v32 = vsub.f32 1.5, %v1330_v56  ;;  %vm1334_vm12 = vweird.f32 %v3433_v45 }
 0x2cd   : > { %v1358_v14 = vmul.f32 %v3492_v40, %v3431_v10  ;;  %v1228_v27 = vpop.xlane.xlu1 %1227  ;;  %v1224_v30 = vpop.xlane.xlu2 %1223  ;;  %2447 = vrsqrt.f32 %v3502_v63  ;;  %v1322_v60 = vmul.f32 %v3427_v58, %v1321_v46  ;;  %vm1353_vm14 = vweird.f32 %v3425_v5  ;;  %1505 = vrot.lane.b32.xlu1 %v3534_v16, %s2488_s7  ;;  %vm1335_vm1 = vmor %vm1333_vm10, %vm1334_vm12 }
 0x2ce   : > { %v1349_v4 = vmul.f32 %v3484_v17, %v1348_v51  ;;  %v1226_v48 = vpop.xlane.xlu0 %1225  ;;  %2449 = vrsqrt.f32 %v3504_v61  ;;  %v1262_v51 = vsub.f32 %v1228_v27, %v1246_v15  ;;  %v1260_v21 = vsub.f32 %v1224_v30, %v3452_v13 }
 0x2cf   : > { %v1359_v0 = vmul.f32 %v3492_v40, %v1358_v14  ;;  %v1261_v55 = vsub.f32 %v1226_v48, %v1245_v59  ;;  %v1341_v24 = vsub.f32 1.5, %v1340_v23  ;;  %v1369_v59 = vmul.f32 %v3468_v29, %v1368_v53 }
 0x2d0   : > { %v1350_v8 = vmul.f32 0.5, %v1349_v4  ;;  %v1278_v13 = vmax.f32 %v1262_v51, 0.0  ;;  %v1276_v15 = vmax.f32 %v1260_v21, 0.0  ;;  %v1326_v50 = vsel %vm3542_vm13, %v3427_v58, %v1322_v60  ;;  %v3573_v58 = vld [vmem:[%s4323_s2 + $0x10] sm:$0xff] }
 0x2d1   : > { %v1277_v46 = vmax.f32 %v1261_v55, 0.0  ;;  %v1360_v30 = vmul.f32 0.5, %v1359_v0  ;;  %vm1363_vm15 = vweird.f32 %v3431_v10  ;;  %v3576_v60 = vmul.f32 %v3573_v58, %v1326_v50 }
 0x2d2   : > { %v3549_v56 = vpop.eup %2445  ;;  %v3560_v48 = vadd.f32 1e-05, %v1278_v13  ;;  %v3562_v21 = vadd.f32 1e-05, %v1276_v15  ;;  %v1332_v0 = vmul.f32 %v3433_v45, %v1331_v32  ;;  %v1351_v51 = vsub.f32 1.5, %v1350_v8 }
 0x2d3   : > { %v3555_v27 = vpop.eup %2447  ;;  %v1398_v4 = vmul.f32 %v3549_v56, %v3490_v20  ;;  %v3568_v53 = vadd.f32 1e-05, %v1277_v46  ;;  %vm1354_vm0 = vweird.f32 %v3484_v17  ;;  %v3583_v46 = vmul.f32 0.5, %v1369_v59  ;;  %1509 = vrot.lane.b32.xlu0 %v3576_v60, %s2488_s7 }
 0x2d4   : > { %v3564_v23 = vpop.eup %2449  ;;  %v1378_v55 = vmul.f32 %v3555_v27, %v3502_v63  ;;  %2451 = vrsqrt.f32 %v3560_v48  ;;  %v1342_v32 = vmul.f32 %v3421_v37, %v1341_v24  ;;  %v1361_v8 = vsub.f32 1.5, %v1360_v30  ;;  %vm3624_vm5 = vmor %vm1353_vm14, %vm1354_vm0 }
 0x2d5   : > { %v1388_v14 = vmul.f32 %v3564_v23, %v3504_v61  ;;  %v1230_v13 = vpop.xlane.xlu2 %1229  ;;  %2453 = vrsqrt.f32 %v3562_v21  ;;  %v1399_v50 = vmul.f32 %v3549_v56, %v1398_v4  ;;  %v1336_v9 = vsel %vm1335_vm1, %v3433_v45, %v1332_v0 }
 0x2d6   : > { %v1232_v15 = vpop.xlane.xlu0 %1231  ;;  %v1379_v43 = vmul.f32 %v3555_v27, %v1378_v55  ;;  %2455 = vrsqrt.f32 %v3568_v53  ;;  %v1263_v3 = vsub.f32 %v1230_v13, %v3472_v54  ;;  %vm1373_vm3 = vweird.f32 %v3423_v18  ;;  %v3729_v18 = vld [vmem:[%s4323_s2 + $0x40] sm:$0xff] }
 0x2d7   : > { %v1389_v59 = vmul.f32 %v3564_v23, %v1388_v14  ;;  %v1264_v22 = vsub.f32 %v1232_v15, %v3516_v42  ;;  %vm1364_vm4 = vweird.f32 %v3492_v40  ;;  %v1352_v54 = vmul.f32 %v3484_v17, %v1351_v51 }
 0x2d8   : > { %v1380_v55 = vmul.f32 0.5, %v1379_v43  ;;  %v3613_v43 = vld [vmem:[%s4323_s2 + $0x18] sm:$0xff]  ;;  %v1371_v1 = vsub.f32 1.5, %v3583_v46  ;;  %v1279_v30 = vmax.f32 %v1263_v3, 0.0  ;;  %v1346_v0 = vsel %vm3604_vm2, %v3421_v37, %v1342_v32  ;;  %vm3647_vm6 = vmor %vm1363_vm15, %vm1364_vm4 }
 0x2d9   : > { %v1390_v24 = vmul.f32 0.5, %v1389_v59  ;;  %v3616_v45 = vmul.f32 %v3613_v43, %v1336_v9  ;;  %v1280_v4 = vmax.f32 %v1264_v22, 0.0  ;;  %v3633_v14 = vmul.f32 0.5, %v1399_v50  ;;  %v3672_v59 = vld [vmem:[%s4323_s2 + $0x28] sm:$0xff] }
 0x2da   : > { %v3631_v9 = vpop.eup %2451  ;;  %v1381_v51 = vsub.f32 1.5, %v1380_v55  ;;  %v1356_v5 = vsel %vm3624_vm5, %v3484_v17, %v1352_v54  ;;  %v1362_v13 = vmul.f32 %v3492_v40, %v1361_v8  ;;  %v3651_v15 = vadd.f32 1e-05, %v1279_v30  ;;  %v3658_v17 = vld [vmem:[%s4323_s2 + $0x20] sm:$0xff]  ;;  %v3698_v30 = vld [vmem:[%s4323_s2 + $0x30] sm:$0xff] }
 0x2db   : > { %1511 = vrot.lane.b32.xlu1 %v3616_v45, %s2488_s7  ;;  %v3641_v3 = vpop.eup %2453  ;;  %v1391_v22 = vsub.f32 1.5, %v1390_v24  ;;  %v3653_v46 = vadd.f32 1e-05, %v1280_v4  ;;  %v3661_v32 = vmul.f32 %v3658_v17, %v1346_v0  ;;  %v1428_v10 = vmul.f32 %v3631_v9, %v3560_v48 }
 0x2dc   : > { %v3663_v8 = vpop.eup %2455  ;;  %v1408_v50 = vmul.f32 %v3641_v3, %v3562_v21  ;;  %v3675_v55 = vmul.f32 %v3672_v59, %v1356_v5  ;;  %v1366_v26 = vsel %vm3647_vm6, %v3492_v40, %v1362_v13  ;;  %vm1374_vm7 = vweird.f32 %v3468_v29 }
 0x2dd   : > { %vm1384_vm8 = vweird.f32 %v3555_v27  ;;  %v1418_v24 = vmul.f32 %v3663_v8, %v3568_v53  ;;  %2457 = vrsqrt.f32 %v3651_v15  ;;  %1513 = vrot.lane.b32.xlu0 %v3661_v32, %s2488_s7  ;;  %vm1383_vm9 = vweird.f32 %v3502_v63  ;;  %vm3711_vm12 = vmor %vm1373_vm3, %vm1374_vm7 }
 0x2de   : > { %vm1394_vm10 = vweird.f32 %v3564_v23  ;;  %v1409_v54 = vmul.f32 %v3641_v3, %v1408_v50  ;;  %2459 = vrsqrt.f32 %v3653_v46  ;;  %1515 = vrot.lane.b32.xlu2 %v3675_v55, %s2488_s7  ;;  %v1401_v40 = vsub.f32 1.5, %v3633_v14  ;;  %vm1385_vm11 = vmor %vm1383_vm9, %vm1384_vm8 }
 0x2df   : > { %v1419_v42 = vmul.f32 %v3663_v8, %v1418_v24  ;;  %v3701_v63 = vmul.f32 %v3698_v30, %v1366_v26  ;;  %v1382_v4 = vmul.f32 %v3555_v27, %v1381_v51  ;;  %v1429_v0 = vmul.f32 %v3631_v9, %v1428_v10 }
 0x2e0   : > { %v1410_v5 = vmul.f32 0.5, %v1409_v54  ;;  %v1372_v13 = vmul.f32 %v3468_v29, %v1371_v1  ;;  %v1392_v14 = vmul.f32 %v3564_v23, %v1391_v22  ;;  %vm1393_vm13 = vweird.f32 %v3504_v61  ;;  %v3741_v54 = vld [vmem:[%s4323_s2 + $0x38] sm:$0xff] }
 0x2e1   : > { %v1420_v50 = vmul.f32 0.5, %v1419_v42  ;;  %v1386_v51 = vsel %vm1385_vm11, %v3555_v27, %v1382_v4  ;;  %vm1404_vm14 = vweird.f32 %v3549_v56  ;;  %vm3720_vm15 = vmor %vm1393_vm13, %vm1394_vm10  ;;  %v2489_v10 = vmov 1  }
 0x2e2   : > { %v1411_v22 = vsub.f32 1.5, %v1410_v5  ;;  %v3732_v61 = vmul.f32 %v3729_v18, %v1386_v51  ;;  %v1376_v27 = vsel %vm3711_vm12, %v3468_v29, %v1372_v13  ;;  %2422 = vset.pattern.permute.xlu0 %v2489_v10  ;;  %vm1414_vm0 = vweird.f32 %v3641_v3  ;;  %2420 = vset.pattern.permute.xlu2 %v2489_v10 }
 0x2e3   : > { %1517 = vrot.lane.b32.xlu1 %v3701_v63, %s2488_s7  ;;  %v2458_v26 = vpop.eup %2457  ;;  %v1421_v24 = vsub.f32 1.5, %v1420_v50  ;;  %v3744_v42 = vmul.f32 %v3741_v54, %v1376_v27  ;;  %v1396_v4 = vsel %vm3720_vm15, %v3564_v23, %v1392_v14  ;;  %v1430_v5 = vmul.f32 0.5, %v1429_v0 }
 0x2e4   : > { %2421 = vset.pattern.permute.xlu1 %v2489_v10  ;;  %v2460_v29 = vpop.eup %2459  ;;  %v1438_v13 = vmul.f32 %v2458_v26, %v3651_v15  ;;  %v1412_v37 = vmul.f32 %v3641_v3, %v1411_v22  ;;  %v1402_v50 = vmul.f32 %v3549_v56, %v1401_v40  ;;  %vm1413_vm1 = vweird.f32 %v3562_v21  ;;  %v3768_v21 = vld [vmem:[%s4323_s2 + $0x48] sm:$0xff] }
 0x2e5   : > { %v1448_v51 = vmul.f32 %v2460_v29, %v3653_v46  ;;  %1519 = vrot.lane.b32.xlu0 %v3744_v42, %s2488_s7  ;;  %vm1403_vm2 = vweird.f32 %v3490_v20  ;;  %vm3759_vm3 = vmor %vm1413_vm1, %vm1414_vm0  ;;  %4522 = vst [vmem:[#allocation92_spill] sm:$0xff] %v3768_v21  ;;  %v1466_v40 = vmul.f32 %v3768_v21, %v1396_v4  ;;  %vm1424_vm5 = vweird.f32 %v3663_v8 }
 0x2e6   : > { %v1439_v0 = vmul.f32 %v2458_v26, %v1438_v13  ;;  %1521 = vrot.lane.b32.xlu2 %v3732_v61, %s2488_s7  ;;  %vm3773_vm4 = vmor %vm1403_vm2, %vm1404_vm14  ;;  %v1416_v1 = vsel %vm3759_vm3, %v3641_v3, %v1412_v37  ;;  %v1422_v22 = vmul.f32 %v3663_v8, %v1421_v24  ;;  %v1431_v27 = vsub.f32 1.5, %v1430_v5  ;;  %v3794_v3 = vld [vmem:[%s4323_s2 + $0x58] sm:$0xff] }
 0x2e7   : > { %v1449_v14 = vmul.f32 %v2460_v29, %v1448_v51  ;;  %v1406_v4 = vsel %vm3773_vm4, %v3549_v56, %v1402_v50  ;;  %vm1423_vm6 = vweird.f32 %v3568_v53  ;;  %v1468_v24 = vmul.f32 %v3794_v3, %v1416_v1  ;;  %v3800_v56 = vld [vmem:[%s4323_s2 + $0x50] sm:$0xff]  ;;  %v3830_v1 = vld [vmem:[%s4323_s2 + $0x68] sm:$0xff] }
 0x2e8   : > { %v1440_v10 = vmul.f32 0.5, %v1439_v0  ;;  %vm3786_vm7 = vmor %vm1423_vm6, %vm1424_vm5  ;;  %vm1444_vm8 = vweird.f32 %v2458_v26  ;;  %v1467_v53 = vmul.f32 %v3800_v56, %v1406_v4  ;;  %vm1434_vm9 = vweird.f32 %v3631_v9  ;;  %v3815_v0 = vld [vmem:[%s4323_s2 + $0x60] sm:$0xff] }
 0x2e9   : > { %v1450_v13 = vmul.f32 0.5, %v1449_v14  ;;  %v1426_v37 = vsel %vm3786_vm7, %v3663_v8, %v1422_v22  ;;  %v1432_v23 = vmul.f32 %v3631_v9, %v1431_v27  ;;  %vm1443_vm10 = vweird.f32 %v3651_v15 }
 0x2ea   : > { %v1441_v51 = vsub.f32 1.5, %v1440_v10  ;;  %vm1433_vm11 = vweird.f32 %v3560_v48  ;;  %vm1445_vm12 = vmor %vm1443_vm10, %vm1444_vm8  ;;  %v1469_v8 = vmul.f32 %v3815_v0, %v1426_v37  ;;  %vm1454_vm14 = vweird.f32 %v2460_v29  ;;  %v3824_v48 = vld [vmem:[%s4323_s2 + $0x70] sm:$0xff] }
 0x2eb   : > { %1523 = vrot.lane.b32.xlu1 %v1466_v40, %s2488_s7  ;;  %v1451_v5 = vsub.f32 1.5, %v1450_v13  ;;  %vm1435_vm13 = vmor %vm1433_vm11, %vm1434_vm9  ;;  %vm1453_vm15 = vweird.f32 %v3653_v46  ;;  %v3838_v46 = vld [vmem:[%s4323_s2 + $0x78] sm:$0xff] }
 0x2ec   : > { %v1442_v50 = vmul.f32 %v2458_v26, %v1441_v51  ;;  %v1436_v15 = vsel %vm1435_vm13, %v3631_v9, %v1432_v23  ;;  %vm1455_vm0 = vmor %vm1453_vm15, %vm1454_vm14 }
 0x2ed   : > { %1525 = vrot.lane.b32.xlu0 %v1467_v53, %s2488_s7  ;;  %v1452_v20 = vmul.f32 %v2460_v29, %v1451_v5 }
 0x2ee   : > { %1527 = vrot.lane.b32.xlu2 %v1468_v24, %s2488_s7  ;;  %v1446_v21 = vsel %vm1445_vm12, %v2458_v26, %v1442_v50  ;;  %v1470_v26 = vmul.f32 %v3830_v1, %v1436_v15  ;;  %v4533_v15 = vld [vmem:[#allocation32_spill] sm:$0xff] }
 0x2ef   : > { %v1471_v14 = vmul.f32 %v3824_v48, %v1446_v21  ;;  %v1456_v9 = vsel %vm1455_vm0, %v2460_v29, %v1452_v20 }
 0x2f0   : > { %v1472_v22 = vmul.f32 %v3838_v46, %v1456_v9 }
 0x2f3   : > { %1529 = vrot.lane.b32.xlu1 %v1469_v8, %s2488_s7 }
 0x2f5   : > { %1531 = vrot.lane.b32.xlu0 %v1470_v26, %s2488_s7 }
 0x2f6   : > { %1533 = vrot.lane.b32.xlu2 %v1471_v14, %s2488_s7 }
 0x2fb   : > { %1535 = vrot.lane.b32.xlu1 %v1472_v22, %s2488_s7  ;;  %s2388_s7 = sshll.u32 %s4631_s16, 9 }
 0x2fc   : > { %s3926_s18 = scalar_lea.vmem %s4325_s4, %s2388_s7 }
 0x2fd   : > { %1658 = vperm.xlu0 %2422, %v3576_v60   ;;  %v4527_v60 = vmov 0  }
 0x2fe   : > { %1650 = vperm.xlu2 %2420, %v3534_v16   ;;  %v1474_v16 = vsub.f32 %v3479_v38, %v3350_v19  ;;  %v1475_v19 = vsub.f32 %v3573_v58, %v3348_v2  ;;  %v1477_v2 = vsub.f32 %v3658_v17, %v3358_v34 }
 0x303   : > { %1654 = vperm.xlu1 %2421, %v3482_v41  }
 0x305   : > { %1678 = vperm.xlu0 %2422, %v3744_v42  }
 0x306   : > { %1662 = vperm.xlu2 %2420, %v3616_v45  }
 0x30b   : > { %1666 = vperm.xlu1 %2421, %v3661_v32  }
 0x30d   : > { %1690 = vperm.xlu0 %2422, %v1467_v53  }
 0x30e   : > { %1670 = vperm.xlu2 %2420, %v3675_v55  }
 0x313   : > { %1674 = vperm.xlu1 %2421, %v3701_v63  }
 0x315   : > { %1702 = vperm.xlu0 %2422, %v1470_v26  }
 0x316   : > { %1682 = vperm.xlu2 %2420, %v3732_v61   ;;  %v1473_v61 = vsub.f32 %v3531_v28, %v3352_v33  ;;  %v1476_v33 = vsub.f32 %v3613_v43, %v3356_v31 }
 0x31b   : > { %1686 = vperm.xlu1 %2421, %v1466_v40  }
 0x31d   : > { %2423 = vset.pattern.permute.xlu0 %v4527_v60 }
 0x31e   : > { %1694 = vperm.xlu2 %2420, %v1468_v24  }
 0x323   : > { %1698 = vperm.xlu1 %2421, %v1469_v8  }
 0x324   : > { %v1508_v41 = vpop.permute.xlu2 %1507 }
 0x325   : > { %v1554_v45 = vmul.f32 %v1508_v41, %v1474_v16  ;;  %v4535_v16 = vld [vmem:[#allocation89_spill] sm:$0xff] }
 0x326   : > { %1706 = vperm.xlu2 %2420, %v1471_v14  }
 0x327   : > { %v1634_v32 = vadd.f32 %v2873_v25, %v1554_v45  ;;  %v1478_v25 = vsub.f32 %v3672_v59, %v3354_v36  ;;  %v1481_v36 = vsub.f32 %v3729_v18, %v3360_v62  ;;  %v1480_v62 = vsub.f32 %v3741_v54, %v3364_v6  ;;  %v4530_v6 = vld [vmem:[#allocation37_spill] sm:$0xff] }
 0x328   : > { %v1485_v45 = vsub.f32 %v3815_v0, %v4535_v16 }
 0x32b   : > { %1710 = vperm.xlu1 %2421, %v1472_v22  }
 0x32e   : > { %2424 = vset.pattern.permute.xlu2 %v4527_v60 }
 0x32f   : > { %1784 = vperm.xlu2 %2424, %v1634_v32  }
 0x333   : > { %2425 = vset.pattern.permute.xlu1 %v4527_v60  ;;  %v4534_v60 = vld [vmem:[#allocation54_spill] sm:$0xff] }
 0x338   : > { %v1516_v55 = vpop.permute.xlu2 %1515 }
 0x339   : > { %v1558_v4 = vmul.f32 %v1516_v55, %v1478_v25 }
 0x33f   : > { %v1506_v42 = vpop.permute.xlu1 %1505 }
 0x340   : > { %v1522_v63 = vpop.permute.xlu2 %1521  ;;  %v1553_v29 = vmul.f32 %v1506_v42, %v1473_v61  ;;  %v4537_v61 = vld [vmem:[#allocation90_spill] sm:$0xff] }
 0x341   : > { %v1561_v5 = vmul.f32 %v1522_v63, %v1481_v36  ;;  %v1486_v42 = vsub.f32 %v3830_v1, %v4537_v61 }
 0x342   : > { %v1633_v40 = vadd.f32 %v2790_v44, %v1553_v29  ;;  %v1638_v44 = vadd.f32 %v2835_v49, %v1558_v4  ;;  %v1479_v49 = vsub.f32 %v3698_v30, %v3362_v35  ;;  %v4528_v30 = vld [vmem:[#allocation86_spill] sm:$0xff]  ;;  %v4538_v29 = vld [vmem:[#allocation41_spill] sm:$0xff]  ;;  %v4540_v4 = vld [vmem:[#allocation91_spill] sm:$0xff] }
 0x343   : > { %v1641_v34 = vadd.f32 %v2866_v52, %v1561_v5  ;;  %v4529_v52 = vld [vmem:[#allocation92_spill] sm:$0xff]  ;;  %v1488_v0 = vsub.f32 %v3838_v46, %v4540_v4  ;;  %v4544_v5 = vld [vmem:[#allocation7_spill] sm:$0xff] }
 0x344   : > { %1779 = vperm.xlu0 %2423, %v1633_v40   ;;  %v1482_v23 = vsub.f32 %v4529_v52, %v4528_v30 }
 0x345   : > { %v1510_v38 = vpop.permute.xlu0 %1509 }
 0x346   : > { %v1555_v10 = vmul.f32 %v1510_v38, %v1475_v19 }
 0x348   : > { %v1528_v27 = vpop.permute.xlu2 %1527  ;;  %v1635_v13 = vadd.f32 %v2803_v57, %v1555_v10 }
 0x34a   : > { %1789 = vperm.xlu1 %2425, %v1635_v13  }
 0x34c   : > { %1804 = vperm.xlu0 %2423, %v1638_v44  }
 0x34d   : > { %v1512_v28 = vpop.permute.xlu1 %1511 }
 0x34e   : > { %v1556_v51 = vmul.f32 %v1512_v28, %v1476_v33  ;;  %v4541_v28 = vld [vmem:[#allocation48_spill] sm:$0xff] }
 0x34f   : > { %v1514_v59 = vpop.permute.xlu0 %1513 }
 0x350   : > { %v1636_v58 = vadd.f32 %v2819_v11, %v1556_v51  ;;  %v1534_v24 = vpop.permute.xlu2 %1533  ;;  %v1557_v57 = vmul.f32 %v1514_v59, %v1477_v2  ;;  %v1484_v11 = vsub.f32 %v3794_v3, %v3366_v12  ;;  %v4531_v12 = vld [vmem:[#allocation87_spill] sm:$0xff]  ;;  %v4532_v3 = vld [vmem:[#allocation88_spill] sm:$0xff]  ;;  %v4542_v51 = vmov 3  }
 0x351   : > { %v1487_v20 = vsub.f32 %v3824_v48, %v4532_v3  ;;  %v4548_v3 = vld [vmem:[#allocation2_spill] sm:$0xff] }
 0x352   : > { %1794 = vperm.xlu2 %2424, %v1636_v58   ;;  %v1637_v31 = vadd.f32 %v2901_v47, %v1557_v57  ;;  %v1564_v50 = vmul.f32 %v1528_v27, %v1484_v11  ;;  %v4539_v27 = vld [vmem:[#allocation61_spill] sm:$0xff] }
 0x353   : > { %v1567_v22 = vmul.f32 %v1534_v24, %v1487_v20  ;;  %v4543_v24 = vld [vmem:[#allocation6_spill] sm:$0xff] }
 0x354   : > { %1799 = vperm.xlu1 %2425, %v1637_v31   ;;  %1819 = vperm.xlu0 %2423, %v1641_v34   ;;  %v1644_v54 = vadd.f32 %v4530_v6, %v1564_v50  ;;  %v4545_v31 = vld [vmem:[#allocation8_spill] sm:$0xff] }
 0x355   : > { %v1518_v43 = vpop.permute.xlu1 %1517 }
 0x356   : > { %v1559_v17 = vmul.f32 %v1518_v43, %v1479_v49  ;;  %v4546_v43 = vld [vmem:[#allocation9_spill] sm:$0xff] }
 0x357   : > { %v1520_v53 = vpop.permute.xlu0 %1519 }
 0x358   : > { %v1639_v18 = vadd.f32 %v2849_v7, %v1559_v17  ;;  %v3882_v37 = vpop.permute.xlu2 %1650  ;;  %v1560_v47 = vmul.f32 %v1520_v53, %v1480_v62  ;;  %v1483_v7 = vsub.f32 %v3800_v56, %v4531_v12  ;;  %v4536_v56 = vld [vmem:[#allocation43_spill] sm:$0xff] }
 0x359   : > { %v1647_v55 = vadd.f32 %v4536_v56, %v1567_v22  ;;  %v4547_v53 = vld [vmem:[#allocation55_spill] sm:$0xff]  ;;  %v3940_v20 = vmul.f32 %v3882_v37, %v4548_v3  ;;  %v4551_v22 = vld [vmem:[#allocation5_spill] sm:$0xff]  ;;  %v4554_v56 = vld [vmem:[#allocation16_spill] sm:$0xff] }
 0x35a   : > { %1809 = vperm.xlu2 %2424, %v1639_v18   ;;  %v1640_v35 = vadd.f32 %v2936_v39, %v1560_v47 }
 0x35c   : > { %1814 = vperm.xlu1 %2425, %v1640_v35   ;;  %1834 = vperm.xlu0 %2423, %v1644_v54  }
 0x35d   : > { %v1524_v8 = vpop.permute.xlu1 %1523 }
 0x35e   : > { %v1562_v21 = vmul.f32 %v1524_v8, %v1482_v23 }
 0x35f   : > { %v1526_v26 = vpop.permute.xlu0 %1525 }
 0x360   : > { %v1642_v14 = vadd.f32 %v4533_v15, %v1562_v21  ;;  %v3893_v9 = vpop.permute.xlu2 %1662  ;;  %v1563_v39 = vmul.f32 %v1526_v26, %v1483_v7  ;;  %v4549_v15 = vld [vmem:[#allocation3_spill] sm:$0xff]  ;;  %v4550_v26 = vld [vmem:[#allocation4_spill] sm:$0xff] }
 0x362   : > { %1824 = vperm.xlu2 %2424, %v1642_v14   ;;  %v1643_v41 = vadd.f32 %v4534_v60, %v1563_v39  ;;  %v3944_v14 = vmul.f32 %v3882_v37, %v4549_v15  ;;  %v3948_v39 = vmul.f32 %v3882_v37, %v4550_v26  ;;  %v3952_v60 = vmul.f32 %v3882_v37, %v4551_v22 }
 0x364   : > { %1829 = vperm.xlu1 %2425, %v1643_v41   ;;  %1849 = vperm.xlu0 %2423, %v1647_v55   ;;  %v4552_v41 = vld [vmem:[#allocation14_spill] sm:$0xff]  ;;  %v1727_v55 = vmul.f32 %v3893_v9, %v4554_v56  ;;  %v4577_v56 = vld [vmem:[#allocation19_spill] sm:$0xff] }
 0x365   : > { %v1530_v32 = vpop.permute.xlu1 %1529  ;;  %v1725_v16 = vmul.f32 %v3893_v9, %v4552_v41  ;;  %v4576_v41 = vld [vmem:[#allocation18_spill] sm:$0xff] }
 0x366   : > { %v1565_v63 = vmul.f32 %v1530_v32, %v1485_v45  ;;  %v4553_v45 = vld [vmem:[#allocation15_spill] sm:$0xff] }
 0x367   : > { %v1532_v19 = vpop.permute.xlu0 %1531  ;;  %v1726_v32 = vmul.f32 %v3893_v9, %v4553_v45 }
 0x368   : > { %v1645_v40 = vadd.f32 %v4538_v29, %v1565_v63  ;;  %v3902_v25 = vpop.permute.xlu2 %1670  ;;  %v1566_v38 = vmul.f32 %v1532_v19, %v1486_v42  ;;  %v4555_v63 = vld [vmem:[#allocation17_spill] sm:$0xff]  ;;  %v4556_v42 = vld [vmem:[#allocation22_spill] sm:$0xff]  ;;  %v4558_v19 = vld [vmem:[#allocation24_spill] sm:$0xff] }
 0x369   : > { %v1728_v61 = vmul.f32 %v3893_v9, %v4555_v63  ;;  %v3964_v29 = vmul.f32 %v3902_v25, %v4556_v42  ;;  %v4561_v9 = vld [vmem:[#allocation11_spill] sm:$0xff]  ;;  %v4578_v42 = vld [vmem:[#allocation20_spill] sm:$0xff] }
 0x36a   : > { %1839 = vperm.xlu2 %2424, %v1645_v40   ;;  %v1646_v10 = vadd.f32 %v4539_v27, %v1566_v38  ;;  %v4557_v40 = vld [vmem:[#allocation23_spill] sm:$0xff]  ;;  %v3972_v38 = vmul.f32 %v3902_v25, %v4558_v19  ;;  %v4559_v27 = vld [vmem:[#allocation25_spill] sm:$0xff] }
 0x36b   : > { %v3968_v37 = vmul.f32 %v3902_v25, %v4557_v40  ;;  %v4579_v19 = vld [vmem:[#allocation21_spill] sm:$0xff] }
 0x36c   : > { %1844 = vperm.xlu1 %2425, %v1646_v10   ;;  %2428 = vset.pattern.permute.xlu0 %v4542_v51  ;;  %v3976_v10 = vmul.f32 %v3902_v25, %v4559_v27  ;;  %v4566_v25 = vld [vmem:[#allocation38_spill] sm:$0xff] }
 0x36d   : > { %v1536_v13 = vpop.permute.xlu1 %1535  ;;  %2046 = vperm.xlu0 %2428, %v3838_v46  }
 0x36e   : > { %v1568_v33 = vmul.f32 %v1536_v13, %v1488_v0  ;;  %v4560_v0 = vld [vmem:[#allocation10_spill] sm:$0xff] }
 0x36f   : > { %v1659_v54 = vpop.permute.xlu0 %1658 }
 0x370   : > { %v1648_v44 = vadd.f32 %v4541_v28, %v1568_v33  ;;  %v1683_v2 = vpop.permute.xlu2 %1682  ;;  %v3979_v13 = vmul.f32 %v1659_v54, %v4560_v0  ;;  %v3982_v33 = vmul.f32 %v1659_v54, %v4561_v9  ;;  %v4562_v28 = vld [vmem:[#allocation12_spill] sm:$0xff]  ;;  %v4581_v0 = vld [vmem:[#allocation46_spill] sm:$0xff] }
 0x372   : > { %1854 = vperm.xlu2 %2424, %v1648_v44   ;;  %v3985_v44 = vmul.f32 %v1659_v54, %v4562_v28  ;;  %v4582_v28 = vld [vmem:[#allocation47_spill] sm:$0xff] }
 0x374   : > { %2427 = vset.pattern.permute.xlu1 %v4542_v51 }
 0x375   : > { %2042 = vperm.xlu1 %2427, %v3824_v48   ;;  %v1655_v59 = vpop.permute.xlu1 %1654 }
 0x376   : > { %v1717_v57 = vmul.f32 %v1655_v59, %v4543_v24  ;;  %v1718_v46 = vmul.f32 %v1655_v59, %v4544_v5  ;;  %v1719_v49 = vmul.f32 %v1655_v59, %v4545_v31  ;;  %v1720_v34 = vmul.f32 %v1655_v59, %v4546_v43  ;;  %v4564_v24 = vld [vmem:[#allocation35_spill] sm:$0xff]  ;;  %v4565_v5 = vld [vmem:[#allocation36_spill] sm:$0xff] }
 0x377   : > { %v1679_v12 = vpop.permute.xlu0 %1678  ;;  %v3997_v31 = vmul.f32 %v1683_v2, %v4566_v25 }
 0x378   : > { %v3912_v36 = vpop.permute.xlu2 %1694 }
 0x37a   : > { %2426 = vset.pattern.permute.xlu2 %v4542_v51  ;;  %v4563_v51 = vld [vmem:[#allocation13_spill] sm:$0xff] }
 0x37b   : > { %2038 = vperm.xlu2 %2426, %v3830_v1   ;;  %v3988_v59 = vmul.f32 %v1659_v54, %v4563_v51 }
 0x37d   : > { %v1667_v1 = vpop.permute.xlu1 %1666 }
 0x37e   : > { %v4031_v45 = vmul.f32 %v1667_v1, %v4576_v41  ;;  %v4034_v63 = vmul.f32 %v1667_v1, %v4577_v56  ;;  %v4037_v40 = vmul.f32 %v1667_v1, %v4578_v42  ;;  %v4040_v27 = vmul.f32 %v1667_v1, %v4579_v19  ;;  %v4583_v1 = vld [vmem:[#allocation49_spill] sm:$0xff]  ;;  %v4589_v19 = vld [vmem:[#allocation71_spill] sm:$0xff] }
 0x37f   : > { %v1691_v4 = vpop.permute.xlu0 %1690  ;;  %v4588_v41 = vld [vmem:[#allocation29_spill] sm:$0xff] }
 0x380   : > { %v3916_v58 = vpop.permute.xlu2 %1706  ;;  %v4047_v9 = vmul.f32 %v1691_v4, %v4581_v0  ;;  %v4050_v51 = vmul.f32 %v1691_v4, %v4582_v28  ;;  %v4597_v28 = vld [vmem:[#allocation40_spill] sm:$0xff] }
 0x385   : > { %v1675_v21 = vpop.permute.xlu1 %1674 }
 0x386   : > { %v1740_v56 = vmul.f32 %v1675_v21, %v4588_v41 }
 0x389   : > { %v1785_v17 = vpop.permute.xlu2 %1784 }
 0x38a   : > { %v1861_v62 = vadd.f32 %v1785_v17, %v1717_v57  ;;  %v1862_v48 = vadd.f32 %v1785_v17, %v1718_v46  ;;  %v1863_v11 = vadd.f32 %v1785_v17, %v1719_v49  ;;  %v1864_v18 = vadd.f32 %v1785_v17, %v1720_v34  ;;  %v4567_v49 = vld [vmem:[#allocation39_spill] sm:$0xff]  ;;  %v4568_v34 = vld [vmem:[#allocation30_spill] sm:$0xff] }
 0x38b   : > { %v3991_v57 = vmul.f32 %v1683_v2, %v4564_v24  ;;  %v3994_v46 = vmul.f32 %v1683_v2, %v4565_v5  ;;  %v4000_v43 = vmul.f32 %v1683_v2, %v4567_v49  ;;  %v4003_v17 = vmul.f32 %v1679_v12, %v4568_v34  ;;  %v4584_v5 = vld [vmem:[#allocation50_spill] sm:$0xff] }
 0x38c   : > { %vm1925_vm1 = vcmp.ge.f32.partialorder %v1861_v62, 0.0  ;;  %vm1926_vm2 = vcmp.ge.f32.partialorder %v1862_v48, 0.0  ;;  %vm1927_vm3 = vcmp.ge.f32.partialorder %v1863_v11, 0.0  ;;  %vm1928_vm4 = vcmp.ge.f32.partialorder %v1864_v18, 0.0  ;;  %v4585_v49 = vld [vmem:[#allocation26_spill] sm:$0xff] }
 0x38d   : > { %v2053_v47 = vmul.f32 %v4547_v53, %v1861_v62  ;;  %v2054_v50 = vmul.f32 %v4547_v53, %v1862_v48  ;;  %v2055_v35 = vmul.f32 %v4547_v53, %v1863_v11  ;;  %v2056_v30 = vmul.f32 %v4547_v53, %v1864_v18  ;;  %v3936_v7 = vpop.permute.xlu1 %1686  ;;  %v4571_v53 = vld [vmem:[#allocation34_spill] sm:$0xff] }
 0x38e   : > { %v4053_v24 = vmul.f32 %v1691_v4, %v4583_v1  ;;  %v4056_v25 = vmul.f32 %v1691_v4, %v4584_v5  ;;  %v1737_v34 = vmul.f32 %v1675_v21, %v4585_v49  ;;  %v4068_v4 = vmul.f32 %v3916_v58, %v4589_v19  ;;  %v4598_v5 = vld [vmem:[#allocation42_spill] sm:$0xff] }
 0x38f   : > { %v2117_v52 = vsel %vm1925_vm1, %v1861_v62, %v2053_v47  ;;  %v2118_v23 = vsel %vm1926_vm2, %v1862_v48, %v2054_v50  ;;  %v2119_v8 = vsel %vm1927_vm3, %v1863_v11, %v2055_v35  ;;  %v2120_v6 = vsel %vm1928_vm4, %v1864_v18, %v2056_v30  ;;  %v4569_v62 = vld [vmem:[#allocation31_spill] sm:$0xff]  ;;  %v4570_v11 = vld [vmem:[#allocation33_spill] sm:$0xff] }
 0x390   : > { %2181 = vst [vmem:[%s3926_s18 + $0x20] sm:$0xff] %v2117_v52  ;;  %v4006_v48 = vmul.f32 %v1679_v12, %v4569_v62  ;;  %v4009_v18 = vmul.f32 %v1679_v12, %v4570_v11  ;;  %v4012_v47 = vmul.f32 %v1679_v12, %v4571_v53  ;;  %v4572_v50 = vld [vmem:[#allocation51_spill] sm:$0xff]  ;;  %v4573_v30 = vld [vmem:[#allocation53_spill] sm:$0xff]  ;;  %v4574_v52 = vld [vmem:[#allocation56_spill] sm:$0xff]  ;;  %v4059_v62 = vpop.permute.xlu0 %1702  ;;  %v1749_v1 = vmul.f32 %v3936_v7, %v4597_v28 }
 0x391   : > { %2182 = vst [vmem:[%s3926_s18 + $0x28] sm:$0xff] %v2118_v23  ;;  %v4016_v35 = vmul.f32 %v3912_v36, %v4572_v50  ;;  %v4020_v2 = vmul.f32 %v3912_v36, %v4573_v30  ;;  %v4024_v23 = vmul.f32 %v3912_v36, %v4574_v52  ;;  %v4586_v30 = vld [vmem:[#allocation27_spill] sm:$0xff]  ;;  %v1750_v49 = vmul.f32 %v3936_v7, %v4598_v5  ;;  %v4607_v5 = vld [vmem:[#allocation64_spill] sm:$0xff] }
 0x392   : > { %2183 = vst [vmem:[%s3926_s18 + $0x30] sm:$0xff] %v2119_v8  ;;  %v4575_v8 = vld [vmem:[#allocation57_spill] sm:$0xff]  ;;  %v1738_v52 = vmul.f32 %v1675_v21, %v4586_v30 }
 0x393   : > { %2184 = vst [vmem:[%s3926_s18 + $0x38] sm:$0xff] %v2120_v6  ;;  %v4028_v6 = vmul.f32 %v3912_v36, %v4575_v8  ;;  %v4580_v36 = vld [vmem:[#allocation60_spill] sm:$0xff] }
 0x394   : > { %v4587_v8 = vld [vmem:[#allocation28_spill] sm:$0xff]  ;;  %4590 = vst [vmem:[#allocation86_spill] sm:$0xff] %v4068_v4 }
 0x395   : > { %v1699_v3 = vpop.permute.xlu1 %1698 }
 0x3ac   : > { %v1795_v54 = vpop.permute.xlu2 %1794 }
 0x3ad   : > { %v1869_v12 = vadd.f32 %v1795_v54, %v1725_v16  ;;  %v1870_v15 = vadd.f32 %v1795_v54, %v1726_v32  ;;  %v1871_v26 = vadd.f32 %v1795_v54, %v1727_v55  ;;  %v1872_v22 = vadd.f32 %v1795_v54, %v1728_v61 }
 0x3ae   : > { %v1739_v54 = vmul.f32 %v1675_v21, %v4587_v8  ;;  %v4600_v8 = vld [vmem:[#allocation65_spill] sm:$0xff] }
 0x3af   : > { %vm1933_vm5 = vcmp.ge.f32.partialorder %v1869_v12, 0.0  ;;  %vm1934_vm6 = vcmp.ge.f32.partialorder %v1870_v15, 0.0  ;;  %vm1935_vm7 = vcmp.ge.f32.partialorder %v1871_v26, 0.0  ;;  %vm1936_vm8 = vcmp.ge.f32.partialorder %v1872_v22, 0.0 }
 0x3b0   : > { %v2061_v16 = vmul.f32 %v4580_v36, %v1869_v12  ;;  %v2062_v32 = vmul.f32 %v4580_v36, %v1870_v15  ;;  %v2063_v55 = vmul.f32 %v4580_v36, %v1871_v26  ;;  %v2064_v61 = vmul.f32 %v4580_v36, %v1872_v22  ;;  %v4591_v36 = vld [vmem:[#allocation73_spill] sm:$0xff] }
 0x3b1   : > { %v4072_v0 = vmul.f32 %v3916_v58, %v4591_v36  ;;  %v4604_v36 = vld [vmem:[#allocation58_spill] sm:$0xff] }
 0x3b2   : > { %v2125_v11 = vsel %vm1933_vm5, %v1869_v12, %v2061_v16  ;;  %v2126_v53 = vsel %vm1934_vm6, %v1870_v15, %v2062_v32  ;;  %v2127_v50 = vsel %vm1935_vm7, %v1871_v26, %v2063_v55  ;;  %v2128_v42 = vsel %vm1936_vm8, %v1872_v22, %v2064_v61  ;;  %v4593_v12 = vld [vmem:[#allocation75_spill] sm:$0xff]  ;;  %v4595_v26 = vld [vmem:[#allocation76_spill] sm:$0xff] }
 0x3b3   : > { %2189 = vst [vmem:[%s3926_s18 + $0x60] sm:$0xff] %v2125_v11  ;;  %v4076_v15 = vmul.f32 %v3916_v58, %v4593_v12  ;;  %v4080_v16 = vmul.f32 %v3916_v58, %v4595_v26  ;;  %v4599_v11 = vld [vmem:[#allocation44_spill] sm:$0xff]  ;;  %v4092_v58 = vmul.f32 %v4059_v62, %v4600_v8  ;;  %v1761_v12 = vmul.f32 %v1699_v3, %v4604_v36  ;;  %v4608_v36 = vld [vmem:[#allocation77_spill] sm:$0xff] }
 0x3b4   : > { %4592 = vst [vmem:[#allocation92_spill] sm:$0xff] %v4072_v0  ;;  %v1810_v21 = vpop.permute.xlu2 %1809  ;;  %v1751_v30 = vmul.f32 %v3936_v7, %v4599_v11  ;;  %v1764_v11 = vmul.f32 %v1699_v3, %v4607_v5 }
 0x3b5   : > { %4594 = vst [vmem:[#allocation37_spill] sm:$0xff] %v4076_v15  ;;  %v1881_v22 = vadd.f32 %v1810_v21, %v1737_v34  ;;  %v1882_v32 = vadd.f32 %v1810_v21, %v1738_v52  ;;  %v1883_v55 = vadd.f32 %v1810_v21, %v1739_v54  ;;  %v1884_v61 = vadd.f32 %v1810_v21, %v1740_v56  ;;  %v4602_v34 = vld [vmem:[#allocation62_spill] sm:$0xff]  ;;  %v4603_v56 = vld [vmem:[#allocation45_spill] sm:$0xff]  ;;  %v4606_v21 = vld [vmem:[#allocation63_spill] sm:$0xff] }
 0x3b6   : > { %4596 = vst [vmem:[#allocation87_spill] sm:$0xff] %v4080_v16  ;;  %v1752_v19 = vmul.f32 %v3936_v7, %v4603_v56  ;;  %v1763_v28 = vmul.f32 %v1699_v3, %v4606_v21  ;;  %v1780_v0 = vpop.permute.xlu0 %1779  ;;  %v4609_v21 = vld [vmem:[#allocation78_spill] sm:$0xff] }
 0x3b7   : > { %2190 = vst [vmem:[%s3926_s18 + $0x68] sm:$0xff] %v2126_v53  ;;  %v1711_v53 = vpop.permute.xlu1 %1710  ;;  %vm1945_vm9 = vcmp.ge.f32.partialorder %v1881_v22, 0.0  ;;  %vm1946_vm10 = vcmp.ge.f32.partialorder %v1882_v32, 0.0  ;;  %vm1947_vm11 = vcmp.ge.f32.partialorder %v1883_v55, 0.0  ;;  %vm1948_vm12 = vcmp.ge.f32.partialorder %v1884_v61, 0.0 }
 0x3b8   : > { %2191 = vst [vmem:[%s3926_s18 + $0x70] sm:$0xff] %v2127_v50  ;;  %v2073_v50 = vmul.f32 %v4602_v34, %v1881_v22  ;;  %v2074_v52 = vmul.f32 %v4602_v34, %v1882_v32  ;;  %v2075_v54 = vmul.f32 %v4602_v34, %v1883_v55  ;;  %v2076_v41 = vmul.f32 %v4602_v34, %v1884_v61 }
 0x3b9   : > { %4601 = vst [vmem:[#allocation88_spill] sm:$0xff] %v4092_v58  ;;  %v1857_v34 = vadd.f32 %v1780_v0, %v3940_v20  ;;  %v1858_v7 = vadd.f32 %v1780_v0, %v3944_v14  ;;  %v1859_v56 = vadd.f32 %v1780_v0, %v3948_v39  ;;  %v4113_v4 = vmul.f32 %v1711_v53, %v4609_v21 }
 0x3ba   : > { %2192 = vst [vmem:[%s3926_s18 + $0x78] sm:$0xff] %v2128_v42  ;;  %v4605_v42 = vld [vmem:[#allocation59_spill] sm:$0xff]  ;;  %v2137_v8 = vsel %vm1945_vm9, %v1881_v22, %v2073_v50  ;;  %v2138_v16 = vsel %vm1946_vm10, %v1882_v32, %v2074_v52  ;;  %v2139_v15 = vsel %vm1947_vm11, %v1883_v55, %v2075_v54  ;;  %v2140_v58 = vsel %vm1948_vm12, %v1884_v61, %v2076_v41  ;;  %v4611_v52 = vld [vmem:[#allocation82_spill] sm:$0xff]  ;;  %v4612_v54 = vld [vmem:[#allocation72_spill] sm:$0xff] }
 0x3bb   : > { %v1762_v26 = vmul.f32 %v1699_v3, %v4605_v42  ;;  %2201 = vst [vmem:[%s3926_s18 + $0xc0] sm:$0xff] %v2137_v8  ;;  %v4110_v42 = vmul.f32 %v1711_v53, %v4608_v36  ;;  %v4610_v3 = vld [vmem:[#allocation81_spill] sm:$0xff]  ;;  %v1860_v55 = vadd.f32 %v1780_v0, %v3952_v60  ;;  %v4122_v39 = vmul.f32 %v1711_v53, %v4611_v52 }
 0x3bc   : > { %v4116_v22 = vmul.f32 %v1711_v53, %v4610_v3  ;;  %2202 = vst [vmem:[%s3926_s18 + $0xc8] sm:$0xff] %v2138_v16  ;;  %v1825_v32 = vpop.permute.xlu2 %1824  ;;  %vm1921_vm13 = vcmp.ge.f32.partialorder %v1857_v34, 0.0  ;;  %vm1922_vm14 = vcmp.ge.f32.partialorder %v1858_v7, 0.0  ;;  %vm1923_vm15 = vcmp.ge.f32.partialorder %v1859_v56, 0.0 }
 0x3bd   : > { %2203 = vst [vmem:[%s3926_s18 + $0xd0] sm:$0xff] %v2139_v15  ;;  %v1893_v61 = vadd.f32 %v1825_v32, %v1749_v1  ;;  %v1894_v20 = vadd.f32 %v1825_v32, %v1750_v49  ;;  %v1895_v50 = vadd.f32 %v1825_v32, %v1751_v30  ;;  %v1896_v14 = vadd.f32 %v1825_v32, %v1752_v19  ;;  %v4613_v49 = vld [vmem:[#allocation52_spill] sm:$0xff] }
 0x3be   : > { %2204 = vst [vmem:[%s3926_s18 + $0xd8] sm:$0xff] %v2140_v58  ;;  %vm1924_vm4 = vcmp.ge.f32.partialorder %v1860_v55, 0.0  ;;  %v2049_v30 = vmul.f32 %v4613_v49, %v1857_v34  ;;  %v2050_v58 = vmul.f32 %v4613_v49, %v1858_v7  ;;  %v2051_v53 = vmul.f32 %v4613_v49, %v1859_v56  ;;  %v1805_v36 = vpop.permute.xlu0 %1804 }
 0x3bf   : > { %vm1957_vm0 = vcmp.ge.f32.partialorder %v1893_v61, 0.0  ;;  %vm1958_vm1 = vcmp.ge.f32.partialorder %v1894_v20, 0.0  ;;  %vm1959_vm2 = vcmp.ge.f32.partialorder %v1895_v50, 0.0  ;;  %vm1960_vm3 = vcmp.ge.f32.partialorder %v1896_v14, 0.0  ;;  %v1790_v16 = vpop.permute.xlu1 %1789 }
 0x3c0   : > { %v2085_v60 = vmul.f32 %v4612_v54, %v1893_v61  ;;  %v2086_v0 = vmul.f32 %v4612_v54, %v1894_v20  ;;  %v2087_v15 = vmul.f32 %v4612_v54, %v1895_v50  ;;  %v2088_v1 = vmul.f32 %v4612_v54, %v1896_v14 }
 0x3c1   : > { %v2052_v8 = vmul.f32 %v4613_v49, %v1860_v55  ;;  %v2113_v3 = vsel %vm1921_vm13, %v1857_v34, %v2049_v30  ;;  %v2114_v32 = vsel %vm1922_vm14, %v1858_v7, %v2050_v58  ;;  %v2115_v52 = vsel %vm1923_vm15, %v1859_v56, %v2051_v53 }
 0x3c2   : > { %v2149_v41 = vsel %vm1957_vm0, %v1893_v61, %v2085_v60  ;;  %v2150_v19 = vsel %vm1958_vm1, %v1894_v20, %v2086_v0  ;;  %v2151_v5 = vsel %vm1959_vm2, %v1895_v50, %v2087_v15  ;;  %v2152_v21 = vsel %vm1960_vm3, %v1896_v14, %v2088_v1  ;;  %2177 = vst [vmem:[%s3926_s18] sm:$0xff] %v2113_v3 }
 0x3c3   : > { %2213 = vst [vmem:[%s3926_s18 + $0x120] sm:$0xff] %v2149_v41  ;;  %v1865_v61 = vadd.f32 %v1790_v16, %v3979_v13  ;;  %v1866_v20 = vadd.f32 %v1790_v16, %v3982_v33  ;;  %v1867_v50 = vadd.f32 %v1790_v16, %v3985_v44  ;;  %v1868_v60 = vadd.f32 %v1790_v16, %v3988_v59  ;;  %v4614_v33 = vld [vmem:[#allocation80_spill] sm:$0xff] }
 0x3c4   : > { %2214 = vst [vmem:[%s3926_s18 + $0x128] sm:$0xff] %v2150_v19  ;;  %v1840_v54 = vpop.permute.xlu2 %1839  ;;  %v2116_v7 = vsel %vm1924_vm4, %v1860_v55, %v2052_v8  ;;  %v1877_v8 = vadd.f32 %v1805_v36, %v3964_v29  ;;  %v1879_v3 = vadd.f32 %v1805_v36, %v3972_v38 }
 0x3c5   : > { %2215 = vst [vmem:[%s3926_s18 + $0x130] sm:$0xff] %v2151_v5  ;;  %v1905_v14 = vadd.f32 %v1840_v54, %v1761_v12  ;;  %v1906_v0 = vadd.f32 %v1840_v54, %v1762_v26  ;;  %v1907_v34 = vadd.f32 %v1840_v54, %v1763_v28  ;;  %v1908_v15 = vadd.f32 %v1840_v54, %v1764_v11  ;;  %v4615_v28 = vld [vmem:[#allocation68_spill] sm:$0xff] }
 0x3c6   : > { %2216 = vst [vmem:[%s3926_s18 + $0x138] sm:$0xff] %v2152_v21  ;;  %vm1929_vm5 = vcmp.ge.f32.partialorder %v1865_v61, 0.0  ;;  %vm1930_vm6 = vcmp.ge.f32.partialorder %v1866_v20, 0.0  ;;  %vm1931_vm7 = vcmp.ge.f32.partialorder %v1867_v50, 0.0  ;;  %v2057_v11 = vmul.f32 %v4615_v28, %v1865_v61  ;;  %v1820_v58 = vpop.permute.xlu0 %1819 }
 0x3c7   : > { %vm1969_vm8 = vcmp.ge.f32.partialorder %v1905_v14, 0.0  ;;  %vm1970_vm9 = vcmp.ge.f32.partialorder %v1906_v0, 0.0  ;;  %vm1971_vm10 = vcmp.ge.f32.partialorder %v1907_v34, 0.0  ;;  %vm1972_vm11 = vcmp.ge.f32.partialorder %v1908_v15, 0.0  ;;  %v1800_v13 = vpop.permute.xlu1 %1799  ;;  %2178 = vst [vmem:[%s3926_s18 + $0x8] sm:$0xff] %v2114_v32 }
 0x3c8   : > { %v2097_v44 = vmul.f32 %v4614_v33, %v1905_v14  ;;  %v2098_v59 = vmul.f32 %v4614_v33, %v1906_v0  ;;  %v2099_v12 = vmul.f32 %v4614_v33, %v1907_v34  ;;  %v2100_v26 = vmul.f32 %v4614_v33, %v1908_v15  ;;  %2179 = vst [vmem:[%s3926_s18 + $0x10] sm:$0xff] %v2115_v52 }
 0x3c9   : > { %v2058_v56 = vmul.f32 %v4615_v28, %v1866_v20  ;;  %v2059_v55 = vmul.f32 %v4615_v28, %v1867_v50  ;;  %v2060_v16 = vmul.f32 %v4615_v28, %v1868_v60  ;;  %2180 = vst [vmem:[%s3926_s18 + $0x18] sm:$0xff] %v2116_v7  ;;  %vm1932_vm12 = vcmp.ge.f32.partialorder %v1868_v60, 0.0 }
 0x3ca   : > { %v2161_v1 = vsel %vm1969_vm8, %v1905_v14, %v2097_v44  ;;  %v2162_v49 = vsel %vm1970_vm9, %v1906_v0, %v2098_v59  ;;  %v2163_v30 = vsel %vm1971_vm10, %v1907_v34, %v2099_v12  ;;  %v2164_v53 = vsel %vm1972_vm11, %v1908_v15, %v2100_v26 }
 0x3cb   : > { %2225 = vst [vmem:[%s3926_s18 + $0x180] sm:$0xff] %v2161_v1  ;;  %v2121_v41 = vsel %vm1929_vm5, %v1865_v61, %v2057_v11  ;;  %v2122_v19 = vsel %vm1930_vm6, %v1866_v20, %v2058_v56  ;;  %v2123_v5 = vsel %vm1931_vm7, %v1867_v50, %v2059_v55  ;;  %v1878_v21 = vadd.f32 %v1805_v36, %v3968_v37  ;;  %v4616_v37 = vld [vmem:[#allocation67_spill] sm:$0xff] }
 0x3cc   : > { %2226 = vst [vmem:[%s3926_s18 + $0x188] sm:$0xff] %v2162_v49  ;;  %v1880_v32 = vadd.f32 %v1805_v36, %v3976_v10  ;;  %v4170_v52 = vpop.permute.xlu2 %1854  ;;  %v2124_v54 = vsel %vm1932_vm12, %v1868_v60, %v2060_v16  ;;  %vm1941_vm13 = vcmp.ge.f32.partialorder %v1877_v8, 0.0  ;;  %vm1943_vm15 = vcmp.ge.f32.partialorder %v1879_v3, 0.0 }
 0x3cd   : > { %2227 = vst [vmem:[%s3926_s18 + $0x190] sm:$0xff] %v2163_v30  ;;  %v4175_v61 = vadd.f32 %v4170_v52, %v4110_v42  ;;  %v4179_v20 = vadd.f32 %v4170_v52, %v4113_v4  ;;  %v4183_v29 = vadd.f32 %v4170_v52, %v4116_v22  ;;  %vm1942_vm14 = vcmp.ge.f32.partialorder %v1878_v21, 0.0 }
 0x3ce   : > { %2228 = vst [vmem:[%s3926_s18 + $0x198] sm:$0xff] %v2164_v53  ;;  %vm1944_vm0 = vcmp.ge.f32.partialorder %v1880_v32, 0.0  ;;  %v2069_v38 = vmul.f32 %v4616_v37, %v1877_v8  ;;  %v2070_v10 = vmul.f32 %v4616_v37, %v1878_v21  ;;  %v2071_v42 = vmul.f32 %v4616_v37, %v1879_v3 }
 0x3cf   : > { %2185 = vst [vmem:[%s3926_s18 + $0x40] sm:$0xff] %v2121_v41  ;;  %v2072_v4 = vmul.f32 %v4616_v37, %v1880_v32  ;;  %v1815_v36 = vpop.permute.xlu1 %1814  ;;  %v1873_v22 = vadd.f32 %v1800_v13, %v4031_v45  ;;  %v1874_v50 = vadd.f32 %v1800_v13, %v4034_v63  ;;  %v1875_v60 = vadd.f32 %v1800_v13, %v4037_v40  ;;  %v1835_v45 = vpop.permute.xlu0 %1834  ;;  %v4617_v63 = vld [vmem:[#allocation79_spill] sm:$0xff] }
 0x3d0   : > { %2186 = vst [vmem:[%s3926_s18 + $0x48] sm:$0xff] %v2122_v19  ;;  %v1876_v14 = vadd.f32 %v1800_v13, %v4040_v27  ;;  %v2133_v0 = vsel %vm1941_vm13, %v1877_v8, %v2069_v38  ;;  %v2134_v34 = vsel %vm1942_vm14, %v1878_v21, %v2070_v10  ;;  %v2135_v15 = vsel %vm1943_vm15, %v1879_v3, %v2071_v42 }
 0x3d1   : > { %2187 = vst [vmem:[%s3926_s18 + $0x50] sm:$0xff] %v2123_v5  ;;  %v2136_v7 = vsel %vm1944_vm0, %v1880_v32, %v2072_v4  ;;  %vm1937_vm1 = vcmp.ge.f32.partialorder %v1873_v22, 0.0  ;;  %vm1938_vm2 = vcmp.ge.f32.partialorder %v1874_v50, 0.0  ;;  %vm1939_vm3 = vcmp.ge.f32.partialorder %v1875_v60, 0.0 }
 0x3d2   : > { %2188 = vst [vmem:[%s3926_s18 + $0x58] sm:$0xff] %v2124_v54  ;;  %vm1940_vm4 = vcmp.ge.f32.partialorder %v1876_v14, 0.0  ;;  %v2065_v40 = vmul.f32 %v4617_v63, %v1873_v22  ;;  %v2066_v27 = vmul.f32 %v4617_v63, %v1874_v50  ;;  %v2067_v13 = vmul.f32 %v4617_v63, %v1875_v60 }
 0x3d3   : > { %2197 = vst [vmem:[%s3926_s18 + $0xa0] sm:$0xff] %v2133_v0  ;;  %v2068_v33 = vmul.f32 %v4617_v63, %v1876_v14  ;;  %v1889_v44 = vadd.f32 %v1820_v58, %v3991_v57  ;;  %v1890_v59 = vadd.f32 %v1820_v58, %v3994_v46  ;;  %v1891_v12 = vadd.f32 %v1820_v58, %v3997_v31  ;;  %v4618_v57 = vld [vmem:[#allocation74_spill] sm:$0xff] }
 0x3d4   : > { %2198 = vst [vmem:[%s3926_s18 + $0xa8] sm:$0xff] %v2134_v34  ;;  %v1892_v26 = vadd.f32 %v1820_v58, %v4000_v43  ;;  %v2129_v28 = vsel %vm1937_vm1, %v1873_v22, %v2065_v40  ;;  %v2130_v11 = vsel %vm1938_vm2, %v1874_v50, %v2066_v27  ;;  %v2131_v56 = vsel %vm1939_vm3, %v1875_v60, %v2067_v13  ;;  %v4622_v27 = vld [vmem:[#allocation66_spill] sm:$0xff] }
 0x3d5   : > { %2199 = vst [vmem:[%s3926_s18 + $0xb0] sm:$0xff] %v2135_v15  ;;  %v2132_v55 = vsel %vm1940_vm4, %v1876_v14, %v2068_v33  ;;  %vm1953_vm5 = vcmp.ge.f32.partialorder %v1889_v44, 0.0  ;;  %vm1954_vm6 = vcmp.ge.f32.partialorder %v1890_v59, 0.0  ;;  %vm1955_vm7 = vcmp.ge.f32.partialorder %v1891_v12, 0.0  ;;  %v4623_v33 = vld [vmem:[#allocation69_spill] sm:$0xff] }
 0x3d6   : > { %2200 = vst [vmem:[%s3926_s18 + $0xb8] sm:$0xff] %v2136_v7  ;;  %vm1956_vm8 = vcmp.ge.f32.partialorder %v1892_v26, 0.0  ;;  %v2081_v46 = vmul.f32 %v4618_v57, %v1889_v44  ;;  %v2082_v31 = vmul.f32 %v4618_v57, %v1890_v59  ;;  %v2083_v43 = vmul.f32 %v4618_v57, %v1891_v12 }
 0x3d7   : > { %2193 = vst [vmem:[%s3926_s18 + $0x80] sm:$0xff] %v2129_v28  ;;  %v2084_v16 = vmul.f32 %v4618_v57, %v1892_v26  ;;  %v1830_v1 = vpop.permute.xlu1 %1829  ;;  %v1885_v49 = vadd.f32 %v1815_v36, %v4003_v17  ;;  %v1886_v30 = vadd.f32 %v1815_v36, %v4006_v48  ;;  %v1887_v58 = vadd.f32 %v1815_v36, %v4009_v18  ;;  %v4619_v17 = vld [vmem:[#allocation84_spill] sm:$0xff]  ;;  %v4239_v3 = vpop.permute.xlu0 %1849 }
 0x3d8   : > { %2194 = vst [vmem:[%s3926_s18 + $0x88] sm:$0xff] %v2130_v11  ;;  %v1888_v53 = vadd.f32 %v1815_v36, %v4012_v47  ;;  %v2145_v41 = vsel %vm1953_vm5, %v1889_v44, %v2081_v46  ;;  %v2146_v19 = vsel %vm1954_vm6, %v1890_v59, %v2082_v31  ;;  %v2147_v5 = vsel %vm1955_vm7, %v1891_v12, %v2083_v43  ;;  %v4624_v59 = vld [vmem:[#allocation70_spill] sm:$0xff]  ;;  %v4626_v43 = vld [vmem:[#allocation88_spill] sm:$0xff] }
 0x3d9   : > { %2195 = vst [vmem:[%s3926_s18 + $0x90] sm:$0xff] %v2131_v56  ;;  %v2148_v8 = vsel %vm1956_vm8, %v1892_v26, %v2084_v16  ;;  %vm1949_vm9 = vcmp.ge.f32.partialorder %v1885_v49, 0.0  ;;  %vm1950_vm10 = vcmp.ge.f32.partialorder %v1886_v30, 0.0  ;;  %vm1951_vm11 = vcmp.ge.f32.partialorder %v1887_v58, 0.0 }
 0x3da   : > { %2196 = vst [vmem:[%s3926_s18 + $0x98] sm:$0xff] %v2132_v55  ;;  %vm1952_vm12 = vcmp.ge.f32.partialorder %v1888_v53, 0.0  ;;  %v2077_v48 = vmul.f32 %v4619_v17, %v1885_v49  ;;  %v2078_v18 = vmul.f32 %v4619_v17, %v1886_v30  ;;  %v2079_v47 = vmul.f32 %v4619_v17, %v1887_v58  ;;  %v4625_v55 = vld [vmem:[#allocation86_spill] sm:$0xff] }
 0x3db   : > { %2209 = vst [vmem:[%s3926_s18 + $0x100] sm:$0xff] %v2145_v41  ;;  %v2080_v21 = vmul.f32 %v4619_v17, %v1888_v53  ;;  %v1901_v32 = vadd.f32 %v1835_v45, %v4016_v35  ;;  %v1902_v54 = vadd.f32 %v1835_v45, %v4020_v2  ;;  %v1903_v37 = vadd.f32 %v1835_v45, %v4024_v23  ;;  %v4620_v35 = vld [vmem:[#allocation83_spill] sm:$0xff] }
 0x3dc   : > { %2210 = vst [vmem:[%s3926_s18 + $0x108] sm:$0xff] %v2146_v19  ;;  %v1904_v38 = vadd.f32 %v1835_v45, %v4028_v6  ;;  %v2141_v10 = vsel %vm1949_vm9, %v1885_v49, %v2077_v48  ;;  %v2142_v42 = vsel %vm1950_vm10, %v1886_v30, %v2078_v18  ;;  %v2143_v4 = vsel %vm1951_vm11, %v1887_v58, %v2079_v47 }
 0x3dd   : > { %2211 = vst [vmem:[%s3926_s18 + $0x110] sm:$0xff] %v2147_v5  ;;  %v2144_v36 = vsel %vm1952_vm12, %v1888_v53, %v2080_v21  ;;  %vm1965_vm13 = vcmp.ge.f32.partialorder %v1901_v32, 0.0  ;;  %vm1966_vm14 = vcmp.ge.f32.partialorder %v1902_v54, 0.0  ;;  %vm1967_vm15 = vcmp.ge.f32.partialorder %v1903_v37, 0.0  ;;  %v2039_v53 = vpop.permute.xlu2 %2038 }
 0x3de   : > { %2212 = vst [vmem:[%s3926_s18 + $0x118] sm:$0xff] %v2148_v8  ;;  %vm1968_vm0 = vcmp.ge.f32.partialorder %v1904_v38, 0.0  ;;  %v2093_v2 = vmul.f32 %v4620_v35, %v1901_v32  ;;  %v2094_v23 = vmul.f32 %v4620_v35, %v1902_v54  ;;  %v2095_v6 = vmul.f32 %v4620_v35, %v1903_v37 }
 0x3df   : > { %2205 = vst [vmem:[%s3926_s18 + $0xe0] sm:$0xff] %v2141_v10  ;;  %v2096_v22 = vmul.f32 %v4620_v35, %v1904_v38  ;;  %v1897_v50 = vadd.f32 %v1830_v1, %v4047_v9  ;;  %v1898_v60 = vadd.f32 %v1830_v1, %v4050_v51  ;;  %v1899_v14 = vadd.f32 %v1830_v1, %v4053_v24  ;;  %v1845_v63 = vpop.permute.xlu1 %1844  ;;  %v4621_v9 = vld [vmem:[#allocation85_spill] sm:$0xff]  ;;  %v2047_v46 = vpop.permute.xlu0 %2046 }
 0x3e0   : > { %2206 = vst [vmem:[%s3926_s18 + $0xe8] sm:$0xff] %v2142_v42  ;;  %v1900_v0 = vadd.f32 %v1830_v1, %v4056_v25  ;;  %v2157_v34 = vsel %vm1965_vm13, %v1901_v32, %v2093_v2  ;;  %v2158_v15 = vsel %vm1966_vm14, %v1902_v54, %v2094_v23  ;;  %v2159_v7 = vsel %vm1967_vm15, %v1903_v37, %v2095_v6  ;;  %v4627_v32 = vld [vmem:[#allocation92_spill] sm:$0xff]  ;;  %v4628_v37 = vld [vmem:[#allocation37_spill] sm:$0xff] }
 0x3e1   : > { %2207 = vst [vmem:[%s3926_s18 + $0xf0] sm:$0xff] %v2143_v4  ;;  %v2160_v45 = vsel %vm1968_vm0, %v1904_v38, %v2096_v22  ;;  %vm1961_vm1 = vcmp.ge.f32.partialorder %v1897_v50, 0.0  ;;  %vm1962_vm2 = vcmp.ge.f32.partialorder %v1898_v60, 0.0  ;;  %vm1963_vm3 = vcmp.ge.f32.partialorder %v1899_v14, 0.0 }
 0x3e2   : > { %2208 = vst [vmem:[%s3926_s18 + $0xf8] sm:$0xff] %v2144_v36  ;;  %vm1964_vm4 = vcmp.ge.f32.partialorder %v1900_v0, 0.0  ;;  %v2089_v51 = vmul.f32 %v4621_v9, %v1897_v50  ;;  %v2090_v24 = vmul.f32 %v4621_v9, %v1898_v60  ;;  %v2091_v25 = vmul.f32 %v4621_v9, %v1899_v14 }
 0x3e3   : > { %2221 = vst [vmem:[%s3926_s18 + $0x160] sm:$0xff] %v2157_v34  ;;  %v2092_v40 = vmul.f32 %v4621_v9, %v1900_v0  ;;  %v1766_v13 = vmul.f32 %v4059_v62, %v4622_v27  ;;  %v1767_v44 = vmul.f32 %v4059_v62, %v4623_v33  ;;  %v1768_v12 = vmul.f32 %v4059_v62, %v4624_v59 }
 0x3e4   : > { %v1920_v26 = vadd.f32 %v4170_v52, %v4122_v39  ;;  %2222 = vst [vmem:[%s3926_s18 + $0x168] sm:$0xff] %v2158_v15  ;;  %v2153_v28 = vsel %vm1961_vm1, %v1897_v50, %v2089_v51  ;;  %v2154_v11 = vsel %vm1962_vm2, %v1898_v60, %v2090_v24  ;;  %v2155_v56 = vsel %vm1963_vm3, %v1899_v14, %v2091_v25 }
 0x3e5   : > { %2223 = vst [vmem:[%s3926_s18 + $0x170] sm:$0xff] %v2159_v7  ;;  %v1913_v57 = vadd.f32 %v4239_v3, %v4625_v55  ;;  %v2156_v31 = vsel %vm1964_vm4, %v1900_v0, %v2092_v40  ;;  %v1909_v16 = vadd.f32 %v1845_v63, %v4626_v43  ;;  %v1910_v62 = vadd.f32 %v1845_v63, %v1766_v13 }
 0x3e6   : > { %2224 = vst [vmem:[%s3926_s18 + $0x178] sm:$0xff] %v2160_v45  ;;  %v1911_v1 = vadd.f32 %v1845_v63, %v1767_v44  ;;  %v1912_v39 = vadd.f32 %v1845_v63, %v1768_v12  ;;  %vm1981_vm5 = vcmp.ge.f32.partialorder %v4175_v61, 0.0  ;;  %vm1982_vm6 = vcmp.ge.f32.partialorder %v4179_v20, 0.0 }
 0x3e7   : > { %2217 = vst [vmem:[%s3926_s18 + $0x140] sm:$0xff] %v2153_v28  ;;  %vm1983_vm7 = vcmp.ge.f32.partialorder %v4183_v29, 0.0  ;;  %v2109_v52 = vmul.f32 %v2047_v46, %v4175_v61  ;;  %v2110_v49 = vmul.f32 %v2047_v46, %v4179_v20  ;;  %v2111_v30 = vmul.f32 %v2047_v46, %v4183_v29  ;;  %v2043_v21 = vpop.permute.xlu1 %2042 }
 0x3e8   : > { %2218 = vst [vmem:[%s3926_s18 + $0x148] sm:$0xff] %v2154_v11  ;;  %v2112_v58 = vmul.f32 %v2047_v46, %v1920_v26  ;;  %vm1984_vm8 = vcmp.ge.f32.partialorder %v1920_v26, 0.0  ;;  %vm1973_vm9 = vcmp.ge.f32.partialorder %v1909_v16, 0.0  ;;  %vm1974_vm10 = vcmp.ge.f32.partialorder %v1910_v62, 0.0 }
 0x3e9   : > { %2219 = vst [vmem:[%s3926_s18 + $0x150] sm:$0xff] %v2155_v56  ;;  %vm1975_vm11 = vcmp.ge.f32.partialorder %v1911_v1, 0.0  ;;  %v2173_v41 = vsel %vm1981_vm5, %v4175_v61, %v2109_v52  ;;  %v2174_v19 = vsel %vm1982_vm6, %v4179_v20, %v2110_v49  ;;  %v2175_v5 = vsel %vm1983_vm7, %v4183_v29, %v2111_v30  ;;  %v4629_v61 = vld [vmem:[#allocation87_spill] sm:$0xff] }
 0x3ea   : > { %2220 = vst [vmem:[%s3926_s18 + $0x158] sm:$0xff] %v2156_v31  ;;  %v2176_v8 = vsel %vm1984_vm8, %v1920_v26, %v2112_v58  ;;  %v2101_v17 = vmul.f32 %v2039_v53, %v1909_v16  ;;  %v2102_v48 = vmul.f32 %v2039_v53, %v1910_v62  ;;  %v2103_v18 = vmul.f32 %v2039_v53, %v1911_v1 }
 0x3eb   : > { %2237 = vst [vmem:[%s3926_s18 + $0x1e0] sm:$0xff] %v2173_v41  ;;  %v2104_v47 = vmul.f32 %v2039_v53, %v1912_v39  ;;  %v1914_v54 = vadd.f32 %v4239_v3, %v4627_v32  ;;  %v1915_v38 = vadd.f32 %v4239_v3, %v4628_v37  ;;  %vm1976_vm12 = vcmp.ge.f32.partialorder %v1912_v39, 0.0 }
 0x3ec   : > { %2238 = vst [vmem:[%s3926_s18 + $0x1e8] sm:$0xff] %v2174_v19  ;;  %v1916_v20 = vadd.f32 %v4239_v3, %v4629_v61  ;;  %v2165_v29 = vsel %vm1973_vm9, %v1909_v16, %v2101_v17  ;;  %v2166_v10 = vsel %vm1974_vm10, %v1910_v62, %v2102_v48  ;;  %v2167_v42 = vsel %vm1975_vm11, %v1911_v1, %v2103_v18 }
 0x3ed   : > { %2239 = vst [vmem:[%s3926_s18 + $0x1f0] sm:$0xff] %v2175_v5  ;;  %v2105_v4 = vmul.f32 %v2043_v21, %v1913_v57  ;;  %v2106_v36 = vmul.f32 %v2043_v21, %v1914_v54  ;;  %v2107_v35 = vmul.f32 %v2043_v21, %v1915_v38  ;;  %v2168_v2 = vsel %vm1976_vm12, %v1912_v39, %v2104_v47 }
 0x3ee   : > { %2240 = vst [vmem:[%s3926_s18 + $0x1f8] sm:$0xff] %v2176_v8  ;;  %vm1977_vm13 = vcmp.ge.f32.partialorder %v1913_v57, 0.0  ;;  %v2108_v3 = vmul.f32 %v2043_v21, %v1916_v20  ;;  %vm1978_vm14 = vcmp.ge.f32.partialorder %v1914_v54, 0.0  ;;  %vm1979_vm15 = vcmp.ge.f32.partialorder %v1915_v38, 0.0 }
 0x3ef   : > { %2229 = vst [vmem:[%s3926_s18 + $0x1a0] sm:$0xff] %v2165_v29  ;;  %v2169_v23 = vsel %vm1977_vm13, %v1913_v57, %v2105_v4  ;;  %v2170_v6 = vsel %vm1978_vm14, %v1914_v54, %v2106_v36  ;;  %vm1980_vm0 = vcmp.ge.f32.partialorder %v1916_v20, 0.0  ;;  %v2171_v22 = vsel %vm1979_vm15, %v1915_v38, %v2107_v35 }
 0x3f0   : > { %2230 = vst [vmem:[%s3926_s18 + $0x1a8] sm:$0xff] %v2166_v10  ;;  %v2172_v50 = vsel %vm1980_vm0, %v1916_v20, %v2108_v3 }
 0x3f1   : > { %2231 = vst [vmem:[%s3926_s18 + $0x1b0] sm:$0xff] %v2167_v42 }
 0x3f2   : > { %2232 = vst [vmem:[%s3926_s18 + $0x1b8] sm:$0xff] %v2168_v2 }
 0x3f3   : > { %2233 = vst [vmem:[%s3926_s18 + $0x1c0] sm:$0xff] %v2169_v23 }
 0x3f4   : > { %2234 = vst [vmem:[%s3926_s18 + $0x1c8] sm:$0xff] %v2170_v6 }
 0x3f5   : > { %2235 = vst [vmem:[%s3926_s18 + $0x1d0] sm:$0xff] %v2171_v22 }
 0x3f6   : > { %2236 = vst [vmem:[%s3926_s18 + $0x1d8] sm:$0xff] %v2172_v50 }
 0x3f7 PF: > { %s14_s15 = sadd.s32 1, %s2483_s15  }
 0x3f8   : > { %p11_p4 = scmp.ge.s32.totalorder %s14_s15, 4  }
 0x3fa   :  { %13 = sbr.rel (!%p11_p4) target bundleno = 1 (0x1), region = 66 }

</bundles_post_ra>
